<compile_context>
chip_gen: v7x
topology: tpu7x:2x2x1
jax: 0.10.0
libtpu: 0.0.40
codegen_flags: <defaults>
</compile_context>

<pallas_src>
import functools

import jax
import jax.numpy as jnp
import numpy as np
from jax.experimental import pallas as pl
from jax.experimental.pallas import tpu as pltpu


def attention_pool_kernel(
    x_ref,     # (TB, L0p, C)   activations (matmul dtype), zero-padded tokens
    wq_ref,    # (C, C)         Wq^T * head_dim**-0.5  (matmul dtype)
    wk_ref,    # (C, C)         Wk^T
    wv_ref,    # (C, C)         Wv^T
    wc_ref,    # (C, D)         Wc^T
    krb_ref,   # (L0p, C) f32   posr @ Wk^T + bk  (zero rows for padding)
    vrb_ref,   # (L0p, C) f32   posr @ Wv^T + bv
    bsm_ref,   # (8, max(C,D)) f32  rows: [q_bias, k0_bias, v0_bias, c_bias]
    o_ref,     # (TB, D)
    *, num_heads: int, num_tokens: int,
):
    f32 = jnp.float32
    TB, L0p, C = x_ref.shape
    D = o_ref.shape[-1]
    nh = num_heads
    hd = C // nh
    mm = wq_ref.dtype

    xb = x_ref[...]                                               # (TB, L0p, C)

    # Mean ("class") token over the real tokens (padded rows are zero).
    tok0 = jnp.sum(xb.astype(f32), axis=1) * (1.0 / num_tokens)   # (TB, C)
    tok0_mm = tok0.astype(mm)

    qb = bsm_ref[0:1, :C]                                         # (1, C) f32
    k0b = bsm_ref[1:2, :C]
    v0b = bsm_ref[2:3, :C]
    cb = bsm_ref[3:4, :D]                                         # (1, D) f32

    # Class-token projections (tiny (TB, C) @ (C, C) matmuls); Wq / q_bias are
    # pre-scaled by head_dim**-0.5 and pos0 is folded into the biases.
    q = jnp.dot(tok0_mm, wq_ref[...], preferred_element_type=f32) + qb
    k0 = jnp.dot(tok0_mm, wk_ref[...], preferred_element_type=f32) + k0b
    v0 = jnp.dot(tok0_mm, wv_ref[...], preferred_element_type=f32) + v0b

    # Spatial K / V projections: ONE (TB*L0p, C) @ (C, C) MXU matmul each;
    # positional embedding + bias are added post-matmul in f32 (krb / vrb).
    # L0p % 8 == 0 so these reshapes are tile-aligned (no VMEM relayout).
    x2 = xb.reshape(TB * L0p, C)
    kr = jnp.dot(x2, wk_ref[...], preferred_element_type=f32)
    kr = kr.reshape(TB, L0p, C) + krb_ref[...]
    vr = jnp.dot(x2, wv_ref[...], preferred_element_type=f32)
    vr = vr.reshape(TB, L0p, C) + vrb_ref[...]

    # One-hot head-segment matrix built in-kernel: seg[c, h] = 1 iff channel c
    # belongs to head h (multiply/compare form; no vector integer division).
    ch = jax.lax.broadcasted_iota(jnp.int32, (C, nh), 0)
    hh = jax.lax.broadcasted_iota(jnp.int32, (C, nh), 1)
    lo = hh * hd
    seg = jnp.logical_and(ch >= lo, ch < lo + hd).astype(f32)     # (C, nh)

    # Per-head scores: segment-sum over channels = (rows, C) @ (C, nh) dot.
    s0 = jnp.dot(q * k0, seg, preferred_element_type=f32)         # (TB, nh)
    qkr = (q[:, None, :] * kr).reshape(TB * L0p, C)
    sr = jnp.dot(qkr, seg, preferred_element_type=f32).reshape(TB, L0p, nh)

    if L0p != num_tokens:
        # Mask padded tokens out of the softmax.
        lid = jax.lax.broadcasted_iota(jnp.int32, (TB, L0p, nh), 1)
        sr = jnp.where(lid < num_tokens, sr, -jnp.inf)

    # Numerically stable softmax over the L0 + 1 tokens; the class token is a
    # separate 1-row path (no L0+1 sublane concat).
    m = jnp.maximum(s0, jnp.max(sr, axis=1))                      # (TB, nh)
    p0 = jnp.exp(s0 - m)
    pr = jnp.exp(sr - m[:, None, :])                              # (TB, L0p, nh)
    denom = p0 + jnp.sum(pr, axis=1)
    inv = pl.reciprocal(denom, approx=True)                       # EUP slot
    inv = inv * (2.0 - denom * inv)                               # Newton step
    p0 = p0 * inv
    pr = pr * inv[:, None, :]

    # Broadcast per-head probabilities back to per-channel (dot against seg^T)
    # and take the probability-weighted sum over tokens.
    def bcast(p2d):  # (rows, nh) -> (rows, C)
        return jax.lax.dot_general(p2d, seg, (((1,), (1,)), ((), ())),
                                   preferred_element_type=f32)

    o = bcast(p0) * v0                                            # (TB, C)
    pr_b = bcast(pr.reshape(TB * L0p, nh)).reshape(TB, L0p, C)
    o = o + jnp.sum(pr_b * vr, axis=1)                            # (TB, C)

    # Output projection: ONE (TB, C) @ (C, D) matmul; lane-dense store.
    y = jnp.dot(o.astype(mm), wc_ref[...], preferred_element_type=f32) + cb
    o_ref[...] = y.astype(o_ref.dtype)


def _round_up(v, m):
    return (v + m - 1) // m * m


def attention_pool2d(x_nchw, params, num_heads, *, block_batch=None,
                     matmul_dtype=jnp.bfloat16):
    """params (torch-convention shapes): pos (L0+1, C), wq/wk/wv (C, C),
    bq/bk/bv (C,), wc (D, C), bc (D,).  Returns (N, D) in x_nchw.dtype."""
    N, C, H, W = x_nchw.shape
    L0 = H * W
    L0p = _round_up(L0, 8)
    D = params["wc"].shape[0]
    nh = num_heads
    assert C % nh == 0
    hd = C // nh
    f32 = jnp.float32
    scale = hd ** -0.5
    Cmax = max(C, D)
    x_isize = jnp.dtype(matmul_dtype).itemsize

    # ---- VMEM-aware batch-tile (TB) selection -------------------------------
    try:
        vmem_cap = int(pltpu.get_tpu_info().vmem_capacity_bytes)
    except Exception:
        vmem_cap = 64 * 1024 * 1024          # conservative (v7x per-TC VMEM)

    # Constant blocks resident in VMEM (weights + folded biases), single copy.
    const_bytes = (3 * C * C + C * D) * x_isize + (2 * L0p * C + 8 * Cmax) * 4
    # Per-batch-row bytes: double-buffered x block + ~5 f32 (L0p, C) temps
    # (kr, vr, q*kr, pr_b, headroom) + small per-row vectors.
    per_row = L0p * C * (2 * x_isize + 5 * 4) + (3 * L0p * nh + 4 * C + 2 * D) * 4

    if block_batch is None:
        budget = int(0.70 * vmem_cap) - 2 * const_bytes   # x2: double-buffer fallback
        tb = max(8, min(64, (budget // max(per_row, 1)) // 8 * 8))
        if N >= 16 and tb >= _round_up(N, 8):
            # Keep NB >= 2 so the `parallel` batch axis can span both
            # TensorCores on v7x (negligible extra grid step elsewhere).
            tb = max(8, _round_up(pl.cdiv(N, 2), 8))
    else:
        tb = max(1, int(block_batch))
    TB = min(_round_up(tb, 8), _round_up(N, 8))
    NB = pl.cdiv(N, TB)
    N_pad = NB * TB

    est_vmem = 2 * const_bytes + TB * per_row + 2 * TB * D * 4 + (2 << 20)
    vmem_limit = int(min(0.92 * vmem_cap, max(32 << 20, int(est_vmem * 1.25))))

    # ---- Activation relayout: downcast FIRST, then transpose + pad ----------
    # (one pass over the half-width tensor; the kernel streams bf16 directly).
    # TODO(synk): do the NCHW -> (N, L0, C) relayout in-kernel (einshape) to
    # save this HBM round trip of the activations at very large N*L0*C.
    x = x_nchw.astype(matmul_dtype).reshape(N, C, L0).transpose(0, 2, 1)
    x = jnp.pad(x, ((0, N_pad - N), (0, L0p - L0), (0, 0)))

    # ---- Fold positional embeddings + biases into post-matmul f32 biases ----
    pos = params["pos"].astype(f32)
    pos0, posr = pos[:1], pos[1:]                       # (1, C), (L0, C)
    wq_t = params["wq"].astype(f32).T
    wk_t = params["wk"].astype(f32).T
    wv_t = params["wv"].astype(f32).T
    wc_t = params["wc"].astype(f32).T

    krb = posr @ wk_t + params["bk"].astype(f32)        # (L0, C)
    vrb = posr @ wv_t + params["bv"].astype(f32)
    if L0p != L0:
        krb = jnp.pad(krb, ((0, L0p - L0), (0, 0)))
        vrb = jnp.pad(vrb, ((0, L0p - L0), (0, 0)))

    qb = scale * (pos0 @ wq_t + params["bq"].astype(f32))
    k0b = pos0 @ wk_t + params["bk"].astype(f32)
    v0b = pos0 @ wv_t + params["bv"].astype(f32)
    bsm = jnp.zeros((8, Cmax), f32)
    bsm = bsm.at[0, :C].set(qb[0]).at[1, :C].set(k0b[0]).at[2, :C].set(v0b[0])
    bsm = bsm.at[3, :D].set(params["bc"].astype(f32))

    # nn.Linear is y = x @ W^T + b; the head-dim scale is folded into Wq
    # (weight-side, off the activation path).
    wq = (scale * wq_t).astype(matmul_dtype)
    wk = wk_t.astype(matmul_dtype)
    wv = wv_t.astype(matmul_dtype)
    wc = wc_t.astype(matmul_dtype)

    kernel = functools.partial(attention_pool_kernel, num_heads=nh,
                               num_tokens=L0)

    def run(single_buffer_consts):
        const_map = lambda b: (0, 0)
        if single_buffer_consts:
            cspec = lambda shp: pl.BlockSpec(shp, const_map,
                                             pipeline_mode=pl.Buffered(1))
        else:
            cspec = lambda shp: pl.BlockSpec(shp, const_map)
        grid_spec = pltpu.PrefetchScalarGridSpec(
            num_scalar_prefetch=0,
            grid=(NB,),
            in_specs=[
                pl.BlockSpec((TB, L0p, C), lambda b: (b, 0, 0)),  # x (streamed)
                cspec((C, C)), cspec((C, C)), cspec((C, C)),      # Wq/Wk/Wv
                cspec((C, D)),                                    # Wc
                cspec((L0p, C)), cspec((L0p, C)),                 # krb / vrb
                cspec((8, Cmax)),                                 # packed biases
            ],
            out_specs=pl.BlockSpec((TB, D), lambda b: (b, 0)),
        )
        out = pl.pallas_call(
            kernel,
            out_shape=jax.ShapeDtypeStruct((N_pad, D), x_nchw.dtype),
            grid_spec=grid_spec,
            compiler_params=pltpu.CompilerParams(
                dimension_semantics=("parallel",),   # batch axis -> both TCs on v7x
                vmem_limit_bytes=vmem_limit,
            ),
        )(x, wq, wk, wv, wc, krb, vrb, bsm)
        return jax.block_until_ready(out)

    try:
        out = run(single_buffer_consts=True)    # constants resident once (v7x fit)
    except Exception:
        out = run(single_buffer_consts=False)   # plain double-buffered specs
    return out[:N]                              # (N, D)


def attention_pool2d_reference(x_nchw, params, num_heads):
    """Pure-JAX reference mirroring F.multi_head_attention_forward semantics."""
    N, C, H, W = x_nchw.shape
    x = x_nchw.reshape(N, C, H * W).transpose(2, 0, 1)            # (L0, N, C)
    x = jnp.concatenate([x.mean(axis=0, keepdims=True), x], 0)    # (L, N, C)
    x = x + params["pos"][:, None, :]
    L = x.shape[0]
    hd = C // num_heads

    q = x[:1] @ params["wq"].T + params["bq"]
    k = x @ params["wk"].T + params["bk"]
    v = x @ params["wv"].T + params["bv"]
    q = q * (hd ** -0.5)

    qh = q.reshape(1, N, num_heads, hd)
    kh = k.reshape(L, N, num_heads, hd)
    vh = v.reshape(L, N, num_heads, hd)
    s = jnp.einsum("qnhd,lnhd->nhql", qh, kh)
    p = jax.nn.softmax(s, axis=-1)
    o = jnp.einsum("nhql,lnhd->qnhd", p, vh).reshape(1, N, C)
    y = o @ params["wc"].T + params["bc"]
    return y[0]                                                   # (N, D)


if __name__ == "__main__":
    batch = 10
    spacial_dim = 3          # H = W = 3 -> L0 = 9 (padded to 16 in-kernel)
    embed_dim = 64           # C
    num_heads = 4            # head_dim = 16
    output_dim = 96          # D
    L0 = spacial_dim ** 2

    key = jax.random.PRNGKey(0)
    keys = jax.random.split(key, 10)

    params = {
        "pos": (jax.random.normal(keys[0], (L0 + 1, embed_dim), jnp.float32)
                / (embed_dim ** 0.5)),
        "wq": jax.random.normal(keys[1], (embed_dim, embed_dim), jnp.float32) * 0.1,
        "bq": jax.random.normal(keys[2], (embed_dim,), jnp.float32) * 0.1,
        "wk": jax.random.normal(keys[3], (embed_dim, embed_dim), jnp.float32) * 0.1,
        "bk": jax.random.normal(keys[4], (embed_dim,), jnp.float32) * 0.1,
        "wv": jax.random.normal(keys[5], (embed_dim, embed_dim), jnp.float32) * 0.1,
        "bv": jax.random.normal(keys[6], (embed_dim,), jnp.float32) * 0.1,
        "wc": jax.random.normal(keys[7], (output_dim, embed_dim), jnp.float32) * 0.1,
        "bc": jax.random.normal(keys[8], (output_dim,), jnp.float32) * 0.1,
    }

    x = jax.random.normal(keys[9], (batch, embed_dim, spacial_dim, spacial_dim),
                          jnp.float32)

    ref = attention_pool2d_reference(x, params, num_heads)

    # 1) Exact-semantics check: f32 MXU path, multi-step grid, batch padding
    #    and L0 padding with softmax masking.
    out_f32 = attention_pool2d(x, params, num_heads, block_batch=8,
                               matmul_dtype=jnp.float32)
    np.testing.assert_allclose(np.asarray(out_f32), np.asarray(ref),
                               rtol=2e-3, atol=2e-3)

    # 2) Default fast path: bf16-streamed activations + bf16 weights, f32
    #    accumulation / softmax, auto-selected batch tile.
    out_bf16 = attention_pool2d(x, params, num_heads)
    np.testing.assert_allclose(np.asarray(out_bf16), np.asarray(ref),
                               rtol=5e-2, atol=5e-2)

    assert out_f32.shape == (batch, output_dim)
    assert out_bf16.shape == (batch, output_dim)
    print("KERNEL_OK")
</pallas_src>

<mosaic_0001>
module attributes {stable_mosaic.version = 11 : i64} {
  func.func @attention_pool_kernel(%arg0: i32, %arg1: memref<8x16x64xf32, #tpu.memory_space<vmem>>, %arg2: memref<64x64xf32, #tpu.memory_space<vmem>>, %arg3: memref<64x64xf32, #tpu.memory_space<vmem>>, %arg4: memref<64x64xf32, #tpu.memory_space<vmem>>, %arg5: memref<64x96xf32, #tpu.memory_space<vmem>>, %arg6: memref<16x64xf32, #tpu.memory_space<vmem>>, %arg7: memref<16x64xf32, #tpu.memory_space<vmem>>, %arg8: memref<8x96xf32, #tpu.memory_space<vmem>>, %arg9: memref<8x96xf32, #tpu.memory_space<vmem>>) attributes {dimension_semantics = [#tpu.dimension_semantics<parallel>], iteration_bounds = array<i64: 2>, scalar_prefetch = 0 : i64, scratch_operands = 0 : i64, tpu.core_type = #tpu.core_type<tc>, window_params = [{transform_indices = @transform_0, window_bounds = array<i64: 8, 16, 64>}, {pipeline_mode = #tpu.pipeline_mode<synchronous>, transform_indices = @transform_1, window_bounds = array<i64: 64, 64>}, {pipeline_mode = #tpu.pipeline_mode<synchronous>, transform_indices = @transform_2, window_bounds = array<i64: 64, 64>}, {pipeline_mode = #tpu.pipeline_mode<synchronous>, transform_indices = @transform_3, window_bounds = array<i64: 64, 64>}, {pipeline_mode = #tpu.pipeline_mode<synchronous>, transform_indices = @transform_4, window_bounds = array<i64: 64, 96>}, {pipeline_mode = #tpu.pipeline_mode<synchronous>, transform_indices = @transform_5, window_bounds = array<i64: 16, 64>}, {pipeline_mode = #tpu.pipeline_mode<synchronous>, transform_indices = @transform_6, window_bounds = array<i64: 16, 64>}, {pipeline_mode = #tpu.pipeline_mode<synchronous>, transform_indices = @transform_7, window_bounds = array<i64: 8, 96>}, {transform_indices = @transform_8, window_bounds = array<i64: 8, 96>}]} {
    %c0 = arith.constant 0 : index
    %c0_0 = arith.constant 0 : index
    %c0_1 = arith.constant 0 : index
    %0 = vector.load %arg1[%c0, %c0_0, %c0_1] : memref<8x16x64xf32, #tpu.memory_space<vmem>>, vector<8x16x64xf32>
    %cst = arith.constant dense<0.000000e+00> : vector<8x64xf32>
    %1 = vector.multi_reduction <add>, %0, %cst [1] : vector<8x16x64xf32> to vector<8x64xf32>
    %cst_2 = arith.constant 0.111111112 : f32
    %2 = vector.broadcast %cst_2 : f32 to vector<8x64xf32>
    %3 = arith.mulf %1, %2 : vector<8x64xf32>
    %c0_3 = arith.constant 0 : index
    %c0_4 = arith.constant 0 : index
    %4 = vector.load %arg8[%c0_3, %c0_4] : memref<8x96xf32, #tpu.memory_space<vmem>>, vector<1x64xf32>
    %c1 = arith.constant 1 : index
    %c0_5 = arith.constant 0 : index
    %5 = vector.load %arg8[%c1, %c0_5] : memref<8x96xf32, #tpu.memory_space<vmem>>, vector<1x64xf32>
    %c2 = arith.constant 2 : index
    %c0_6 = arith.constant 0 : index
    %6 = vector.load %arg8[%c2, %c0_6] : memref<8x96xf32, #tpu.memory_space<vmem>>, vector<1x64xf32>
    %c3 = arith.constant 3 : index
    %c0_7 = arith.constant 0 : index
    %7 = vector.load %arg8[%c3, %c0_7] : memref<8x96xf32, #tpu.memory_space<vmem>>, vector<1x96xf32>
    %c0_8 = arith.constant 0 : index
    %c0_9 = arith.constant 0 : index
    %8 = vector.load %arg2[%c0_8, %c0_9] : memref<64x64xf32, #tpu.memory_space<vmem>>, vector<64x64xf32>
    %cst_10 = arith.constant dense<0.000000e+00> : vector<8x64xf32>
    %9 = tpu.matmul %3, %8, %cst_10 {dimension_numbers = #tpu.dot_dimension_numbers<[1], [0], [0], [1], [0, 0, 1, 1], [], []>} : vector<8x64xf32>, vector<64x64xf32>, vector<8x64xf32> -> vector<8x64xf32>
    %10 = vector.broadcast %4 : vector<1x64xf32> to vector<8x64xf32>
    %11 = arith.addf %9, %10 : vector<8x64xf32>
    %c0_11 = arith.constant 0 : index
    %c0_12 = arith.constant 0 : index
    %12 = vector.load %arg3[%c0_11, %c0_12] : memref<64x64xf32, #tpu.memory_space<vmem>>, vector<64x64xf32>
    %cst_13 = arith.constant dense<0.000000e+00> : vector<8x64xf32>
    %13 = tpu.matmul %3, %12, %cst_13 {dimension_numbers = #tpu.dot_dimension_numbers<[1], [0], [0], [1], [0, 0, 1, 1], [], []>} : vector<8x64xf32>, vector<64x64xf32>, vector<8x64xf32> -> vector<8x64xf32>
    %14 = vector.broadcast %5 : vector<1x64xf32> to vector<8x64xf32>
    %15 = arith.addf %13, %14 : vector<8x64xf32>
    %c0_14 = arith.constant 0 : index
    %c0_15 = arith.constant 0 : index
    %16 = vector.load %arg4[%c0_14, %c0_15] : memref<64x64xf32, #tpu.memory_space<vmem>>, vector<64x64xf32>
    %cst_16 = arith.constant dense<0.000000e+00> : vector<8x64xf32>
    %17 = tpu.matmul %3, %16, %cst_16 {dimension_numbers = #tpu.dot_dimension_numbers<[1], [0], [0], [1], [0, 0, 1, 1], [], []>} : vector<8x64xf32>, vector<64x64xf32>, vector<8x64xf32> -> vector<8x64xf32>
    %18 = vector.broadcast %6 : vector<1x64xf32> to vector<8x64xf32>
    %19 = arith.addf %17, %18 : vector<8x64xf32>
    %20 = vector.shape_cast %0 : vector<8x16x64xf32> to vector<128x64xf32>
    %c0_17 = arith.constant 0 : index
    %c0_18 = arith.constant 0 : index
    %21 = vector.load %arg3[%c0_17, %c0_18] : memref<64x64xf32, #tpu.memory_space<vmem>>, vector<64x64xf32>
    %cst_19 = arith.constant dense<0.000000e+00> : vector<128x64xf32>
    %22 = tpu.matmul %20, %21, %cst_19 {dimension_numbers = #tpu.dot_dimension_numbers<[1], [0], [0], [1], [0, 0, 1, 1], [], []>} : vector<128x64xf32>, vector<64x64xf32>, vector<128x64xf32> -> vector<128x64xf32>
    %23 = vector.shape_cast %22 : vector<128x64xf32> to vector<8x16x64xf32>
    %c0_20 = arith.constant 0 : index
    %c0_21 = arith.constant 0 : index
    %24 = vector.load %arg6[%c0_20, %c0_21] : memref<16x64xf32, #tpu.memory_space<vmem>>, vector<16x64xf32>
    %25 = vector.shape_cast %24 : vector<16x64xf32> to vector<1x16x64xf32>
    %26 = vector.broadcast %25 : vector<1x16x64xf32> to vector<8x16x64xf32>
    %27 = arith.addf %23, %26 : vector<8x16x64xf32>
    %c0_22 = arith.constant 0 : index
    %c0_23 = arith.constant 0 : index
    %28 = vector.load %arg4[%c0_22, %c0_23] : memref<64x64xf32, #tpu.memory_space<vmem>>, vector<64x64xf32>
    %cst_24 = arith.constant dense<0.000000e+00> : vector<128x64xf32>
    %29 = tpu.matmul %20, %28, %cst_24 {dimension_numbers = #tpu.dot_dimension_numbers<[1], [0], [0], [1], [0, 0, 1, 1], [], []>} : vector<128x64xf32>, vector<64x64xf32>, vector<128x64xf32> -> vector<128x64xf32>
    %30 = vector.shape_cast %29 : vector<128x64xf32> to vector<8x16x64xf32>
    %c0_25 = arith.constant 0 : index
    %c0_26 = arith.constant 0 : index
    %31 = vector.load %arg7[%c0_25, %c0_26] : memref<16x64xf32, #tpu.memory_space<vmem>>, vector<16x64xf32>
    %32 = vector.shape_cast %31 : vector<16x64xf32> to vector<1x16x64xf32>
    %33 = vector.broadcast %32 : vector<1x16x64xf32> to vector<8x16x64xf32>
    %34 = arith.addf %30, %33 : vector<8x16x64xf32>
    %35 = tpu.iota {dimensions = array<i32: 0>} : vector<64x4xi32>
    %36 = tpu.iota {dimensions = array<i32: 1>} : vector<64x4xi32>
    %c16_i32 = arith.constant 16 : i32
    %37 = vector.broadcast %c16_i32 : i32 to vector<64x4xi32>
    %38 = arith.muli %36, %37 : vector<64x4xi32>
    %39 = arith.cmpi sge, %35, %38 : vector<64x4xi32>
    %c16_i32_27 = arith.constant 16 : i32
    %40 = vector.broadcast %c16_i32_27 : i32 to vector<64x4xi32>
    %41 = arith.addi %38, %40 : vector<64x4xi32>
    %42 = arith.cmpi slt, %35, %41 : vector<64x4xi32>
    %43 = arith.andi %39, %42 : vector<64x4xi1>
    %44 = arith.extui %43 : vector<64x4xi1> to vector<64x4xi32>
    %45 = arith.sitofp %44 : vector<64x4xi32> to vector<64x4xf32>
    %46 = arith.mulf %11, %15 : vector<8x64xf32>
    %cst_28 = arith.constant dense<0.000000e+00> : vector<8x4xf32>
    %47 = tpu.matmul %46, %45, %cst_28 {dimension_numbers = #tpu.dot_dimension_numbers<[1], [0], [0], [1], [0, 0, 1, 1], [], []>} : vector<8x64xf32>, vector<64x4xf32>, vector<8x4xf32> -> vector<8x4xf32>
    %48 = vector.shape_cast %11 : vector<8x64xf32> to vector<8x1x64xf32>
    %49 = vector.broadcast %48 : vector<8x1x64xf32> to vector<8x16x64xf32>
    %50 = arith.mulf %49, %27 : vector<8x16x64xf32>
    %51 = vector.shape_cast %50 : vector<8x16x64xf32> to vector<128x64xf32>
    %cst_29 = arith.constant dense<0.000000e+00> : vector<128x4xf32>
    %52 = tpu.matmul %51, %45, %cst_29 {dimension_numbers = #tpu.dot_dimension_numbers<[1], [0], [0], [1], [0, 0, 1, 1], [], []>} : vector<128x64xf32>, vector<64x4xf32>, vector<128x4xf32> -> vector<128x4xf32>
    %53 = vector.shape_cast %52 : vector<128x4xf32> to vector<8x16x4xf32>
    %54 = tpu.iota {dimensions = array<i32: 1>} : vector<8x16x4xi32>
    %c9_i32 = arith.constant 9 : i32
    %55 = vector.broadcast %c9_i32 : i32 to vector<8x16x4xi32>
    %56 = arith.cmpi slt, %54, %55 : vector<8x16x4xi32>
    %cst_30 = arith.constant 0xFF800000 : f32
    %57 = vector.broadcast %cst_30 : f32 to vector<8x16x4xf32>
    %58 = arith.select %56, %53, %57 : vector<8x16x4xi1>, vector<8x16x4xf32>
    %cst_31 = arith.constant dense<0xFF800000> : vector<8x4xf32>
    %59 = vector.multi_reduction <maximumf>, %58, %cst_31 [1] : vector<8x16x4xf32> to vector<8x4xf32>
    %60 = arith.maximumf %47, %59 : vector<8x4xf32>
    %61 = arith.subf %47, %60 : vector<8x4xf32>
    %62 = math.exp %61 : vector<8x4xf32>
    %63 = vector.shape_cast %60 : vector<8x4xf32> to vector<8x1x4xf32>
    %64 = vector.broadcast %63 : vector<8x1x4xf32> to vector<8x16x4xf32>
    %65 = arith.subf %58, %64 : vector<8x16x4xf32>
    %66 = math.exp %65 : vector<8x16x4xf32>
    %cst_32 = arith.constant dense<0.000000e+00> : vector<8x4xf32>
    %67 = vector.multi_reduction <add>, %66, %cst_32 [1] : vector<8x16x4xf32> to vector<8x4xf32>
    %68 = arith.addf %62, %67 : vector<8x4xf32>
    %69 = tpu.reciprocal %68 {approx = true} : vector<8x4xf32> -> vector<8x4xf32>
    %70 = arith.mulf %68, %69 : vector<8x4xf32>
    %cst_33 = arith.constant 2.000000e+00 : f32
    %71 = vector.broadcast %cst_33 : f32 to vector<8x4xf32>
    %72 = arith.subf %71, %70 : vector<8x4xf32>
    %73 = arith.mulf %69, %72 : vector<8x4xf32>
    %74 = arith.mulf %62, %73 : vector<8x4xf32>
    %75 = vector.shape_cast %73 : vector<8x4xf32> to vector<8x1x4xf32>
    %76 = vector.broadcast %75 : vector<8x1x4xf32> to vector<8x16x4xf32>
    %77 = arith.mulf %66, %76 : vector<8x16x4xf32>
    %cst_34 = arith.constant dense<0.000000e+00> : vector<8x64xf32>
    %78 = tpu.matmul %74, %45, %cst_34 {dimension_numbers = #tpu.dot_dimension_numbers<[1], [1], [0], [0], [0, 0, 1, 0], [], []>} : vector<8x4xf32>, vector<64x4xf32>, vector<8x64xf32> -> vector<8x64xf32>
    %79 = arith.mulf %78, %19 : vector<8x64xf32>
    %80 = vector.shape_cast %77 : vector<8x16x4xf32> to vector<128x4xf32>
    %cst_35 = arith.constant dense<0.000000e+00> : vector<128x64xf32>
    %81 = tpu.matmul %80, %45, %cst_35 {dimension_numbers = #tpu.dot_dimension_numbers<[1], [1], [0], [0], [0, 0, 1, 0], [], []>} : vector<128x4xf32>, vector<64x4xf32>, vector<128x64xf32> -> vector<128x64xf32>
    %82 = vector.shape_cast %81 : vector<128x64xf32> to vector<8x16x64xf32>
    %83 = arith.mulf %82, %34 : vector<8x16x64xf32>
    %cst_36 = arith.constant dense<0.000000e+00> : vector<8x64xf32>
    %84 = vector.multi_reduction <add>, %83, %cst_36 [1] : vector<8x16x64xf32> to vector<8x64xf32>
    %85 = arith.addf %79, %84 : vector<8x64xf32>
    %c0_37 = arith.constant 0 : index
    %c0_38 = arith.constant 0 : index
    %86 = vector.load %arg5[%c0_37, %c0_38] : memref<64x96xf32, #tpu.memory_space<vmem>>, vector<64x96xf32>
    %cst_39 = arith.constant dense<0.000000e+00> : vector<8x96xf32>
    %87 = tpu.matmul %85, %86, %cst_39 {dimension_numbers = #tpu.dot_dimension_numbers<[1], [0], [0], [1], [0, 0, 1, 1], [], []>} : vector<8x64xf32>, vector<64x96xf32>, vector<8x96xf32> -> vector<8x96xf32>
    %88 = vector.broadcast %7 : vector<1x96xf32> to vector<8x96xf32>
    %89 = arith.addf %87, %88 : vector<8x96xf32>
    %c0_40 = arith.constant 0 : index
    %c0_41 = arith.constant 0 : index
    %90 = vector.load %arg9[%c0_40, %c0_41] : memref<8x96xf32, #tpu.memory_space<vmem>>, vector<8x96xf32>
    tpu.vector_store %arg9[%c0_40, %c0_41], %89 {strides = array<i32>} : memref<8x96xf32, #tpu.memory_space<vmem>>, vector<8x96xf32>,
    return
  }
  func.func @transform_0(%arg0: i32) -> (i32, i32, i32) {
    %c0_i32 = arith.constant 0 : i32
    %c0_i32_0 = arith.constant 0 : i32
    %c0_i32_1 = arith.constant 0 : i32
    return %arg0, %c0_i32, %c0_i32_0 : i32, i32, i32
  }
  func.func @transform_1(%arg0: i32) -> (i32, i32) {
    %c0_i32 = arith.constant 0 : i32
    %c0_i32_0 = arith.constant 0 : i32
    %c0_i32_1 = arith.constant 0 : i32
    return %c0_i32, %c0_i32_0 : i32, i32
  }
  func.func @transform_2(%arg0: i32) -> (i32, i32) {
    %c0_i32 = arith.constant 0 : i32
    %c0_i32_0 = arith.constant 0 : i32
    %c0_i32_1 = arith.constant 0 : i32
    return %c0_i32, %c0_i32_0 : i32, i32
  }
  func.func @transform_3(%arg0: i32) -> (i32, i32) {
    %c0_i32 = arith.constant 0 : i32
    %c0_i32_0 = arith.constant 0 : i32
    %c0_i32_1 = arith.constant 0 : i32
    return %c0_i32, %c0_i32_0 : i32, i32
  }
  func.func @transform_4(%arg0: i32) -> (i32, i32) {
    %c0_i32 = arith.constant 0 : i32
    %c0_i32_0 = arith.constant 0 : i32
    %c0_i32_1 = arith.constant 0 : i32
    return %c0_i32, %c0_i32_0 : i32, i32
  }
  func.func @transform_5(%arg0: i32) -> (i32, i32) {
    %c0_i32 = arith.constant 0 : i32
    %c0_i32_0 = arith.constant 0 : i32
    %c0_i32_1 = arith.constant 0 : i32
    return %c0_i32, %c0_i32_0 : i32, i32
  }
  func.func @transform_6(%arg0: i32) -> (i32, i32) {
    %c0_i32 = arith.constant 0 : i32
    %c0_i32_0 = arith.constant 0 : i32
    %c0_i32_1 = arith.constant 0 : i32
    return %c0_i32, %c0_i32_0 : i32, i32
  }
  func.func @transform_7(%arg0: i32) -> (i32, i32) {
    %c0_i32 = arith.constant 0 : i32
    %c0_i32_0 = arith.constant 0 : i32
    %c0_i32_1 = arith.constant 0 : i32
    return %c0_i32, %c0_i32_0 : i32, i32
  }
  func.func @transform_8(%arg0: i32) -> (i32, i32) {
    %c0_i32 = arith.constant 0 : i32
    %c0_i32_0 = arith.constant 0 : i32
    return %arg0, %c0_i32 : i32, i32
  }
}

module attributes {stable_mosaic.version = 11 : i64} {
  func.func @attention_pool_kernel(%arg0: i32, %arg1: memref<8x16x64xf32, #tpu.memory_space<vmem>>, %arg2: memref<64x64xf32, #tpu.memory_space<vmem>>, %arg3: memref<64x64xf32, #tpu.memory_space<vmem>>, %arg4: memref<64x64xf32, #tpu.memory_space<vmem>>, %arg5: memref<64x96xf32, #tpu.memory_space<vmem>>, %arg6: memref<16x64xf32, #tpu.memory_space<vmem>>, %arg7: memref<16x64xf32, #tpu.memory_space<vmem>>, %arg8: memref<8x96xf32, #tpu.memory_space<vmem>>, %arg9: memref<8x96xf32, #tpu.memory_space<vmem>>) attributes {dimension_semantics = [#tpu.dimension_semantics<parallel>], iteration_bounds = array<i64: 2>, scalar_prefetch = 0 : i64, scratch_operands = 0 : i64, tpu.core_type = #tpu.core_type<tc>, window_params = [{transform_indices = @transform_0, window_bounds = array<i64: 8, 16, 64>}, {pipeline_mode = #tpu.pipeline_mode<synchronous>, transform_indices = @transform_1, window_bounds = array<i64: 64, 64>}, {pipeline_mode = #tpu.pipeline_mode<synchronous>, transform_indices = @transform_2, window_bounds = array<i64: 64, 64>}, {pipeline_mode = #tpu.pipeline_mode<synchronous>, transform_indices = @transform_3, window_bounds = array<i64: 64, 64>}, {pipeline_mode = #tpu.pipeline_mode<synchronous>, transform_indices = @transform_4, window_bounds = array<i64: 64, 96>}, {pipeline_mode = #tpu.pipeline_mode<synchronous>, transform_indices = @transform_5, window_bounds = array<i64: 16, 64>}, {pipeline_mode = #tpu.pipeline_mode<synchronous>, transform_indices = @transform_6, window_bounds = array<i64: 16, 64>}, {pipeline_mode = #tpu.pipeline_mode<synchronous>, transform_indices = @transform_7, window_bounds = array<i64: 8, 96>}, {transform_indices = @transform_8, window_bounds = array<i64: 8, 96>}]} {
    %c0 = arith.constant 0 : index
    %c0_0 = arith.constant 0 : index
    %c0_1 = arith.constant 0 : index
    %0 = vector.load %arg1[%c0, %c0_0, %c0_1] : memref<8x16x64xf32, #tpu.memory_space<vmem>>, vector<8x16x64xf32>
    %cst = arith.constant dense<0.000000e+00> : vector<8x64xf32>
    %1 = vector.multi_reduction <add>, %0, %cst [1] : vector<8x16x64xf32> to vector<8x64xf32>
    %cst_2 = arith.constant 0.111111112 : f32
    %2 = vector.broadcast %cst_2 : f32 to vector<8x64xf32>
    %3 = arith.mulf %1, %2 : vector<8x64xf32>
    %c0_3 = arith.constant 0 : index
    %c0_4 = arith.constant 0 : index
    %4 = vector.load %arg8[%c0_3, %c0_4] : memref<8x96xf32, #tpu.memory_space<vmem>>, vector<1x64xf32>
    %c1 = arith.constant 1 : index
    %c0_5 = arith.constant 0 : index
    %5 = vector.load %arg8[%c1, %c0_5] : memref<8x96xf32, #tpu.memory_space<vmem>>, vector<1x64xf32>
    %c2 = arith.constant 2 : index
    %c0_6 = arith.constant 0 : index
    %6 = vector.load %arg8[%c2, %c0_6] : memref<8x96xf32, #tpu.memory_space<vmem>>, vector<1x64xf32>
    %c3 = arith.constant 3 : index
    %c0_7 = arith.constant 0 : index
    %7 = vector.load %arg8[%c3, %c0_7] : memref<8x96xf32, #tpu.memory_space<vmem>>, vector<1x96xf32>
    %c0_8 = arith.constant 0 : index
    %c0_9 = arith.constant 0 : index
    %8 = vector.load %arg2[%c0_8, %c0_9] : memref<64x64xf32, #tpu.memory_space<vmem>>, vector<64x64xf32>
    %cst_10 = arith.constant dense<0.000000e+00> : vector<8x64xf32>
    %9 = tpu.matmul %3, %8, %cst_10 {dimension_numbers = #tpu.dot_dimension_numbers<[1], [0], [0], [1], [0, 0, 1, 1], [], []>} : vector<8x64xf32>, vector<64x64xf32>, vector<8x64xf32> -> vector<8x64xf32>
    %10 = vector.broadcast %4 : vector<1x64xf32> to vector<8x64xf32>
    %11 = arith.addf %9, %10 : vector<8x64xf32>
    %c0_11 = arith.constant 0 : index
    %c0_12 = arith.constant 0 : index
    %12 = vector.load %arg3[%c0_11, %c0_12] : memref<64x64xf32, #tpu.memory_space<vmem>>, vector<64x64xf32>
    %cst_13 = arith.constant dense<0.000000e+00> : vector<8x64xf32>
    %13 = tpu.matmul %3, %12, %cst_13 {dimension_numbers = #tpu.dot_dimension_numbers<[1], [0], [0], [1], [0, 0, 1, 1], [], []>} : vector<8x64xf32>, vector<64x64xf32>, vector<8x64xf32> -> vector<8x64xf32>
    %14 = vector.broadcast %5 : vector<1x64xf32> to vector<8x64xf32>
    %15 = arith.addf %13, %14 : vector<8x64xf32>
    %c0_14 = arith.constant 0 : index
    %c0_15 = arith.constant 0 : index
    %16 = vector.load %arg4[%c0_14, %c0_15] : memref<64x64xf32, #tpu.memory_space<vmem>>, vector<64x64xf32>
    %cst_16 = arith.constant dense<0.000000e+00> : vector<8x64xf32>
    %17 = tpu.matmul %3, %16, %cst_16 {dimension_numbers = #tpu.dot_dimension_numbers<[1], [0], [0], [1], [0, 0, 1, 1], [], []>} : vector<8x64xf32>, vector<64x64xf32>, vector<8x64xf32> -> vector<8x64xf32>
    %18 = vector.broadcast %6 : vector<1x64xf32> to vector<8x64xf32>
    %19 = arith.addf %17, %18 : vector<8x64xf32>
    %20 = vector.shape_cast %0 : vector<8x16x64xf32> to vector<128x64xf32>
    %c0_17 = arith.constant 0 : index
    %c0_18 = arith.constant 0 : index
    %21 = vector.load %arg3[%c0_17, %c0_18] : memref<64x64xf32, #tpu.memory_space<vmem>>, vector<64x64xf32>
    %cst_19 = arith.constant dense<0.000000e+00> : vector<128x64xf32>
    %22 = tpu.matmul %20, %21, %cst_19 {dimension_numbers = #tpu.dot_dimension_numbers<[1], [0], [0], [1], [0, 0, 1, 1], [], []>} : vector<128x64xf32>, vector<64x64xf32>, vector<128x64xf32> -> vector<128x64xf32>
    %23 = vector.shape_cast %22 : vector<128x64xf32> to vector<8x16x64xf32>
    %c0_20 = arith.constant 0 : index
    %c0_21 = arith.constant 0 : index
    %24 = vector.load %arg6[%c0_20, %c0_21] : memref<16x64xf32, #tpu.memory_space<vmem>>, vector<16x64xf32>
    %25 = vector.shape_cast %24 : vector<16x64xf32> to vector<1x16x64xf32>
    %26 = vector.broadcast %25 : vector<1x16x64xf32> to vector<8x16x64xf32>
    %27 = arith.addf %23, %26 : vector<8x16x64xf32>
    %c0_22 = arith.constant 0 : index
    %c0_23 = arith.constant 0 : index
    %28 = vector.load %arg4[%c0_22, %c0_23] : memref<64x64xf32, #tpu.memory_space<vmem>>, vector<64x64xf32>
    %cst_24 = arith.constant dense<0.000000e+00> : vector<128x64xf32>
    %29 = tpu.matmul %20, %28, %cst_24 {dimension_numbers = #tpu.dot_dimension_numbers<[1], [0], [0], [1], [0, 0, 1, 1], [], []>} : vector<128x64xf32>, vector<64x64xf32>, vector<128x64xf32> -> vector<128x64xf32>
    %30 = vector.shape_cast %29 : vector<128x64xf32> to vector<8x16x64xf32>
    %c0_25 = arith.constant 0 : index
    %c0_26 = arith.constant 0 : index
    %31 = vector.load %arg7[%c0_25, %c0_26] : memref<16x64xf32, #tpu.memory_space<vmem>>, vector<16x64xf32>
    %32 = vector.shape_cast %31 : vector<16x64xf32> to vector<1x16x64xf32>
    %33 = vector.broadcast %32 : vector<1x16x64xf32> to vector<8x16x64xf32>
    %34 = arith.addf %30, %33 : vector<8x16x64xf32>
    %35 = tpu.iota {dimensions = array<i32: 0>} : vector<64x4xi32>
    %36 = tpu.iota {dimensions = array<i32: 1>} : vector<64x4xi32>
    %c16_i32 = arith.constant 16 : i32
    %37 = vector.broadcast %c16_i32 : i32 to vector<64x4xi32>
    %38 = arith.muli %36, %37 : vector<64x4xi32>
    %39 = arith.cmpi sge, %35, %38 : vector<64x4xi32>
    %c16_i32_27 = arith.constant 16 : i32
    %40 = vector.broadcast %c16_i32_27 : i32 to vector<64x4xi32>
    %41 = arith.addi %38, %40 : vector<64x4xi32>
    %42 = arith.cmpi slt, %35, %41 : vector<64x4xi32>
    %43 = arith.andi %39, %42 : vector<64x4xi1>
    %44 = arith.extui %43 : vector<64x4xi1> to vector<64x4xi32>
    %45 = arith.sitofp %44 : vector<64x4xi32> to vector<64x4xf32>
    %46 = arith.mulf %11, %15 : vector<8x64xf32>
    %cst_28 = arith.constant dense<0.000000e+00> : vector<8x4xf32>
    %47 = tpu.matmul %46, %45, %cst_28 {dimension_numbers = #tpu.dot_dimension_numbers<[1], [0], [0], [1], [0, 0, 1, 1], [], []>} : vector<8x64xf32>, vector<64x4xf32>, vector<8x4xf32> -> vector<8x4xf32>
    %48 = vector.shape_cast %11 : vector<8x64xf32> to vector<8x1x64xf32>
    %49 = vector.broadcast %48 : vector<8x1x64xf32> to vector<8x16x64xf32>
    %50 = arith.mulf %49, %27 : vector<8x16x64xf32>
    %51 = vector.shape_cast %50 : vector<8x16x64xf32> to vector<128x64xf32>
    %cst_29 = arith.constant dense<0.000000e+00> : vector<128x4xf32>
    %52 = tpu.matmul %51, %45, %cst_29 {dimension_numbers = #tpu.dot_dimension_numbers<[1], [0], [0], [1], [0, 0, 1, 1], [], []>} : vector<128x64xf32>, vector<64x4xf32>, vector<128x4xf32> -> vector<128x4xf32>
    %53 = vector.shape_cast %52 : vector<128x4xf32> to vector<8x16x4xf32>
    %54 = tpu.iota {dimensions = array<i32: 1>} : vector<8x16x4xi32>
    %c9_i32 = arith.constant 9 : i32
    %55 = vector.broadcast %c9_i32 : i32 to vector<8x16x4xi32>
    %56 = arith.cmpi slt, %54, %55 : vector<8x16x4xi32>
    %cst_30 = arith.constant 0xFF800000 : f32
    %57 = vector.broadcast %cst_30 : f32 to vector<8x16x4xf32>
    %58 = arith.select %56, %53, %57 : vector<8x16x4xi1>, vector<8x16x4xf32>
    %cst_31 = arith.constant dense<0xFF800000> : vector<8x4xf32>
    %59 = vector.multi_reduction <maximumf>, %58, %cst_31 [1] : vector<8x16x4xf32> to vector<8x4xf32>
    %60 = arith.maximumf %47, %59 : vector<8x4xf32>
    %61 = arith.subf %47, %60 : vector<8x4xf32>
    %62 = math.exp %61 : vector<8x4xf32>
    %63 = vector.shape_cast %60 : vector<8x4xf32> to vector<8x1x4xf32>
    %64 = vector.broadcast %63 : vector<8x1x4xf32> to vector<8x16x4xf32>
    %65 = arith.subf %58, %64 : vector<8x16x4xf32>
    %66 = math.exp %65 : vector<8x16x4xf32>
    %cst_32 = arith.constant dense<0.000000e+00> : vector<8x4xf32>
    %67 = vector.multi_reduction <add>, %66, %cst_32 [1] : vector<8x16x4xf32> to vector<8x4xf32>
    %68 = arith.addf %62, %67 : vector<8x4xf32>
    %69 = tpu.reciprocal %68 {approx = true} : vector<8x4xf32> -> vector<8x4xf32>
    %70 = arith.mulf %68, %69 : vector<8x4xf32>
    %cst_33 = arith.constant 2.000000e+00 : f32
    %71 = vector.broadcast %cst_33 : f32 to vector<8x4xf32>
    %72 = arith.subf %71, %70 : vector<8x4xf32>
    %73 = arith.mulf %69, %72 : vector<8x4xf32>
    %74 = arith.mulf %62, %73 : vector<8x4xf32>
    %75 = vector.shape_cast %73 : vector<8x4xf32> to vector<8x1x4xf32>
    %76 = vector.broadcast %75 : vector<8x1x4xf32> to vector<8x16x4xf32>
    %77 = arith.mulf %66, %76 : vector<8x16x4xf32>
    %cst_34 = arith.constant dense<0.000000e+00> : vector<8x64xf32>
    %78 = tpu.matmul %74, %45, %cst_34 {dimension_numbers = #tpu.dot_dimension_numbers<[1], [1], [0], [0], [0, 0, 1, 0], [], []>} : vector<8x4xf32>, vector<64x4xf32>, vector<8x64xf32> -> vector<8x64xf32>
    %79 = arith.mulf %78, %19 : vector<8x64xf32>
    %80 = vector.shape_cast %77 : vector<8x16x4xf32> to vector<128x4xf32>
    %cst_35 = arith.constant dense<0.000000e+00> : vector<128x64xf32>
    %81 = tpu.matmul %80, %45, %cst_35 {dimension_numbers = #tpu.dot_dimension_numbers<[1], [1], [0], [0], [0, 0, 1, 0], [], []>} : vector<128x4xf32>, vector<64x4xf32>, vector<128x64xf32> -> vector<128x64xf32>
    %82 = vector.shape_cast %81 : vector<128x64xf32> to vector<8x16x64xf32>
    %83 = arith.mulf %82, %34 : vector<8x16x64xf32>
    %cst_36 = arith.constant dense<0.000000e+00> : vector<8x64xf32>
    %84 = vector.multi_reduction <add>, %83, %cst_36 [1] : vector<8x16x64xf32> to vector<8x64xf32>
    %85 = arith.addf %79, %84 : vector<8x64xf32>
    %c0_37 = arith.constant 0 : index
    %c0_38 = arith.constant 0 : index
    %86 = vector.load %arg5[%c0_37, %c0_38] : memref<64x96xf32, #tpu.memory_space<vmem>>, vector<64x96xf32>
    %cst_39 = arith.constant dense<0.000000e+00> : vector<8x96xf32>
    %87 = tpu.matmul %85, %86, %cst_39 {dimension_numbers = #tpu.dot_dimension_numbers<[1], [0], [0], [1], [0, 0, 1, 1], [], []>} : vector<8x64xf32>, vector<64x96xf32>, vector<8x96xf32> -> vector<8x96xf32>
    %88 = vector.broadcast %7 : vector<1x96xf32> to vector<8x96xf32>
    %89 = arith.addf %87, %88 : vector<8x96xf32>
    %c0_40 = arith.constant 0 : index
    %c0_41 = arith.constant 0 : index
    %90 = vector.load %arg9[%c0_40, %c0_41] : memref<8x96xf32, #tpu.memory_space<vmem>>, vector<8x96xf32>
    tpu.vector_store %arg9[%c0_40, %c0_41], %89 {strides = array<i32>} : memref<8x96xf32, #tpu.memory_space<vmem>>, vector<8x96xf32>,
    return
  }
  func.func @transform_0(%arg0: i32) -> (i32, i32, i32) {
    %c0_i32 = arith.constant 0 : i32
    %c0_i32_0 = arith.constant 0 : i32
    %c0_i32_1 = arith.constant 0 : i32
    return %arg0, %c0_i32, %c0_i32_0 : i32, i32, i32
  }
  func.func @transform_1(%arg0: i32) -> (i32, i32) {
    %c0_i32 = arith.constant 0 : i32
    %c0_i32_0 = arith.constant 0 : i32
    %c0_i32_1 = arith.constant 0 : i32
    return %c0_i32, %c0_i32_0 : i32, i32
  }
  func.func @transform_2(%arg0: i32) -> (i32, i32) {
    %c0_i32 = arith.constant 0 : i32
    %c0_i32_0 = arith.constant 0 : i32
    %c0_i32_1 = arith.constant 0 : i32
    return %c0_i32, %c0_i32_0 : i32, i32
  }
  func.func @transform_3(%arg0: i32) -> (i32, i32) {
    %c0_i32 = arith.constant 0 : i32
    %c0_i32_0 = arith.constant 0 : i32
    %c0_i32_1 = arith.constant 0 : i32
    return %c0_i32, %c0_i32_0 : i32, i32
  }
  func.func @transform_4(%arg0: i32) -> (i32, i32) {
    %c0_i32 = arith.constant 0 : i32
    %c0_i32_0 = arith.constant 0 : i32
    %c0_i32_1 = arith.constant 0 : i32
    return %c0_i32, %c0_i32_0 : i32, i32
  }
  func.func @transform_5(%arg0: i32) -> (i32, i32) {
    %c0_i32 = arith.constant 0 : i32
    %c0_i32_0 = arith.constant 0 : i32
    %c0_i32_1 = arith.constant 0 : i32
    return %c0_i32, %c0_i32_0 : i32, i32
  }
  func.func @transform_6(%arg0: i32) -> (i32, i32) {
    %c0_i32 = arith.constant 0 : i32
    %c0_i32_0 = arith.constant 0 : i32
    %c0_i32_1 = arith.constant 0 : i32
    return %c0_i32, %c0_i32_0 : i32, i32
  }
  func.func @transform_7(%arg0: i32) -> (i32, i32) {
    %c0_i32 = arith.constant 0 : i32
    %c0_i32_0 = arith.constant 0 : i32
    %c0_i32_1 = arith.constant 0 : i32
    return %c0_i32, %c0_i32_0 : i32, i32
  }
  func.func @transform_8(%arg0: i32) -> (i32, i32) {
    %c0_i32 = arith.constant 0 : i32
    %c0_i32_0 = arith.constant 0 : i32
    return %arg0, %c0_i32 : i32, i32
  }
}

</mosaic_0001>

<bundles_post_ra>
// kernel: tpu_custom_call.1
= control target key start
LH: loop header
LB: loop body
LE: loop exit
PB: predicated region body
PF: predicated region fallthrough
CT: control target
= control target key end

     0   :  { %s4809_s0 = inlined_call_operand.hbm [shape: f32[16,16,64], index: 0, kind: input, shape index: {}]   ;;  %s4810_s1 = inlined_call_operand.hbm [shape: f32[64,64], index: 1, kind: input, shape index: {}]   ;;  %s4811_s2 = inlined_call_operand.hbm [shape: f32[64,64], index: 2, kind: input, shape index: {}]   ;;  %s4812_s3 = inlined_call_operand.hbm [shape: f32[64,64], index: 3, kind: input, shape index: {}]   ;;  %s4813_s4 = inlined_call_operand.hbm [shape: f32[64,96], index: 4, kind: input, shape index: {}]   ;;  %s4814_s5 = inlined_call_operand.vmem [shape: f32[16,64], index: 5, kind: input, shape index: {}]   ;;  %s4815_s6 = inlined_call_operand.hbm [shape: f32[16,64], index: 6, kind: input, shape index: {}]   ;;  %s4816_s7 = inlined_call_operand.vmem [shape: f32[8,96], index: 7, kind: input, shape index: {}]   ;;  %s4817_s8 = inlined_call_operand.hbm [shape: f32[16,96], index: 8, kind: output, shape index: {}]  }
   0x1   :  { %4831 = sst [smem:[#allocation22_spill]] %s4810_s1 }
   0x2   :  { %13 = vsyncpa [#allocation3], 0 }
   0x3   :  { %15 = vsyncpa [#allocation3 + $0x1], 0 }
   0x4   :  { %16 = vsyncpa [#allocation6], 0 }
   0x5   :  { %17 = vsyncpa [#allocation9], 0 }
   0x6   :  { %18 = vsyncpa [#allocation12], 0 }
   0x7   :  { %19 = vsyncpa [#allocation4], 0 }
   0x8   :  { %21 = vsyncpa [#allocation4 + $0x1], 0  ;;  %s3795_s27 = smov 0   ;;  %s3797_s28 = smov 0  }
   0x9   :  { %s3799_s29 = smov 0   ;;  %s3801_s30 = smov 0  }
   0xa LB: > { %s3736_s9 = smov [#allocation5]   ;;  %s3816_s11 = sadd.s32 4294967295, %s3734_s30   ;;  %s3734_s30 = sphi %s3801_s30, %s4883_s30   ;;  %s3730_s29 = sphi %s3799_s29, %s4882_s29   ;;  %s3726_s28 = sphi %s3797_s28, %s4881_s28   ;;  %s3722_s27 = sphi %s3795_s27, %s4880_s27  }
   0xb   : > { %s243_s10 = sshll.u32 %s3736_s9, 4  ;;  %p2635_p0 = scmp.ge.s32.totalorder %s3734_s30, 1  ;;  %s3821_s10 = int_to_ptr.vmem [resolvable:$true] %s243_s10 }
   0xc   : > { %p4818_p1 = scmp.eq.s32.totalorder %s3816_s11, 0  ;;  %p231_p2 = scmp.lt.s32.totalorder %s3734_s30, 3 }
   0xd   : > { %s3737_s13 = smov [#allocation8]   ;;  %s3738_s16 = smov [#allocation7]  }
   0xe   : > { %p3823_p3 = pnand %p2635_p0, %p231_p2  ;;  %s269_s14 = sshll.u32 %s3737_s13, 4  ;;  %s3836_s14 = int_to_ptr.vmem [resolvable:$true] %s269_s14 }
   0xf   : > { %s256_s17 = sshll.u32 %s3738_s16, 4  ;;  %s4834_s1 = sld [smem:[#allocation22_spill]]  ;;  %s3838_s17 = int_to_ptr.vmem [resolvable:$true] %s256_s17 }
  0x10   : > { %s4832_s12 = scalar_select %p3823_p3, 1, 0 }
  0x11   : > { %p3370_p5 = pneg %p3823_p3 }
  0x13   : > { %p3832_p6 = pnand %p3370_p5, %p4818_p1 }
  0x15   : > { %s3486_s20 = scalar_lea.hbm %s4834_s1, 1024  ;;  %p3848_p8 = pneg %p3832_p6 }
  0x16   : > { %p3487_p7 = scmp.ne.s32.totalorder %s4834_s1, %s3486_s20  ;;  %p3493_p11 = scmp.lt.u32.totalorder %s3486_s20, %s4834_s1 }
  0x18   : > { %p3489_p9 = pnand %p3848_p8, %p3487_p7 }
  0x1a   : > { %p3490_p10 = pneg %p3489_p9 }
  0x1c   : > { %p3495_p12 = pnand %p3493_p11, %p3490_p10 }
  0x1e   : > { %3498 = shalt.err (!%p3495_p12)
}
  0x1f   : > { %s3499_s26 = scalar_lea.vmem %s3821_s10, 1024  ;;  %p3507_p5 = scmp.lt.s32.totalorder %s3821_s10, %s3821_s10 }
  0x20   : > { %p3500_p13 = scmp.ne.s32.totalorder %s3821_s10, %s3499_s26  ;;  %p3508_p4 = scmp.lt.s32.totalorder %s3499_s26, %s3499_s26 }
  0x22   : > { %p3502_p0 = pnand %p3500_p13, %p3848_p8  ;;  %p3509_p7 = por %p3508_p4, %p3507_p5 }
  0x24   : > { %p3503_p2 = pneg %p3502_p0 }
  0x26   : > { %p3510_p9 = pnand %p3509_p7, %p3503_p2 }
  0x28   : > { %3513 = shalt.err (!%p3510_p9)
}
  0x29   : > { %s4820_s9 = smov 128   ;;  %s3740_s13 = smov 8  }
  0x2a   : > { %3373 = dma.hbm_to_vmem [thread:$0]  (!%p3832_p6), %s4834_s1, 1024, %s3821_s10, [#allocation6], %s4820_s9, %s4820_s9, %s3740_s13  }
  0x2b   : > { %s3514_s21 = scalar_lea.hbm %s4812_s3, 1024 }
  0x2c   : > { %p3515_p4 = scmp.ne.s32.totalorder %s4812_s3, %s3514_s21  ;;  %p3521_p12 = scmp.lt.u32.totalorder %s3514_s21, %s4812_s3 }
  0x2e   : > { %p3517_p10 = pnand %p3515_p4, %p3848_p8 }
  0x30   : > { %p3518_p11 = pneg %p3517_p10 }
  0x32   : > { %p3523_p13 = pnand %p3521_p12, %p3518_p11 }
  0x34   : > { %3526 = shalt.err (!%p3523_p13)
}
  0x35   : > { %s3527_s10 = scalar_lea.vmem %s3836_s14, 1024  ;;  %p3535_p7 = scmp.lt.s32.totalorder %s3836_s14, %s3836_s14 }
  0x36   : > { %p3528_p0 = scmp.ne.s32.totalorder %s3836_s14, %s3527_s10  ;;  %p3536_p9 = scmp.lt.s32.totalorder %s3527_s10, %s3527_s10 }
  0x38   : > { %p3530_p2 = pnand %p3528_p0, %p3848_p8  ;;  %p3537_p4 = por %p3536_p9, %p3535_p7 }
  0x3a   : > { %p3531_p5 = pneg %p3530_p2 }
  0x3c   : > { %p3538_p10 = pnand %p3537_p4, %p3531_p5 }
  0x3e   : > { %3541 = shalt.err (!%p3538_p10)
}
  0x3f   : > { %3379 = dma.hbm_to_vmem [thread:$0]  (!%p3832_p6), %s4812_s3, 1024, %s3836_s14, [#allocation9], %s4820_s9, %s4820_s9, %s3740_s13  }
  0x40   : > { %s3542_s21 = scalar_lea.hbm %s4811_s2, 1024 }
  0x41   : > { %p3543_p11 = scmp.ne.s32.totalorder %s4811_s2, %s3542_s21  ;;  %p3549_p0 = scmp.lt.u32.totalorder %s3542_s21, %s4811_s2 }
  0x43   : > { %p3545_p12 = pnand %p3543_p11, %p3848_p8 }
  0x45   : > { %p3546_p13 = pneg %p3545_p12 }
  0x47   : > { %p3551_p2 = pnand %p3549_p0, %p3546_p13 }
  0x49   : > { %3554 = shalt.err (!%p3551_p2)
}
  0x4a   : > { %s3555_s14 = scalar_lea.vmem %s3838_s17, 1024  ;;  %p3563_p4 = scmp.lt.s32.totalorder %s3838_s17, %s3838_s17 }
  0x4b   : > { %p3556_p5 = scmp.ne.s32.totalorder %s3838_s17, %s3555_s14  ;;  %p3564_p10 = scmp.lt.s32.totalorder %s3555_s14, %s3555_s14 }
  0x4d   : > { %p3558_p7 = pnand %p3556_p5, %p3848_p8  ;;  %p3565_p11 = por %p3564_p10, %p3563_p4 }
  0x4f   : > { %p3559_p9 = pneg %p3558_p7 }
  0x51   : > { %p3566_p12 = pnand %p3565_p11, %p3559_p9 }
  0x53   : > { %3569 = shalt.err (!%p3566_p12)
}
  0x54   : > { %3376 = dma.hbm_to_vmem [thread:$0]  (!%p3832_p6), %s4811_s2, 1024, %s3838_s17, [#allocation6], %s4820_s9, %s4820_s9, %s3740_s13  }
  0x55   : > { %s3741_s18 = smov [#allocation10]   ;;  %s3742_s20 = smov [#allocation11]  }
  0x56   : > { %s282_s19 = sshll.u32 %s3741_s18, 4  ;;  %s298_s21 = sshll.u32 %s3742_s20, 4  ;;  %s283_s19 = int_to_ptr.vmem [resolvable:$true] %s282_s19  ;;  %s299_s21 = int_to_ptr.vmem [resolvable:$true] %s298_s21 }
  0x57   : > { %s3570_s25 = scalar_lea.hbm %s4813_s4, 1024 }
  0x58   : > { %p3571_p13 = scmp.ne.s32.totalorder %s4813_s4, %s3570_s25  ;;  %p3577_p5 = scmp.lt.u32.totalorder %s3570_s25, %s4813_s4 }
  0x5a   : > { %p3573_p0 = pnand %p3571_p13, %p3848_p8 }
  0x5c   : > { %p3574_p2 = pneg %p3573_p0 }
  0x5e   : > { %p3579_p7 = pnand %p3577_p5, %p3574_p2 }
  0x60   : > { %3582 = shalt.err (!%p3579_p7)
}
  0x61   : > { %s3583_s17 = scalar_lea.vmem %s283_s19, 1024  ;;  %p3591_p11 = scmp.lt.s32.totalorder %s283_s19, %s283_s19 }
  0x62   : > { %p3584_p9 = scmp.ne.s32.totalorder %s283_s19, %s3583_s17  ;;  %p3592_p12 = scmp.lt.s32.totalorder %s3583_s17, %s3583_s17 }
  0x64   : > { %p3586_p4 = pnand %p3584_p9, %p3848_p8  ;;  %p3593_p1 = por %p3592_p12, %p3591_p11 }
  0x66   : > { %p3587_p10 = pneg %p3586_p4 }
  0x68   : > { %p3594_p3 = pnand %p3593_p1, %p3587_p10 }
  0x6a   : > { %3597 = shalt.err (!%p3594_p3)
}
  0x6b   : > { %3382 = dma.hbm_to_vmem [thread:$0]  (!%p3832_p6), %s4813_s4, 1024, %s283_s19, [#allocation9], %s4820_s9, %s4820_s9, %s3740_s13  }
  0x6c   : > { %s3598_s22 = scalar_lea.hbm %s4815_s6, 256 }
  0x6d   : > { %p3599_p1 = scmp.ne.s32.totalorder %s4815_s6, %s3598_s22  ;;  %p3605_p0 = scmp.lt.u32.totalorder %s3598_s22, %s4815_s6 }
  0x6f   : > { %p3601_p3 = pnand %p3599_p1, %p3848_p8 }
  0x71   : > { %p3602_p13 = pneg %p3601_p3 }
  0x73   : > { %p3607_p2 = pnand %p3605_p0, %p3602_p13 }
  0x75   : > { %3610 = shalt.err (!%p3607_p2)
}
  0x76   : > { %s3611_s10 = scalar_lea.vmem %s299_s21, 256  ;;  %p3619_p4 = scmp.lt.s32.totalorder %s299_s21, %s299_s21 }
  0x77   : > { %p3612_p5 = scmp.ne.s32.totalorder %s299_s21, %s3611_s10  ;;  %p3620_p10 = scmp.lt.s32.totalorder %s3611_s10, %s3611_s10 }
  0x79   : > { %p3614_p7 = pnand %p3612_p5, %p3848_p8  ;;  %p3621_p11 = por %p3620_p10, %p3619_p4 }
  0x7b   : > { %p3615_p9 = pneg %p3614_p7 }
  0x7d   : > { %p3622_p12 = pnand %p3621_p11, %p3615_p9 }
  0x7f   : > { %3625 = shalt.err (!%p3622_p12)
}
  0x80   : > { %3385 = dma.hbm_to_vmem [thread:$0]  (!%p3832_p6), %s4815_s6, 256, %s299_s21, [#allocation12], %s4820_s9, %s4820_s9, %s3740_s13  }
  0x81   : > { %s2634_s15 = sadd.s32 4294967294, %s3734_s30   ;;  %s3968_s23 = sadd.s32 1, %s3734_s30  }
  0x82   : > { %s34_s1 = sadd.s32 1, %s3730_s29  ;;  %s31_s16 = ssub.s32 %s3734_s30, %s3968_s23 }
  0x83   : > { %p41_p8 = scmp.ne.s32.totalorder %s3730_s29, %s3726_s28  ;;  %p32_p1 = scmp.eq.s32.totalorder %s31_s16, 0 }
  0x84   : > { %p42_p3 = scmp.eq.s32.totalorder %s3734_s30, 0  ;;  %p47_p13 = scmp.ne.s32.totalorder %s3726_s28, %s3722_s27 }
  0x85   : > { %p218_p0 = scmp.eq.s32.totalorder %s3816_s11, 1  ;;  %p4836_p5 = scmp.eq.s32.totalorder %s3816_s11, 0 }
  0x86   : > { %s3980_s18 = scalar_select %p32_p1, %s3730_s29, %s34_s1  }
  0x87   : > { %p43_p2 = por %p42_p3, %p41_p8  ;;  %p3984_p7 = por %p4836_p5, %p47_p13 }
  0x88   : > { %p3988_p6 = por %p218_p0, %p41_p8  ;;  %p224_p9 = scmp.eq.s32.totalorder %s2634_s15, 1 }
  0x89   : > { %p3399_p4 = scmp.lt.s32.totalorder %s3734_s30, 2  ;;  %s315_s22 = sand.u32 1, %s3730_s29  }
  0x8a   : > { %s4838_s21 = scalar_select %p3988_p6, 1, 0 }
  0x8b   : > { %p3994_p10 = por %p224_p9, %p47_p13  ;;  %s2642_s25 = sshll.u32 %s315_s22, 7 }
  0x8c   : > { %s2773_s26 = sshll.u32 %s3734_s30, 11  ;;  %s319_s17 = scalar_lea.vmem [#allocation2], %s2642_s25 }
  0x8d   : > { %s4839_s24 = scalar_select %p3994_p10, 1, 0 }
  0x8e   : > { %s4002_s19 = scalar_lea.hbm %s4809_s0, %s2773_s26  ;;  %s327_s1 = sshll.u32 %s319_s17, 4  ;;  %s4008_s1 = int_to_ptr.vmem [resolvable:$true] %s327_s1 }
  0x8f   : > { %p4004_p11 = pnand %p3399_p4, %p43_p2  ;;  %s4010_s16 = scalar_lea.sflag [#allocation3], %s315_s22 }
  0x90   : > { %s3626_s9 = scalar_lea.hbm %s4002_s19, 2048  ;;  %s3631_s14 = scalar_lea.hbm %s4809_s0, 4096 }
  0x91   : > { %p3627_p12 = scmp.ne.s32.totalorder %s4002_s19, %s3626_s9  ;;  %p3628_p8 = pneg %p4004_p11 }
  0x92   : > { %p3632_p13 = scmp.lt.u32.totalorder %s4002_s19, %s4809_s0  ;;  %p3633_p0 = scmp.lt.u32.totalorder %s3631_s14, %s3626_s9 }
  0x93   : > { %p3629_p1 = pnand %p3628_p8, %p3627_p12  ;;  %p3635_p5 = scmp.lt.u32.totalorder %s3626_s9, %s4002_s19 }
  0x94   : > { %p3634_p2 = por %p3633_p0, %p3632_p13 }
  0x95   : > { %p3630_p3 = pneg %p3629_p1 }
  0x96   : > { %p3636_p9 = por %p3635_p5, %p3634_p2 }
  0x98   : > { %p3637_p4 = pnand %p3636_p9, %p3630_p3 }
  0x9a   : > { %3640 = shalt.err (!%p3637_p4)
}
  0x9b   : > { %s3641_s22 = scalar_lea.vmem %s4008_s1, 2048  ;;  %s3743_s25 = smov [#allocation2]  }
  0x9c   : > { %p3642_p12 = scmp.ne.s32.totalorder %s4008_s1, %s3641_s22  ;;  %s3646_s26 = sshll.u32 %s3743_s25, 4  ;;  %s3647_s26 = int_to_ptr.vmem [resolvable:$false] %s3646_s26 }
  0x9d   : > { %s3648_s10 = scalar_lea.vmem %s3647_s26, 4096  ;;  %p3649_p6 = scmp.lt.s32.totalorder %s4008_s1, %s3647_s26 }
  0x9e   : > { %p3644_p1 = pnand %p3642_p12, %p3628_p8  ;;  %p3650_p13 = scmp.lt.s32.totalorder %s3648_s10, %s3641_s22 }
  0xa0   : > { %p3645_p10 = pneg %p3644_p1  ;;  %p3651_p0 = por %p3650_p13, %p3649_p6 }
  0xa2   : > { %p3652_p2 = pnand %p3651_p0, %p3645_p10 }
  0xa4   : > { %3655 = shalt.err (!%p3652_p2)
}
  0xa5   : > { %s4841_s9 = smov 128   ;;  %p4842_p8 = scmp.ne.s32.totalorder %s4832_s12, 0 }
  0xa6   : > { %3389 = dma.hbm_to_vmem [thread:$0]  (!%p4004_p11), %s4002_s19, 2048, %s4008_s1, %s4010_s16, %s4841_s9, %s4841_s9, %s3740_s13  }
  0xa7   : > { %339 = sbr.rel (%p4842_p8) target bundleno = 1303 (0x517), region = 52 }
  0xae   : > { %s4044_s14 = sand.u32 1, %s3726_s28  }
  0xaf   : > { %s2647_s17 = sshll.u32 %s4044_s14, 7  ;;  %s342_s22 = scalar_lea.sflag [#allocation3], %s4044_s14 }
  0xb0   : > { %s4048_s25 = scalar_lea.vmem [#allocation2], %s2647_s17 }
  0xb1   : > { %3701 = dma.done.wait (%p3984_p7), %s342_s22, 2048  }
  0xb2   : > { %3703 = vsyncadd (%p3984_p7), %s342_s22, 4294965248  ;;  %p4843_p6 = scmp.eq.s32.totalorder %s3816_s11, 0 }
  0xb4   : > { %3705 = dma.done.wait (%p4843_p6), [#allocation6], 2048   ;;  %p4844_p10 = pmov %p4843_p6 }
  0xb5   : > { %p4845_p11 = pmov %p4843_p6 }
  0xb6   : > { %3707 = vsyncadd (%p4844_p10), [#allocation6], 4294965248 }
  0xb7   : > { %3709 = dma.done.wait (%p4845_p11), [#allocation9], 2048   ;;  %p4846_p3 = pmov %p4843_p6 }
  0xb9   : > { %3711 = vsyncadd (%p4846_p3), [#allocation9], 4294965248  ;;  %p4847_p5 = pmov %p4846_p3 }
  0xba   : > { %p4848_p9 = pmov %p4846_p3 }
  0xbb   : > { %3713 = dma.done.wait (%p4847_p5), [#allocation12], 256  }
  0xbc   : > { %3715 = vsyncadd (%p4848_p9), [#allocation12], 4294967040  ;;  %v4828_v0 = vmov 0.0|0.0   ;;  %vm3745_vm0 = vmmov 0   ;;  %v4830_v1 = vmov 0.0   ;;  %v500_v2 = vld [vmem:[#allocation5] sm:$0xff] }
  0xbd   : > { %3198 = vmatprep.subr.bf16.mxu1 %v4828_v0  ;;  %2940 = vmatprep.mubr.msk.f32.mxu1 %vm3745_vm0, %v4830_v1  ;;  %v501_v3 = vld [vmem:[#allocation5 + $0x8] sm:$0xff]  ;;  %v502_v4 = vld [vmem:[#allocation5 + $0x10] sm:$0xff]  ;;  %vm415_vm1 = vcmask 523264   ;;  %v503_v6 = vld [vmem:[#allocation5 + $0x18] sm:$0xff]  ;;  %vm520_vm2 = vcmask 1041409   ;;  %vm4827_vm3 = vcmask 1042434  }
  0xbe   : > { %3222 = vmatprep.subr.bf16.mxu0 %v4828_v0  ;;  %2978 = vmatprep.mubr.msk.f32.mxu0 %vm3745_vm0, %v4830_v1  ;;  %v3199_v5 = vpack.c.bf16 %v501_v3, %v500_v2  ;;  %v504_v7 = vld [vmem:[#allocation5 + $0x20] sm:$0xff]  ;;  %v505_v8 = vld [vmem:[#allocation5 + $0x28] sm:$0xff]  ;;  %v4072_v9 = vld [vmem:[#allocation5 + $0x30] sm:$0xff]  ;;  %v3202_v12 = vpack.c.bf16 %v503_v6, %v502_v4  ;;  %vm4826_vm4 = vcmask 1043459   ;;  %vm4825_vm5 = vcmask 1044484   ;;  %s2653_s17 = sshll.u32 %s4044_s14, 3 }
  0xbf   : > { %v4074_v10 = vld [vmem:[#allocation5 + $0x38] sm:$0xff]  ;;  %v4077_v11 = vld [vmem:[%s4048_s25] sm:$0xff]  ;;  %v3205_v13 = vpack.c.bf16 %v505_v8, %v504_v7  ;;  %v4080_v14 = vld [vmem:[%s4048_s25 + $0x8] sm:$0xff]  ;;  %vm4824_vm6 = vcmask 1045509   ;;  %vm4823_vm7 = vcmask 1046534   ;;  %vm4822_vm8 = vcmask 1047559  }
  0xc0   : > { %3200 = vmatpush3.bf16.msra.mxu1 %v3199_v5  ;;  %v4083_v15 = vld [vmem:[%s4048_s25 + $0x10] sm:$0xff]  ;;  %v4086_v16 = vld [vmem:[%s4048_s25 + $0x18] sm:$0xff]  ;;  %v416_v17 = vsel %vm415_vm1, %v4077_v11, 0.0  ;;  %v3208_v18 = vpack.c.bf16 %v4074_v10, %v4072_v9  ;;  %v4094_v19 = vld [vmem:[%s4048_s25 + $0x20] sm:$0xff]  ;;  %v417_v22 = vsel %vm415_vm1, %v4080_v14, 0.0  ;;  %s2769_s12 = sshll.u32 %s3816_s11, 7 }
  0xc1   : > { %3201 = vmatprep.subr.bf16.mxu1 %v4828_v0  ;;  %v4097_v20 = vld [vmem:[%s4048_s25 + $0x28] sm:$0xff]  ;;  %v4100_v21 = vld [vmem:[%s4048_s25 + $0x30] sm:$0xff]  ;;  %v425_v23 = vsel %vm415_vm1, %v4083_v15, 0.0  ;;  %v426_v24 = vsel %vm415_vm1, %v4086_v16, 0.0  ;;  %v4109_v25 = vld [vmem:[%s4048_s25 + $0x38] sm:$0xff]  ;;  %v418_v28 = vadd.f32 %v417_v22, %v416_v17  ;;  %v434_v30 = vsel %vm415_vm1, %v4094_v19, 0.0  ;;  %s4765_s15 = scalar_lea.hbm %s4817_s8, %s2769_s12 }
  0xc2   : > { %v4112_v26 = vld [vmem:[%s4048_s25 + $0x40] sm:$0xff]  ;;  %v4115_v27 = vld [vmem:[%s4048_s25 + $0x48] sm:$0xff]  ;;  %v427_v29 = vadd.f32 %v426_v24, %v425_v23  ;;  %v435_v31 = vsel %vm415_vm1, %v4097_v20, 0.0  ;;  %v4122_v32 = vld [vmem:[%s4048_s25 + $0x50] sm:$0xff]  ;;  %v443_v35 = vsel %vm415_vm1, %v4100_v21, 0.0  ;;  %v444_v36 = vsel %vm415_vm1, %v4109_v25, 0.0 }
  0xc3   : > { %v4125_v33 = vld [vmem:[%s4048_s25 + $0x58] sm:$0xff]  ;;  %v436_v34 = vadd.f32 %v435_v31, %v434_v30  ;;  %v452_v37 = vsel %vm415_vm1, %v4112_v26, 0.0  ;;  %v4134_v38 = vld [vmem:[%s4048_s25 + $0x60] sm:$0xff]  ;;  %v4137_v39 = vld [vmem:[%s4048_s25 + $0x68] sm:$0xff]  ;;  %v419_v40 = vrot.slane %v418_v28, 4  ;;  %v445_v42 = vadd.f32 %v444_v36, %v443_v35  ;;  %s397_s13 = scalar_lea.vmem [#allocation13], %s2653_s17 }
  0xc4   : > { %3203 = vmatpush3.bf16.msra.mxu1 %v3202_v12  ;;  %v428_v41 = vrot.slane %v427_v29, 4  ;;  %v453_v43 = vsel %vm415_vm1, %v4115_v27, 0.0  ;;  %v461_v46 = vsel %vm415_vm1, %v4122_v32, 0.0  ;;  %v462_v47 = vsel %vm415_vm1, %v4125_v33, 0.0  ;;  %v4147_v48 = vld [vmem:[%s4048_s25 + $0x70] sm:$0xff]  ;;  %v4154_v57 = vld [vmem:[%s4048_s25 + $0x78] sm:$0xff] }
  0xc5   : > { %3204 = vmatprep.subr.bf16.mxu1 %v4828_v0  ;;  %v437_v44 = vrot.slane %v436_v34, 4  ;;  %v454_v45 = vadd.f32 %v453_v43, %v452_v37  ;;  %v420_v49 = vadd.f32 %v419_v40, %v418_v28  ;;  %v446_v51 = vrot.slane %v445_v42, 4  ;;  %s2516_s20 = sshll.u32 %s397_s13, 4  ;;  %s2503_s16 = scalar_lea.sflag [#allocation4], %s4044_s14  ;;  %s4767_s20 = int_to_ptr.vmem [resolvable:$true] %s2516_s20 }
  0xc6   : > { %v429_v50 = vadd.f32 %v428_v41, %v427_v29  ;;  %v463_v52 = vadd.f32 %v462_v47, %v461_v46  ;;  %v470_v55 = vsel %vm415_vm1, %v4134_v38, 0.0  ;;  %v471_v56 = vsel %vm415_vm1, %v4137_v39, 0.0  ;;  %s3656_s26 = scalar_lea.vmem %s4767_s20, 128  ;;  %p4877_p4 = scmp.ne.s32.totalorder %s4838_s21, 0 }
  0xc7   : > { %v438_v53 = vadd.f32 %v437_v44, %v436_v34  ;;  %v455_v54 = vrot.slane %v454_v45, 4  ;;  %v421_v58 = vrot.slane %v420_v49, 2  ;;  %v447_v60 = vadd.f32 %v446_v51, %v445_v42  ;;  %p3657_p7 = scmp.ne.s32.totalorder %s4767_s20, %s3656_s26  ;;  %s3749_s11 = smov [#allocation13]  }
  0xc8   : > { %3206 = vmatpush3.bf16.msra.mxu1 %v3205_v13  ;;  %v430_v59 = vrot.slane %v429_v50, 2  ;;  %v464_v61 = vrot.slane %v463_v52, 4  ;;  %v472_v2 = vadd.f32 %v471_v56, %v470_v55  ;;  %v479_v3 = vsel %vm415_vm1, %v4147_v48, 0.0  ;;  %s3660_s10 = sshll.u32 %s3749_s11, 4  ;;  %s3661_s10 = int_to_ptr.vmem [resolvable:$false] %s3660_s10 }
  0xc9   : > { %3207 = vmatprep.subr.bf16.mxu1 %v4828_v0  ;;  %v439_v62 = vrot.slane %v438_v53, 2  ;;  %v456_v63 = vadd.f32 %v455_v54, %v454_v45  ;;  %v422_v4 = vadd.f32 %v421_v58, %v420_v49  ;;  %v448_v6 = vrot.slane %v447_v60, 2  ;;  %p3658_p12 = pnand %p3657_p7, %p4877_p4  ;;  %s3662_s9 = scalar_lea.vmem %s3661_s10, 256 }
  0xca   : > { %v431_v5 = vadd.f32 %v430_v59, %v429_v50  ;;  %v465_v7 = vadd.f32 %v464_v61, %v463_v52  ;;  %v473_v13 = vrot.slane %v472_v2, 4  ;;  %v480_v17 = vsel %vm415_vm1, %v4154_v57, 0.0  ;;  %v688_v59 = vld [vmem:[#allocation8] sm:$0xff]  ;;  %p3663_p13 = scmp.lt.s32.totalorder %s4767_s20, %s3661_s10  ;;  %p3664_p0 = scmp.lt.s32.totalorder %s3662_s9, %s3656_s26 }
  0xcb   : > { %v440_v8 = vadd.f32 %v439_v62, %v438_v53  ;;  %v457_v12 = vrot.slane %v456_v63, 2  ;;  %v423_v22 = vrot.slane %v422_v4, 1  ;;  %v449_v24 = vadd.f32 %v448_v6, %v447_v60  ;;  %v689_v60 = vld [vmem:[#allocation8 + $0x8] sm:$0xff]  ;;  %p3659_p1 = pneg %p3658_p12 }
  0xcc   : > { %3209 = vmatpush3.bf16.msra.mxu1 %v3208_v18  ;;  %v432_v23 = vrot.slane %v431_v5, 1  ;;  %v466_v28 = vrot.slane %v465_v7, 2  ;;  %v474_v31 = vadd.f32 %v473_v13, %v472_v2  ;;  %v481_v34 = vadd.f32 %v480_v17, %v479_v3  ;;  %v606_v13 = vld [vmem:[#allocation7] sm:$0xff]  ;;  %v607_v17 = vld [vmem:[#allocation7 + $0x8] sm:$0xff]  ;;  %p3665_p2 = por %p3664_p0, %p3663_p13 }
  0xcd   : > { %3210 = vmatprep.subr.bf16.mxu1 %v4828_v0  ;;  %v441_v29 = vrot.slane %v440_v8, 1  ;;  %v458_v30 = vadd.f32 %v457_v12, %v456_v63  ;;  %v424_v35 = vadd.f32 %v423_v22, %v422_v4  ;;  %v450_v37 = vrot.slane %v449_v24, 1  ;;  %v690_v4 = vld [vmem:[#allocation8 + $0x10] sm:$0xff] }
  0xce   : > { %v433_v36 = vadd.f32 %v432_v23, %v431_v5  ;;  %v467_v40 = vadd.f32 %v466_v28, %v465_v7  ;;  %v475_v43 = vrot.slane %v474_v31, 2  ;;  %v482_v44 = vrot.slane %v481_v34, 4  ;;  %v691_v5 = vld [vmem:[#allocation8 + $0x18] sm:$0xff]  ;;  %v693_v28 = vld [vmem:[#allocation8 + $0x28] sm:$0xff]  ;;  %p3666_p8 = pnand %p3665_p2, %p3659_p1 }
  0xcf   : > { %v442_v41 = vadd.f32 %v441_v29, %v440_v8  ;;  %v459_v42 = vrot.slane %v458_v30, 1  ;;  %v451_v9 = vadd.f32 %v450_v37, %v449_v24  ;;  %v488_v18 = vmul.f32 0.11111111, %v424_v35  ;;  %v692_v24 = vld [vmem:[#allocation8 + $0x20] sm:$0xff]  ;;  %v609_v35 = vld [vmem:[#allocation7 + $0x18] sm:$0xff] }
  0xd0   : > { %v468_v10 = vrot.slane %v467_v40, 1  ;;  %v489_v45 = vmul.f32 0.11111111, %v433_v36  ;;  %v476_v47 = vadd.f32 %v475_v43, %v474_v31  ;;  %v483_v49 = vadd.f32 %v482_v44, %v481_v34  ;;  %v608_v34 = vld [vmem:[#allocation7 + $0x10] sm:$0xff]  ;;  %v610_v43 = vld [vmem:[#allocation7 + $0x20] sm:$0xff]  ;;  %v611_v44 = vld [vmem:[#allocation7 + $0x28] sm:$0xff] }
  0xd1   : > { %v460_v46 = vadd.f32 %v459_v42, %v458_v30  ;;  %v490_v50 = vmul.f32 0.11111111, %v442_v41  ;;  %v491_v52 = vmul.f32 0.11111111, %v451_v9  ;;  %v3223_v6 = vpack.c.bf16 %v689_v60, %v688_v59  ;;  %v695_v41 = vld [vmem:[#allocation8 + $0x38] sm:$0xff] }
  0xd2   : > { %v469_v51 = vadd.f32 %v468_v10, %v467_v40  ;;  %v521_v53 = vsel %vm520_vm2, %v489_v45, %v488_v18  ;;  %v477_v54 = vrot.slane %v476_v47, 1  ;;  %v484_v55 = vrot.slane %v483_v49, 2  ;;  %v694_v40 = vld [vmem:[#allocation8 + $0x30] sm:$0xff]  ;;  %v613_v45 = vld [vmem:[#allocation7 + $0x38] sm:$0xff] }
  0xd3   : > { %v492_v56 = vmul.f32 0.11111111, %v460_v46  ;;  %v523_v58 = vsel %vm4827_vm3, %v490_v50, %v521_v53  ;;  %3224 = vmatpush3.bf16.msra.mxu0 %v3223_v6  ;;  %v3226_v22 = vpack.c.bf16 %v691_v5, %v690_v4  ;;  %v3211_v31 = vpack.c.bf16 %v607_v17, %v606_v13  ;;  %v612_v18 = vld [vmem:[#allocation7 + $0x30] sm:$0xff] }
  0xd4   : > { %v493_v61 = vmul.f32 0.11111111, %v469_v51  ;;  %v525_v62 = vsel %vm4826_vm4, %v491_v52, %v523_v58  ;;  %v478_v63 = vadd.f32 %v477_v54, %v476_v47  ;;  %v485_v2 = vadd.f32 %v484_v55, %v483_v49  ;;  %3225 = vmatprep.subr.bf16.mxu0 %v4828_v0 }
  0xd5   : > { %v527_v3 = vsel %vm4825_vm5, %v492_v56, %v525_v62  ;;  %v3229_v36 = vpack.c.bf16 %v693_v28, %v692_v24  ;;  %v3214_v42 = vpack.c.bf16 %v609_v35, %v608_v34  ;;  %v3232_v9 = vpack.c.bf16 %v695_v41, %v694_v40  ;;  %v4320_v35 = vld [vmem:[%s4814_s5] sm:$0xff] }
  0xd6   : > { %v486_v7 = vrot.slane %v485_v2, 1  ;;  %v494_v8 = vmul.f32 0.11111111, %v478_v63  ;;  %v529_v12 = vsel %vm4824_vm6, %v493_v61, %v527_v3  ;;  %v3217_v10 = vpack.c.bf16 %v611_v44, %v610_v43  ;;  %v2656_v3 = vld [vmem:[%s4816_s7 + $0x1] ss:$0 sm:$0xff] }
  0xd7   : > { %3227 = vmatpush3.bf16.msra.mxu0 %v3226_v22  ;;  %v3220_v46 = vpack.c.bf16 %v613_v45, %v612_v18  ;;  %v3748_v62 = vmov 1966171168  }
  0xd8   : > { %v487_v23 = vadd.f32 %v486_v7, %v485_v2  ;;  %v531_v29 = vsel %vm4823_vm7, %v494_v8, %v529_v12  ;;  %3228 = vmatprep.subr.bf16.mxu0 %v4828_v0  ;;  %v1274_v63 = vunpack.c.l.s4 %v3748_v62  ;;  %v2654_v2 = vld [vmem:[%s4816_s7] ss:$0 sm:$0xff] }
  0xda   : > { %v495_v30 = vmul.f32 0.11111111, %v487_v23 }
  0xdb   : > { %3230 = vmatpush3.bf16.msra.mxu0 %v3229_v36 }
  0xdc   : > { %v533_v37 = vsel %vm4822_vm8, %v495_v30, %v531_v29  ;;  %3231 = vmatprep.subr.bf16.mxu0 %v4828_v0 }
  0xdd   : > { %2941 = vmatmul.mubr.msk.f32.vlgmr.msra.gmra.mrb[0].mxu1 %vm415_vm1, %v533_v37 }
  0xde   : > { %3212 = vmatpush3.bf16.msra.mxu1 %v3211_v31  ;;  %2959 = vmatprep.mubr.msk.f32.mxu1 %vm3745_vm0, %v4830_v1 }
  0xdf   : > { %3213 = vmatprep.subr.bf16.mxu1 %v4828_v0  ;;  %3233 = vmatpush3.bf16.msra.mxu0 %v3232_v9 }
  0xe0   : > { %3251 = vmatprep.subr.bf16.mxu0 %v3223_v6 }
  0xe2   : > { %3215 = vmatpush3.bf16.msra.mxu1 %v3214_v42  ;;  %2979 = vmatmul.mubr.msk.f32.vlgmr.msra.gmra.mrb[0].mxu0 %vm415_vm1, %v533_v37 }
  0xe3   : > { %3216 = vmatprep.subr.bf16.mxu1 %v4828_v0  ;;  %3253 = vmatpush3.bf16.msra.mxu0 %v3223_v6  ;;  %v1275_v6 = vunpack.c.0.s8 %v1274_v63 }
  0xe4   : > { %3255 = vmatprep.subr.bf16.mxu0 %v3226_v22  ;;  %3037 = vmatprep.mubr.msk.f32.mxu0 %vm415_vm1, %v4077_v11 }
  0xe6   : > { %3218 = vmatpush3.bf16.msra.mxu1 %v3217_v10 }
  0xe7   : > { %3219 = vmatprep.subr.bf16.mxu1 %v4828_v0  ;;  %3257 = vmatpush3.bf16.msra.mxu0 %v3226_v22 }
  0xe8   : > { %3259 = vmatprep.subr.bf16.mxu0 %v3229_v36 }
  0xea   : > { %3221 = vmatpush3.bf16.msra.mxu1 %v3220_v46 }
  0xeb   : > { %3235 = vmatprep.subr.bf16.mxu1 %v3211_v31  ;;  %3261 = vmatpush3.bf16.msra.mxu0 %v3229_v36 }
  0xec   : > { %3263 = vmatprep.subr.bf16.mxu0 %v3232_v9 }
  0xed   : > { %2960 = vmatmul.mubr.msk.f32.vlgmr.msra.gmra.mrb[2].mxu1 %vm415_vm1, %v533_v37 }
  0xee   : > { %3237 = vmatpush3.bf16.msra.mxu1 %v3211_v31  ;;  %2997 = vmatprep.mubr.msk.f32.mxu1 %vm415_vm1, %v4077_v11  ;;  %v1144_v11 = vlaneseq  ;;  %v4313_v31 = vld [vmem:[%s4814_s5 + $0x8] sm:$0xff] }
  0xef   : > { %3239 = vmatprep.subr.bf16.mxu1 %v3214_v42  ;;  %3265 = vmatpush3.bf16.msra.mxu0 %v3232_v9 }
  0xf2   : > { %3241 = vmatpush3.bf16.msra.mxu1 %v3214_v42  ;;  %3038 = vmatmul.mubr.msk.f32.vlgmr.msra.gmra.mrb[2].mxu0 %vm415_vm1, %v4080_v14 }
  0xf3   : > { %3243 = vmatprep.subr.bf16.mxu1 %v3217_v10  ;;  %3040 = vmatprep.mubr.msk.f32.mxu0 %vm415_vm1, %v4083_v15 }
  0xf6   : > { %3245 = vmatpush3.bf16.msra.mxu1 %v3217_v10  ;;  %3041 = vmatmul.mubr.msk.f32.gmra.mrb[4].mxu0 %vm415_vm1, %v4086_v16 }
  0xf7   : > { %3247 = vmatprep.subr.bf16.mxu1 %v3220_v46  ;;  %3043 = vmatprep.mubr.msk.f32.mxu0 %vm415_vm1, %v4094_v19 }
  0xfa   : > { %3249 = vmatpush3.bf16.msra.mxu1 %v3220_v46  ;;  %3044 = vmatmul.mubr.msk.f32.gmra.mrb[6].mxu0 %vm415_vm1, %v4097_v20 }
  0xfb   : > { %3266 = vmatprep.subr.bf16.mxu1 %v4828_v0  ;;  %3046 = vmatprep.mubr.msk.f32.mxu0 %vm415_vm1, %v4100_v21 }
  0xfd   : > { %2998 = vmatmul.mubr.msk.f32.vlgmr.msra.gmra.mrb[4].mxu1 %vm415_vm1, %v4080_v14  ;;  %v1154_v14 = vand.u32 127, %v1144_v11 }
  0xfe   : > { %3000 = vmatprep.mubr.msk.f32.mxu1 %vm415_vm1, %v4083_v15  ;;  %3047 = vmatmul.mubr.msk.f32.gmra.mrb[8].mxu0 %vm415_vm1, %v4109_v25  ;;  %v4250_v15 = vshrl.u32 %v1144_v11, 7 }
  0xff   : > { %3049 = vmatprep.mubr.msk.f32.mxu0 %vm415_vm1, %v4112_v26 }
 0x100   : > { %v1151_v51 = vadd.s32 48, %v4250_v15  ;;  %v1152_v52 = vadd.s32 56, %v4250_v15  ;;  %v4294_v13 = vsub.s32 %v1275_v6, %v4250_v15  ;;  %v4305_v28 = vsub.s32 0, %v4250_v15 }
 0x101   : > { %3001 = vmatmul.mubr.msk.f32.gmra.mrb[6].mxu1 %vm415_vm1, %v4086_v16  ;;  %v1155_v16 = vmul.u32 16, %v1154_v14 }
 0x102   : > { %3003 = vmatprep.mubr.msk.f32.mxu1 %vm415_vm1, %v4094_v19  ;;  %3050 = vmatmul.mubr.msk.f32.gmra.mrb[10].mxu0 %vm415_vm1, %v4115_v27  ;;  %v4253_v19 = vadd.s32 8, %v4250_v15 }
 0x103   : > { %3052 = vmatprep.mubr.msk.f32.mxu0 %vm415_vm1, %v4122_v32  ;;  %vm1156_vm9 = vcmp.ge.s32.totalorder %v4250_v15, %v1155_v16 }
 0x104   : > { %vm1157_vm10 = vcmp.ge.s32.totalorder %v4253_v19, %v1155_v16 }
 0x105   : > { %3004 = vmatmul.mubr.msk.f32.gmra.mrb[8].mxu1 %vm415_vm1, %v4097_v20  ;;  %v1164_v20 = vadd.s32 16, %v1155_v16 }
 0x106   : > { %3006 = vmatprep.mubr.msk.f32.mxu1 %vm415_vm1, %v4100_v21  ;;  %3053 = vmatmul.mubr.msk.f32.gmra.mrb[12].mxu0 %vm415_vm1, %v4125_v33 }
 0x107   : > { %3055 = vmatprep.mubr.msk.f32.mxu0 %vm415_vm1, %v4134_v38  ;;  %vm1165_vm11 = vcmp.lt.s32.totalorder %v4250_v15, %v1164_v20  ;;  %vm1166_vm12 = vcmp.lt.s32.totalorder %v4253_v19, %v1164_v20 }
 0x108   : > { %vm1173_vm13 = vmand %vm1156_vm9, %vm1165_vm11 }
 0x109   : > { %3007 = vmatmul.mubr.msk.f32.gmra.mrb[10].mxu1 %vm415_vm1, %v4109_v25  ;;  %vm1174_vm14 = vmand %vm1157_vm10, %vm1166_vm12  ;;  %v2692_v21 = vsel %vm1173_vm13, 1.0, %v4830_v1  ;;  %v1147_v25 = vadd.s32 16, %v4250_v15 }
 0x10a   : > { %3009 = vmatprep.mubr.msk.f32.mxu1 %vm415_vm1, %v4112_v26  ;;  %3056 = vmatmul.mubr.msk.f32.gmra.mrb[14].mxu0 %vm415_vm1, %v4137_v39  ;;  %v2693_v26 = vsel %vm1174_vm14, 1.0, %v4830_v1  ;;  %vm3267_vm15 = vmpackc.low %vm1174_vm14, %vm1173_vm13 }
 0x10b   : > { %3058 = vmatprep.mubr.msk.f32.mxu0 %vm415_vm1, %v4147_v48  ;;  %vm1158_vm9 = vcmp.ge.s32.totalorder %v1147_v25, %v1155_v16  ;;  %vm1167_vm10 = vcmp.lt.s32.totalorder %v1147_v25, %v1164_v20 }
 0x10c   : > { %vm1175_vm8 = vmand %vm1158_vm9, %vm1167_vm10  ;;  %vm1171_vm10 = vcmp.lt.s32.totalorder %v1151_v51, %v1164_v20 }
 0x10d   : > { %3010 = vmatmul.mubr.msk.f32.gmra.mrb[12].mxu1 %vm415_vm1, %v4115_v27  ;;  %v1148_v27 = vadd.s32 24, %v4250_v15 }
 0x10e   : > { %3012 = vmatprep.mubr.msk.f32.mxu1 %vm415_vm1, %v4122_v32  ;;  %3059 = vmatmul.mubr.msk.f32.gmra.mrb[16].mxu0 %vm415_vm1, %v4154_v57  ;;  %v1149_v32 = vadd.s32 32, %v4250_v15 }
 0x10f   : > { %vm1159_vm11 = vcmp.ge.s32.totalorder %v1148_v27, %v1155_v16  ;;  %vm1168_vm12 = vcmp.lt.s32.totalorder %v1148_v27, %v1164_v20 }
 0x110   : > { %vm1160_vm13 = vcmp.ge.s32.totalorder %v1149_v32, %v1155_v16  ;;  %vm1176_vm14 = vmand %vm1159_vm11, %vm1168_vm12  ;;  %vm1169_vm6 = vcmp.lt.s32.totalorder %v1149_v32, %v1164_v20  ;;  %vm1172_vm11 = vcmp.lt.s32.totalorder %v1152_v52, %v1164_v20 }
 0x111   : > { %3013 = vmatmul.mubr.msk.f32.gmra.mrb[14].mxu1 %vm415_vm1, %v4125_v33  ;;  %v1150_v33 = vadd.s32 40, %v4250_v15  ;;  %vm3270_vm4 = vmpackc.low %vm1176_vm14, %vm1175_vm8 }
 0x112   : > { %3015 = vmatprep.mubr.msk.f32.mxu1 %vm415_vm1, %v4134_v38  ;;  %v3747_v38 = vmov 1.0|1.0   ;;  %vm1177_vm3 = vmand %vm1160_vm13, %vm1169_vm6  ;;  %vm1163_vm6 = vcmp.ge.s32.totalorder %v1152_v52, %v1155_v16  ;;  %vm1571_vm13 = vcmp.lt.s32.totalorder %v4253_v19, 9 }
 0x113   : > { %3268 = vmatpush3.bf16.msk.msra.mxu1 %vm3267_vm15, %v3747_v38  ;;  %3279 = vmatprep.subr.msk.bf16.mxu0 %vm3267_vm15, %v3747_v38  ;;  %vm1161_vm7 = vcmp.ge.s32.totalorder %v1150_v33, %v1155_v16  ;;  %vm1170_vm5 = vcmp.lt.s32.totalorder %v1150_v33, %v1164_v20  ;;  %v2696_v49 = vsel %vm1177_vm3, 1.0, %v4830_v1 }
 0x114   : > { %3281 = vmatpush3.bf16.msk.msra.mxu0 %vm3267_vm15, %v3747_v38  ;;  %3269 = vmatprep.subr.bf16.mxu1 %v4828_v0  ;;  %vm1178_vm15 = vmand %vm1161_vm7, %vm1170_vm5 }
 0x115   : > { %3016 = vmatmul.mubr.msk.f32.gmra.mrb[16].mxu1 %vm415_vm1, %v4137_v39  ;;  %v4265_v39 = vpack.c.bf16 %v2693_v26, %v2692_v21  ;;  %3283 = vmatprep.subr.msk.bf16.mxu0 %vm3270_vm4, %v3747_v38  ;;  %v2697_v50 = vsel %vm1178_vm15, 1.0, %v4830_v1  ;;  %vm3273_vm9 = vmpackc.low %vm1178_vm15, %vm1177_vm3  ;;  %vm1588_vm3 = vcmask 31744   ;;  %vm4855_vm15 = vcmask 1043459  }
 0x116   : > { %3018 = vmatprep.mubr.msk.f32.mxu1 %vm415_vm1, %v4147_v48  ;;  %v2694_v48 = vsel %vm1175_vm8, 1.0, %v4830_v1  ;;  %v4277_v53 = vpack.c.bf16 %v2697_v50, %v2696_v49  ;;  %vm1162_vm8 = vcmp.ge.s32.totalorder %v1151_v51, %v1155_v16  ;;  %vm4392_vm12 = vmpackc.low %vm1588_vm3, %vm1588_vm3 }
 0x117   : > { %3271 = vmatpush3.bf16.msk.msra.mxu1 %vm3270_vm4, %v3747_v38  ;;  %vm1179_vm5 = vmand %vm1162_vm8, %vm1171_vm10  ;;  %vm4857_vm8 = vcmask 1045509   ;;  %vm4859_vm10 = vcmask 1047559  }
 0x118   : > { %3272 = vmatprep.subr.bf16.mxu1 %v4828_v0  ;;  %3285 = vmatpush3.bf16.msk.msra.mxu0 %vm3270_vm4, %v3747_v38  ;;  %vm1180_vm4 = vmand %vm1163_vm6, %vm1172_vm11  ;;  %v2698_v54 = vsel %vm1179_vm5, 1.0, %v4830_v1  ;;  %vm4858_vm6 = vcmask 1046534  }
 0x119   : > { %3019 = vmatmul.mubr.msk.f32.gmra.mrb[18].mxu1 %vm415_vm1, %v4154_v57  ;;  %v2695_v57 = vsel %vm1176_vm14, 1.0, %v4830_v1  ;;  %3287 = vmatprep.subr.msk.bf16.mxu0 %vm3273_vm9, %v3747_v38  ;;  %vm3276_vm7 = vmpackc.low %vm1180_vm4, %vm1179_vm5  ;;  %v2699_v55 = vsel %vm1180_vm4, 1.0, %v4830_v1  ;;  %vm4854_vm14 = vcmask 1042434  }
 0x11a   : > { %3077 = vmatprep.mubr.msk.f32.mxu1 %vm3745_vm0, %v4830_v1  ;;  %v4270_v47 = vpack.c.bf16 %v2695_v57, %v2694_v48  ;;  %v4282_v56 = vpack.c.bf16 %v2699_v55, %v2698_v54  ;;  %vm4860_vm11 = vmmov %vm4854_vm14 }
 0x11b   : > { %3274 = vmatpush3.bf16.msk.msra.mxu1 %vm3273_vm9, %v3747_v38  ;;  %vm4861_vm5 = vmmov %vm4855_vm15 }
 0x11c   : > { %3275 = vmatprep.subr.bf16.mxu1 %v4828_v0  ;;  %3289 = vmatpush3.bf16.msk.msra.mxu0 %vm3273_vm9, %v3747_v38  ;;  %vm4856_vm9 = vcmask 1044484  }
 0x11d   : > { %3291 = vmatprep.subr.msk.bf16.mxu0 %vm3276_vm7, %v3747_v38  ;;  %vm4862_vm4 = vmmov %vm4856_vm9 }
 0x11f   : > { %3277 = vmatpush3.bf16.msk.msra.mxu1 %vm3276_vm7, %v3747_v38 }
 0x120   : > { %3293 = vmatpush3.bf16.msk.msra.mxu0 %vm3276_vm7, %v3747_v38  ;;  %3294 = vmatprep.subr.bf16.mxu1 %v4828_v0  ;;  %vm4863_vm7 = vmmov %vm4857_vm8 }
 0x121   : > { %3312 = vmatprep.subr.msk.bf16.mxu0 %vm4392_vm12, %v4265_v39 }
 0x1b0   : > { %v602_v58 = vpop.f32.mrb[0].mxu1 }
 0x1b1   : > { %v2942_v59 = vpop.f32.mrb[1].mxu1  ;;  %v603_v5 = vadd.f32 %v2654_v2, %v602_v58 }
 0x1b3   : > { %v1279_v17 = vrot.slane %v603_v5, %v4294_v13  ;;  %v1272_v46 = vcombine.high %v603_v5, %v603_v5 }
 0x1b5   : > { %v4285_v60 = vpop.f32.mrb[0].mxu0  ;;  %v1287_v24 = vcombine.high %v1279_v17, %v1279_v17  ;;  %v1295_v29 = vrot.slane %v1279_v17, %v4294_v13  ;;  %v1286_v33 = vrot.slane %v1272_v46, %v4294_v13 }
 0x1b6   : > { %v2980_v61 = vpop.f32.mrb[1].mxu0 }
 0x1b7   : > { %v1324_v40 = vrot.slane %v1295_v29, %v4305_v28  ;;  %v1309_v42 = vrot.slane %v1287_v24, %v4294_v13  ;;  %v1317_v16 = vcombine.high %v1295_v29, %v1295_v29  ;;  %v1302_v61 = vrot.slane %v1286_v33, %v4294_v13 }
 0x1b8   : > { %v1288_v62 = vcombine.high %v1286_v33, %v1286_v33 }
 0x1b9   : > { %v1328_v14 = vrot.slane %v1309_v42, %v4305_v28  ;;  %v1332_v48 = vrot.slane %v1317_v16, %v4305_v28  ;;  %v1319_v49 = vcombine.high %v1309_v42, %v1309_v42  ;;  %v1340_v6 = vrot.slane %v1302_v61, %v4305_v28 }
 0x1bb   : > { %v1336_v58 = vrot.slane %v1319_v49, %v4305_v28 }
 0x1c0   : > { %v684_v4 = vpop.f32.mrb[2].mxu1 }
 0x1c1   : > { %v685_v7 = vadd.f32 %v2656_v3, %v684_v4  ;;  %v2961_v8 = vpop.f32.mrb[3].mxu1 }
 0x1c2   : > { %v1316_v8 = vrot.slane %v1288_v62, %v4294_v13 }
 0x1c3   : > { %v1197_v12 = vmul.f32 %v685_v7, %v603_v5 }
 0x1c5   : > { %3078 = vmatmul.mubr.msk.f32.vlgmr.msra.gmra.mrb[20].mxu1 %vm415_vm1, %v1197_v12  ;;  %v4300_v22 = vpop.f32.mrb[2].mxu0 }
 0x1c6   : > { %3136 = vmatprep.mubr.msk.f32.mxu1 %vm3745_vm0, %v4830_v1  ;;  %v4302_v23 = vpop.f32.mrb[3].mxu0  ;;  %3297 = vmatpush3.bf16.xpose.msk.msra.mxu1 %vm4392_vm12, %v4265_v39 }
 0x1c7   : > { %3298 = vmatprep.subr.bf16.mxu1 %v4828_v0 }
 0x1c9   : > { %v4308_v30 = vpop.f32.mrb[4].mxu0 }
 0x1ca   : > { %v4315_v34 = vpop.f32.mrb[5].mxu0 }
 0x1cd   : > { %v4325_v43 = vpop.f32.mrb[6].mxu0 }
 0x1ce   : > { %v4328_v9 = vpop.f32.mrb[7].mxu0  ;;  %3301 = vmatpush3.bf16.xpose.msk.msra.mxu1 %vm4392_vm12, %v4270_v47 }
 0x1cf   : > { %3302 = vmatprep.subr.bf16.mxu1 %v4828_v0 }
 0x1d0   : > { %v2999_v36 = vpop.f32.mrb[4].mxu1 }
 0x1d1   : > { %v966_v37 = vadd.f32 %v2999_v36, %v4313_v31  ;;  %v884_v41 = vpop.f32.mrb[5].mxu1  ;;  %v4332_v20 = vpop.f32.mrb[8].mxu0 }
 0x1d2   : > { %v965_v44 = vadd.f32 %v4320_v35, %v884_v41  ;;  %v4336_v25 = vpop.f32.mrb[9].mxu0  ;;  %v1318_v41 = vcombine.high %v1302_v61, %v1302_v61 }
 0x1d3   : > { %v1362_v10 = vmul.f32 %v1324_v40, %v966_v37  ;;  %v1344_v37 = vrot.slane %v1316_v8, %v4305_v28 }
 0x1d4   : > { %v1361_v18 = vmul.f32 %v1324_v40, %v965_v44  ;;  %v3002_v45 = vpop.f32.mrb[6].mxu1  ;;  %v1348_v46 = vrot.slane %v1318_v41, %v4305_v28 }
 0x1d5   : > { %v968_v11 = vadd.f32 %v3002_v45, %v4313_v31  ;;  %v894_v15 = vpop.f32.mrb[7].mxu1  ;;  %v4374_v49 = vpop.f32.mrb[10].mxu0 }
 0x1d6   : > { %v967_v21 = vadd.f32 %v4320_v35, %v894_v15  ;;  %3096 = vmatprep.mubr.msk.f32.mxu0 %vm415_vm1, %v1361_v18  ;;  %3305 = vmatpush3.bf16.xpose.msk.msra.mxu1 %vm4392_vm12, %v4277_v53 }
 0x1d7   : > { %v1364_v26 = vmul.f32 %v1328_v14, %v968_v11  ;;  %3097 = vmatmul.mubr.msk.f32.vlgmr.msra.gmra.mrb[18].mxu0 %vm415_vm1, %v1362_v10  ;;  %3306 = vmatprep.subr.bf16.mxu1 %v4828_v0 }
 0x1d8   : > { %v1363_v27 = vmul.f32 %v1328_v14, %v967_v21  ;;  %v3005_v32 = vpop.f32.mrb[8].mxu1  ;;  %v1320_v14 = vcombine.high %v1316_v8, %v1316_v8  ;;  %3315 = vmatpush3.bf16.xpose.msk.msra.mxu0 %vm4392_vm12, %v4265_v39 }
 0x1d9   : > { %v970_v38 = vadd.f32 %v3005_v32, %v4313_v31  ;;  %v904_v57 = vpop.f32.mrb[9].mxu1  ;;  %3318 = vmatprep.subr.msk.bf16.mxu0 %vm4392_vm12, %v4270_v47 }
 0x1da   : > { %v969_v50 = vadd.f32 %v4320_v35, %v904_v57  ;;  %3099 = vmatprep.mubr.msk.f32.mxu0 %vm415_vm1, %v1363_v27  ;;  %v1352_v32 = vrot.slane %v1320_v14, %v4305_v28 }
 0x1db   : > { %v1366_v51 = vmul.f32 %v1332_v48, %v970_v38  ;;  %3100 = vmatmul.mubr.msk.f32.gmra.mrb[20].mxu0 %vm415_vm1, %v1364_v26 }
 0x1dc   : > { %v1365_v52 = vmul.f32 %v1332_v48, %v969_v50  ;;  %v3008_v54 = vpop.f32.mrb[10].mxu1  ;;  %v4376_v50 = vpop.f32.mrb[11].mxu0 }
 0x1dd   : > { %v972_v55 = vadd.f32 %v3008_v54, %v4313_v31  ;;  %v914_v59 = vpop.f32.mrb[11].mxu1 }
 0x1de   : > { %v971_v63 = vadd.f32 %v4320_v35, %v914_v59  ;;  %3102 = vmatprep.mubr.msk.f32.mxu0 %vm415_vm1, %v1365_v52  ;;  %3309 = vmatpush3.bf16.xpose.msk.msra.mxu1 %vm4392_vm12, %v4282_v56 }
 0x1df   : > { %v1368_v2 = vmul.f32 %v1336_v58, %v972_v55  ;;  %3103 = vmatmul.mubr.msk.f32.gmra.mrb[22].mxu0 %vm415_vm1, %v1366_v51  ;;  %3334 = vmatprep.subr.bf16.mxu1 %v4828_v0 }
 0x1e0   : > { %v1367_v3 = vmul.f32 %v1336_v58, %v971_v63  ;;  %v3011_v4 = vpop.f32.mrb[12].mxu1  ;;  %3321 = vmatpush3.bf16.xpose.msk.msra.mxu0 %vm4392_vm12, %v4270_v47 }
 0x1e1   : > { %v974_v5 = vadd.f32 %v3011_v4, %v4313_v31  ;;  %v924_v7 = vpop.f32.mrb[13].mxu1  ;;  %3324 = vmatprep.subr.msk.bf16.mxu0 %vm4392_vm12, %v4277_v53 }
 0x1e2   : > { %v973_v12 = vadd.f32 %v4320_v35, %v924_v7  ;;  %3105 = vmatprep.mubr.msk.f32.mxu0 %vm415_vm1, %v1367_v3 }
 0x1e3   : > { %v1370_v17 = vmul.f32 %v1340_v6, %v974_v5  ;;  %3106 = vmatmul.mubr.msk.f32.gmra.mrb[24].mxu0 %vm415_vm1, %v1368_v2 }
 0x1e4   : > { %v1369_v24 = vmul.f32 %v1340_v6, %v973_v12  ;;  %v3014_v29 = vpop.f32.mrb[14].mxu1 }
 0x1e5   : > { %v976_v36 = vadd.f32 %v3014_v29, %v4313_v31  ;;  %v934_v40 = vpop.f32.mrb[15].mxu1 }
 0x1e6   : > { %v975_v42 = vadd.f32 %v4320_v35, %v934_v40  ;;  %3108 = vmatprep.mubr.msk.f32.mxu0 %vm415_vm1, %v1369_v24 }
 0x1e7   : > { %v1372_v44 = vmul.f32 %v1344_v37, %v976_v36  ;;  %3109 = vmatmul.mubr.msk.f32.gmra.mrb[26].mxu0 %vm415_vm1, %v1370_v17 }
 0x1e8   : > { %v1371_v10 = vmul.f32 %v1344_v37, %v975_v42  ;;  %v3017_v18 = vpop.f32.mrb[16].mxu1  ;;  %3327 = vmatpush3.bf16.xpose.msk.msra.mxu0 %vm4392_vm12, %v4277_v53 }
 0x1e9   : > { %v978_v45 = vadd.f32 %v3017_v18, %v4313_v31  ;;  %v944_v11 = vpop.f32.mrb[17].mxu1  ;;  %3330 = vmatprep.subr.msk.bf16.mxu0 %vm4392_vm12, %v4282_v56 }
 0x1ea   : > { %v977_v15 = vadd.f32 %v4320_v35, %v944_v11  ;;  %3111 = vmatprep.mubr.msk.f32.mxu0 %vm415_vm1, %v1371_v10 }
 0x1eb   : > { %v1374_v16 = vmul.f32 %v1348_v46, %v978_v45  ;;  %3112 = vmatmul.mubr.msk.f32.gmra.mrb[28].mxu0 %vm415_vm1, %v1372_v44 }
 0x1ec   : > { %v1373_v21 = vmul.f32 %v1348_v46, %v977_v15  ;;  %v3020_v26 = vpop.f32.mrb[18].mxu1 }
 0x1ed   : > { %v980_v27 = vadd.f32 %v3020_v26, %v4313_v31  ;;  %v954_v33 = vpop.f32.mrb[19].mxu1  ;;  %v4378_v31 = vpop.f32.mrb[12].mxu0 }
 0x1ee   : > { %v979_v38 = vadd.f32 %v4320_v35, %v954_v33  ;;  %3114 = vmatprep.mubr.msk.f32.mxu0 %vm415_vm1, %v1373_v21  ;;  %v4380_v51 = vpop.f32.mrb[13].mxu0 }
 0x1ef   : > { %v1376_v48 = vmul.f32 %v1352_v32, %v980_v27  ;;  %3115 = vmatmul.mubr.msk.f32.gmra.mrb[30].mxu0 %vm415_vm1, %v1374_v16  ;;  %v4382_v52 = vpop.f32.mrb[14].mxu0 }
 0x1f0   : > { %v1375_v57 = vmul.f32 %v1352_v32, %v979_v38  ;;  %v4384_v35 = vpop.f32.mrb[15].mxu0  ;;  %3333 = vmatpush3.bf16.xpose.msk.msra.mxu0 %vm4392_vm12, %v4282_v56  ;;  %vm4864_vm12 = vmmov %vm4858_vm6 }
 0x1f1   : > { %4849 = vst [vmem:[#allocation19_spill] sm:$0xff] %v4384_v35  ;;  %v4386_v54 = vpop.f32.mrb[16].mxu0 }
 0x1f2   : > { %3117 = vmatprep.mubr.msk.f32.mxu0 %vm415_vm1, %v1375_v57  ;;  %4850 = vst [vmem:[#allocation20_spill] sm:$0xff] %v4386_v54  ;;  %v4388_v55 = vpop.f32.mrb[17].mxu0 }
 0x1f3   : > { %3118 = vmatmul.mubr.msk.f32.gmra.mrb[32].mxu0 %vm415_vm1, %v1376_v48  ;;  %4851 = vst [vmem:[#allocation21_spill] sm:$0xff] %v4388_v55 }
 0x298   : > { %v4419_v39 = vpop.f32.mrb[20].mxu1 }
 0x299   : > { %v3079_v59 = vpop.f32.mrb[21].mxu1 }
 0x2aa   : > { %v3098_v47 = vpop.f32.mrb[18].mxu0 }
 0x2ab   : > { %v4441_v53 = vsel %vm1571_vm13, %v3098_v47, -inf  ;;  %v4443_v61 = vpop.f32.mrb[19].mxu0 }
 0x2ac   : > { %v1590_v62 = vsel %vm1588_vm3, %v4441_v53, -inf  ;;  %v1589_v63 = vsel %vm1588_vm3, %v4443_v61, -inf }
 0x2ad   : > { %v1591_v2 = vmax.f32 %v1589_v63, %v1590_v62 }
 0x2ae   : > { %v3101_v3 = vpop.f32.mrb[20].mxu0 }
 0x2af   : > { %v1592_v56 = vrot.slane %v1591_v2, 4  ;;  %v4451_v4 = vsel %vm1571_vm13, %v3101_v3, -inf  ;;  %v4453_v5 = vpop.f32.mrb[21].mxu0 }
 0x2b0   : > { %v1599_v6 = vsel %vm1588_vm3, %v4451_v4, -inf  ;;  %v1598_v7 = vsel %vm1588_vm3, %v4453_v5, -inf }
 0x2b1   : > { %v1593_v8 = vmax.f32 %v1591_v2, %v1592_v56  ;;  %v1600_v12 = vmax.f32 %v1598_v7, %v1599_v6 }
 0x2b2   : > { %v3104_v17 = vpop.f32.mrb[22].mxu0 }
 0x2b3   : > { %v1594_v24 = vrot.slane %v1593_v8, 2  ;;  %v1601_v29 = vrot.slane %v1600_v12, 4  ;;  %v4461_v36 = vsel %vm1571_vm13, %v3104_v17, -inf  ;;  %v4463_v37 = vpop.f32.mrb[23].mxu0 }
 0x2b4   : > { %v1608_v40 = vsel %vm1588_vm3, %v4461_v36, -inf  ;;  %v1607_v41 = vsel %vm1588_vm3, %v4463_v37, -inf }
 0x2b5   : > { %v1595_v42 = vmax.f32 %v1593_v8, %v1594_v24  ;;  %v1602_v44 = vmax.f32 %v1600_v12, %v1601_v29  ;;  %v1609_v10 = vmax.f32 %v1607_v41, %v1608_v40 }
 0x2b6   : > { %v3107_v18 = vpop.f32.mrb[24].mxu0 }
 0x2b7   : > { %v1603_v45 = vrot.slane %v1602_v44, 2  ;;  %v1610_v46 = vrot.slane %v1609_v10, 4  ;;  %v4471_v11 = vsel %vm1571_vm13, %v3107_v18, -inf  ;;  %v4473_v14 = vpop.f32.mrb[25].mxu0  ;;  %v1596_v15 = vrot.slane %v1595_v42, 1 }
 0x2b8   : > { %v1617_v16 = vsel %vm1588_vm3, %v4471_v11, -inf  ;;  %v1616_v21 = vsel %vm1588_vm3, %v4473_v14, -inf }
 0x2b9   : > { %v1604_v26 = vmax.f32 %v1602_v44, %v1603_v45  ;;  %v1611_v27 = vmax.f32 %v1609_v10, %v1610_v46  ;;  %v1618_v32 = vmax.f32 %v1616_v21, %v1617_v16  ;;  %v1597_v47 = vmax.f32 %v1595_v42, %v1596_v15 }
 0x2ba   : > { %v3110_v33 = vpop.f32.mrb[26].mxu0 }
 0x2bb   : > { %v1605_v38 = vrot.slane %v1604_v26, 1  ;;  %v1612_v48 = vrot.slane %v1611_v27, 2  ;;  %v1619_v57 = vrot.slane %v1618_v32, 4  ;;  %v4481_v58 = vsel %vm1571_vm13, %v3110_v33, -inf  ;;  %v4483_v59 = vpop.f32.mrb[27].mxu0 }
 0x2bc   : > { %v1626_v62 = vsel %vm1588_vm3, %v4481_v58, -inf  ;;  %v1625_v63 = vsel %vm1588_vm3, %v4483_v59, -inf }
 0x2bd   : > { %v1606_v2 = vmax.f32 %v1604_v26, %v1605_v38  ;;  %v1613_v3 = vmax.f32 %v1611_v27, %v1612_v48  ;;  %v1620_v56 = vmax.f32 %v1618_v32, %v1619_v57  ;;  %v1627_v6 = vmax.f32 %v1625_v63, %v1626_v62 }
 0x2be   : > { %v3113_v7 = vpop.f32.mrb[28].mxu0 }
 0x2bf   : > { %v1669_v8 = vsel %vm520_vm2, %v1606_v2, %v1597_v47  ;;  %v1614_v12 = vrot.slane %v1613_v3, 1  ;;  %v1621_v17 = vrot.slane %v1620_v56, 2  ;;  %v1628_v24 = vrot.slane %v1627_v6, 4  ;;  %v4490_v29 = vpop.f32.mrb[29].mxu0 }
 0x2c0   : > { %v4494_v40 = vsel %vm1571_vm13, %v3113_v7, -inf  ;;  %v1634_v41 = vsel %vm1588_vm3, %v4490_v29, -inf }
 0x2c1   : > { %v1615_v42 = vmax.f32 %v1613_v3, %v1614_v12  ;;  %v1622_v44 = vmax.f32 %v1620_v56, %v1621_v17  ;;  %v1629_v10 = vmax.f32 %v1627_v6, %v1628_v24  ;;  %v1635_v18 = vsel %vm1588_vm3, %v4494_v40, -inf }
 0x2c2   : > { %v1636_v45 = vmax.f32 %v1634_v41, %v1635_v18  ;;  %v3116_v46 = vpop.f32.mrb[30].mxu0 }
 0x2c3   : > { %v1670_v15 = vsel %vm4854_vm14, %v1615_v42, %v1669_v8  ;;  %v1623_v16 = vrot.slane %v1622_v44, 1  ;;  %v1630_v21 = vrot.slane %v1629_v10, 2  ;;  %v4503_v26 = vsel %vm1571_vm13, %v3116_v46, -inf  ;;  %v4505_v27 = vpop.f32.mrb[31].mxu0  ;;  %vm4874_vm14 = vmmov %vm4863_vm7 }
 0x2c4   : > { %v1637_v32 = vrot.slane %v1636_v45, 4  ;;  %v1644_v33 = vsel %vm1588_vm3, %v4503_v26, -inf  ;;  %v1643_v38 = vsel %vm1588_vm3, %v4505_v27, -inf }
 0x2c5   : > { %v1624_v48 = vmax.f32 %v1622_v44, %v1623_v16  ;;  %v1631_v57 = vmax.f32 %v1629_v10, %v1630_v21  ;;  %v1645_v47 = vmax.f32 %v1643_v38, %v1644_v33 }
 0x2c6   : > { %v1638_v62 = vmax.f32 %v1636_v45, %v1637_v32  ;;  %v3119_v63 = vpop.f32.mrb[32].mxu0 }
 0x2c7   : > { %v1671_v2 = vsel %vm4855_vm15, %v1624_v48, %v1670_v15  ;;  %v1632_v3 = vrot.slane %v1631_v57, 1  ;;  %v1646_v56 = vrot.slane %v1645_v47, 4  ;;  %v4514_v6 = vsel %vm1571_vm13, %v3119_v63, -inf  ;;  %v4516_v7 = vpop.f32.mrb[33].mxu0  ;;  %vm4865_vm13 = vmmov %vm4859_vm10 }
 0x2c8   : > { %v1639_v8 = vrot.slane %v1638_v62, 2  ;;  %v1653_v12 = vsel %vm1588_vm3, %v4514_v6, -inf  ;;  %v1652_v17 = vsel %vm1588_vm3, %v4516_v7, -inf  ;;  %vm4875_vm15 = vmmov %vm4858_vm6 }
 0x2c9   : > { %v1633_v24 = vmax.f32 %v1631_v57, %v1632_v3  ;;  %v1647_v41 = vmax.f32 %v1645_v47, %v1646_v56  ;;  %v1654_v42 = vmax.f32 %v1652_v17, %v1653_v12 }
 0x2ca   : > { %v1640_v44 = vmax.f32 %v1638_v62, %v1639_v8 }
 0x2cb   : > { %v1672_v10 = vsel %vm4856_vm9, %v1633_v24, %v1671_v2  ;;  %v1648_v18 = vrot.slane %v1647_v41, 2  ;;  %v1655_v45 = vrot.slane %v1654_v42, 4  ;;  %vm4876_vm9 = vmmov %vm4859_vm10 }
 0x2cc   : > { %v1641_v19 = vrot.slane %v1640_v44, 1 }
 0x2cd   : > { %v1649_v46 = vmax.f32 %v1647_v41, %v1648_v18  ;;  %v1656_v15 = vmax.f32 %v1654_v42, %v1655_v45 }
 0x2ce   : > { %v1642_v16 = vmax.f32 %v1640_v44, %v1641_v19 }
 0x2cf   : > { %v1650_v21 = vrot.slane %v1649_v46, 1  ;;  %v1657_v32 = vrot.slane %v1656_v15, 2 }
 0x2d0   : > { %v1673_v33 = vsel %vm4857_vm8, %v1642_v16, %v1672_v10  ;;  %vm2500_vm8 = vcmask 785408  }
 0x2d1   : > { %v1651_v38 = vmax.f32 %v1649_v46, %v1650_v21  ;;  %v1658_v48 = vmax.f32 %v1656_v15, %v1657_v32 }
 0x2d3   : > { %v1674_v63 = vsel %vm4858_vm6, %v1651_v38, %v1673_v33  ;;  %v1659_v57 = vrot.slane %v1658_v48, 1 }
 0x2d5   : > { %v1660_v47 = vmax.f32 %v1658_v48, %v1659_v57 }
 0x2d7   : > { %v1675_v62 = vsel %vm4859_vm10, %v1660_v47, %v1674_v63 }
 0x2d8   : > { %v4527_v2 = vmax.f32 %v4419_v39, %v1675_v62 }
 0x2da   : > { %v1678_v3 = vsub.f32 %v4419_v39, %v4527_v2  ;;  %v1682_v56 = vcombine.high %v4527_v2, %v4527_v2  ;;  %v1689_v8 = vrot.slane %v4527_v2, %v4294_v13 }
 0x2dc   : > { %v1696_v12 = vrot.slane %v1682_v56, %v4294_v13  ;;  %v1697_v17 = vcombine.high %v1689_v8, %v1689_v8  ;;  %v1705_v24 = vrot.slane %v1689_v8, %v4294_v13 }
 0x2de   : > { %v1698_v41 = vcombine.high %v1696_v12, %v1696_v12  ;;  %v1712_v42 = vrot.slane %v1696_v12, %v4294_v13  ;;  %v1719_v44 = vrot.slane %v1697_v17, %v4294_v13  ;;  %v1727_v10 = vcombine.high %v1705_v24, %v1705_v24 }
 0x2df   : > { %v1734_v18 = vrot.slane %v1705_v24, %v4305_v28 }
 0x2e0   : > { %v1726_v45 = vrot.slane %v1698_v41, %v4294_v13  ;;  %v1728_v19 = vcombine.high %v1712_v42, %v1712_v42  ;;  %v1729_v46 = vcombine.high %v1719_v44, %v1719_v44  ;;  %v1738_v15 = vrot.slane %v1719_v44, %v4305_v28 }
 0x2e1   : > { %v1742_v16 = vrot.slane %v1727_v10, %v4305_v28  ;;  %v1750_v21 = vrot.slane %v1712_v42, %v4305_v28  ;;  %v1771_v32 = vsub.f32 %v4443_v61, %v1734_v18  ;;  %v1772_v33 = vsub.f32 %v4441_v53, %v1734_v18 }
 0x2e2   : > { %v1730_v38 = vcombine.high %v1726_v45, %v1726_v45  ;;  %v1746_v48 = vrot.slane %v1729_v46, %v4305_v28  ;;  %v1754_v63 = vrot.slane %v1726_v45, %v4305_v28  ;;  %v1758_v57 = vrot.slane %v1728_v19, %v4305_v28 }
 0x2e3   : > { %v1773_v47 = vsub.f32 %v4453_v5, %v1738_v15  ;;  %v1774_v62 = vsub.f32 %v4451_v4, %v1738_v15  ;;  %v1775_v56 = vsub.f32 %v4463_v37, %v1742_v16  ;;  %v1776_v8 = vsub.f32 %v4461_v36, %v1742_v16 }
 0x2e4   : > { %v1762_v12 = vrot.slane %v1730_v38, %v4305_v28  ;;  %v1777_v61 = vsub.f32 %v4473_v14, %v1746_v48  ;;  %v1778_v53 = vsub.f32 %v4471_v11, %v1746_v48  ;;  %v1779_v17 = vsub.f32 %v4483_v59, %v1750_v21 }
 0x2e5   : > { %v1780_v24 = vsub.f32 %v4481_v58, %v1750_v21  ;;  %v1781_v41 = vsub.f32 %v4490_v29, %v1754_v63  ;;  %v1782_v5 = vsub.f32 %v4494_v40, %v1754_v63  ;;  %v1783_v4 = vsub.f32 %v4505_v27, %v1758_v57 }
 0x2e6   : > { %v1784_v37 = vsub.f32 %v4503_v26, %v1758_v57  ;;  %v1785_v36 = vsub.f32 %v4516_v7, %v1762_v12  ;;  %v1786_v42 = vsub.f32 %v4514_v6, %v1762_v12  ;;  %v1787_v44 = vmul.f32 1.442695, %v1771_v32 }
 0x2e7   : > { %v1789_v14 = vmul.f32 1.442695, %v1772_v33  ;;  %v1791_v10 = vmul.f32 1.442695, %v1773_v47  ;;  %v1793_v11 = vmul.f32 1.442695, %v1774_v62 }
 0x2e8   : > { %3450 = vpow2.f32 %v1787_v44  ;;  %v1795_v59 = vmul.f32 1.442695, %v1775_v56  ;;  %v1797_v58 = vmul.f32 1.442695, %v1776_v8  ;;  %v1799_v29 = vmul.f32 1.442695, %v1777_v61 }
 0x2e9   : > { %3452 = vpow2.f32 %v1789_v14  ;;  %v1801_v40 = vmul.f32 1.442695, %v1778_v53  ;;  %v1803_v27 = vmul.f32 1.442695, %v1779_v17  ;;  %v1805_v26 = vmul.f32 1.442695, %v1780_v24 }
 0x2ea   : > { %3454 = vpow2.f32 %v1791_v10  ;;  %v1807_v7 = vmul.f32 1.442695, %v1781_v41  ;;  %v1809_v6 = vmul.f32 1.442695, %v1782_v5  ;;  %v1811_v18 = vmul.f32 1.442695, %v1783_v4 }
 0x2eb   : > { %3456 = vpow2.f32 %v1793_v11  ;;  %v1813_v45 = vmul.f32 1.442695, %v1784_v37  ;;  %v1815_v46 = vmul.f32 1.442695, %v1785_v36  ;;  %v1817_v16 = vmul.f32 1.442695, %v1786_v42 }
 0x2ec   : > { %3458 = vpow2.f32 %v1795_v59 }
 0x2ed   : > { %3460 = vpow2.f32 %v1797_v58 }
 0x2ee   : > { %3462 = vpow2.f32 %v1799_v29 }
 0x2ef   : > { %3464 = vpow2.f32 %v1801_v40 }
 0x2f0   : > { %3466 = vpow2.f32 %v1803_v27 }
 0x2f1   : > { %3468 = vpow2.f32 %v1805_v26 }
 0x2f2   : > { %v4564_v19 = vpop.eup %3450  ;;  %3470 = vpow2.f32 %v1807_v7 }
 0x2f3   : > { %v4566_v15 = vpop.eup %3452  ;;  %3472 = vpow2.f32 %v1809_v6  ;;  %v1819_v21 = vsel %vm1588_vm3, %v4564_v19, 0.0 }
 0x2f4   : > { %v4570_v32 = vpop.eup %3454  ;;  %3474 = vpow2.f32 %v1811_v18  ;;  %v1820_v33 = vsel %vm1588_vm3, %v4566_v15, 0.0 }
 0x2f5   : > { %v4574_v38 = vpop.eup %3456  ;;  %3476 = vpow2.f32 %v1813_v45  ;;  %v1821_v48 = vadd.f32 %v1820_v33, %v1819_v21  ;;  %v1828_v63 = vsel %vm1588_vm3, %v4570_v32, 0.0 }
 0x2f6   : > { %v4578_v57 = vpop.eup %3458  ;;  %3478 = vpow2.f32 %v1815_v46  ;;  %v1829_v47 = vsel %vm1588_vm3, %v4574_v38, 0.0 }
 0x2f7   : > { %v4582_v62 = vpop.eup %3460  ;;  %3480 = vpow2.f32 %v1817_v16  ;;  %v1822_v56 = vrot.slane %v1821_v48, 4  ;;  %v1830_v8 = vadd.f32 %v1829_v47, %v1828_v63  ;;  %v1837_v12 = vsel %vm1588_vm3, %v4578_v57, 0.0 }
 0x2f8   : > { %v4586_v61 = vpop.eup %3462  ;;  %v1838_v53 = vsel %vm1588_vm3, %v4582_v62, 0.0 }
 0x2f9   : > { %v4590_v17 = vpop.eup %3464  ;;  %v1823_v24 = vadd.f32 %v1822_v56, %v1821_v48  ;;  %v1831_v41 = vrot.slane %v1830_v8, 4  ;;  %v1839_v5 = vadd.f32 %v1838_v53, %v1837_v12  ;;  %v1846_v4 = vsel %vm1588_vm3, %v4586_v61, 0.0 }
 0x2fa   : > { %v4594_v37 = vpop.eup %3466  ;;  %v1847_v36 = vsel %vm1588_vm3, %v4590_v17, 0.0 }
 0x2fb   : > { %v4598_v42 = vpop.eup %3468  ;;  %v1824_v44 = vrot.slane %v1823_v24, 2  ;;  %v1832_v14 = vadd.f32 %v1831_v41, %v1830_v8  ;;  %v1840_v10 = vrot.slane %v1839_v5, 4  ;;  %v1855_v11 = vsel %vm1588_vm3, %v4594_v37, 0.0 }
 0x2fc   : > { %v4602_v59 = vpop.eup %3470  ;;  %v1856_v58 = vsel %vm1588_vm3, %v4598_v42, 0.0  ;;  %v1848_v29 = vadd.f32 %v1847_v36, %v1846_v4 }
 0x2fd   : > { %v4606_v40 = vpop.eup %3472  ;;  %v1825_v27 = vadd.f32 %v1824_v44, %v1823_v24  ;;  %v1833_v26 = vrot.slane %v1832_v14, 2  ;;  %v1857_v7 = vadd.f32 %v1856_v58, %v1855_v11  ;;  %v1864_v6 = vsel %vm1588_vm3, %v4602_v59, 0.0 }
 0x2fe   : > { %v4610_v18 = vpop.eup %3474  ;;  %v1865_v45 = vsel %vm1588_vm3, %v4606_v40, 0.0  ;;  %v1841_v46 = vadd.f32 %v1840_v10, %v1839_v5  ;;  %v1849_v16 = vrot.slane %v1848_v29, 4  ;;  %v1679_v10 = vmul.f32 1.442695, %v1678_v3 }
 0x2ff   : > { %v4614_v21 = vpop.eup %3476  ;;  %v1858_v33 = vrot.slane %v1857_v7, 4  ;;  %v1866_v48 = vadd.f32 %v1865_v45, %v1864_v6  ;;  %v1873_v63 = vsel %vm1588_vm3, %v4610_v18, 0.0  ;;  %v1826_v47 = vrot.slane %v1825_v27, 1 }
 0x300   : > { %v4618_v56 = vpop.eup %3478  ;;  %v1874_v8 = vsel %vm1588_vm3, %v4614_v21, 0.0  ;;  %v1834_v12 = vadd.f32 %v1833_v26, %v1832_v14  ;;  %v1842_v53 = vrot.slane %v1841_v46, 2  ;;  %v1850_v24 = vadd.f32 %v1849_v16, %v1848_v29 }
 0x301   : > { %v4622_v41 = vpop.eup %3480  ;;  %v1859_v5 = vadd.f32 %v1858_v33, %v1857_v7  ;;  %v1867_v4 = vrot.slane %v1866_v48, 4  ;;  %v1875_v36 = vadd.f32 %v1874_v8, %v1873_v63  ;;  %v1882_v44 = vsel %vm1588_vm3, %v4618_v56, 0.0 }
 0x302   : > { %v1883_v11 = vsel %vm1588_vm3, %v4622_v41, 0.0  ;;  %v1835_v58 = vrot.slane %v1834_v12, 1  ;;  %v1843_v6 = vadd.f32 %v1842_v53, %v1841_v46  ;;  %v1851_v45 = vrot.slane %v1850_v24, 2 }
 0x303   : > { %v1860_v14 = vrot.slane %v1859_v5, 2  ;;  %v1868_v26 = vadd.f32 %v1867_v4, %v1866_v48  ;;  %v1884_v29 = vadd.f32 %v1883_v11, %v1882_v44  ;;  %v1827_v16 = vadd.f32 %v1826_v47, %v1825_v27 }
 0x304   : > { %v1836_v7 = vadd.f32 %v1835_v58, %v1834_v12  ;;  %v1844_v33 = vrot.slane %v1843_v6, 1  ;;  %v1876_v63 = vrot.slane %v1875_v36, 4  ;;  %v1852_v55 = vadd.f32 %v1851_v45, %v1850_v24 }
 0x305   : > { %v1861_v8 = vadd.f32 %v1860_v14, %v1859_v5  ;;  %v1869_v0 = vrot.slane %v1868_v26, 2  ;;  %v1885_v1 = vrot.slane %v1884_v29, 4  ;;  %3482 = vpow2.f32 %v1679_v10 }
 0x306   : > { %v1845_v39 = vadd.f32 %v1844_v33, %v1843_v6  ;;  %v1877_v2 = vadd.f32 %v1876_v63, %v1875_v36  ;;  %v1899_v3 = vsel %vm520_vm2, %v1836_v7, %v1827_v16  ;;  %v1853_v46 = vrot.slane %v1852_v55, 1 }
 0x307   : > { %v1870_v54 = vadd.f32 %v1869_v0, %v1868_v26  ;;  %v1886_v35 = vadd.f32 %v1885_v1, %v1884_v29  ;;  %v1862_v53 = vrot.slane %v1861_v8, 1 }
 0x308   : > { %v1878_v48 = vrot.slane %v1877_v2, 2  ;;  %v1900_v4 = vsel %vm4860_vm11, %v1845_v39, %v1899_v3  ;;  %v1854_v12 = vadd.f32 %v1853_v46, %v1852_v55  ;;  %v4866_v46 = vmov 0.0  }
 0x309   : > { %v1871_v27 = vrot.slane %v1870_v54, 1  ;;  %v1887_v47 = vrot.slane %v1886_v35, 2  ;;  %v1863_v44 = vadd.f32 %v1862_v53, %v1861_v8 }
 0x30a   : > { %v1879_v5 = vadd.f32 %v1878_v48, %v1877_v2  ;;  %v1901_v24 = vsel %vm4861_vm5, %v1854_v12, %v1900_v4 }
 0x30b   : > { %v1872_v11 = vadd.f32 %v1871_v27, %v1870_v54  ;;  %v1888_v58 = vadd.f32 %v1887_v47, %v1886_v35  ;;  %v1902_v36 = vsel %vm4862_vm4, %v1863_v44, %v1901_v24 }
 0x30c   : > { %v1880_v10 = vrot.slane %v1879_v5, 1 }
 0x30d   : > { %v1889_v6 = vrot.slane %v1888_v58, 1  ;;  %v1903_v0 = vsel %vm4863_vm7, %v1872_v11, %v1902_v36 }
 0x30e   : > { %v1881_v1 = vadd.f32 %v1880_v10, %v1879_v5 }
 0x30f   : > { %v1890_v14 = vadd.f32 %v1889_v6, %v1888_v58  ;;  %v3483_v26 = vpop.eup %3482 }
 0x310   : > { %v1904_v29 = vsel %vm4864_vm12, %v1881_v1, %v1903_v0 }
 0x311   : > { %v1905_v45 = vsel %vm4865_vm13, %v1890_v14, %v1904_v29 }
 0x312   : > { %v1907_v55 = vadd.f32 %v3483_v26, %v1905_v45 }
 0x314   : > { %3484 = vrcp.f32 %v1907_v55 }
 0x31e   : > { %v3485_v16 = vpop.eup %3484 }
 0x31f   : > { %v1909_v54 = vmul.f32 %v3485_v16, %v1907_v55 }
 0x321   : > { %v1910_v35 = vsub.f32 2.0, %v1909_v54  ;;  %v2420_v54 = vld [vmem:[#allocation10 + $0x28] sm:$0xff] }
 0x323   : > { %v1911_v7 = vmul.f32 %v3485_v16, %v1910_v35 }
 0x325   : > { %v1912_v33 = vmul.f32 %v3483_v26, %v1911_v7  ;;  %v1921_v63 = vrot.slane %v1911_v7, %v4294_v13  ;;  %v1914_v8 = vcombine.high %v1911_v7, %v1911_v7  ;;  %v2421_v7 = vld [vmem:[#allocation10 + $0x30] sm:$0xff] }
 0x327   : > { %3137 = vmatmul.mubr.msk.f32.vlgmr.msra.gmra.mrb[22].mxu1 %vm1588_vm3, %v1912_v33  ;;  %v1937_v39 = vrot.slane %v1921_v63, %v4294_v13  ;;  %v1929_v2 = vcombine.high %v1921_v63, %v1921_v63  ;;  %v1928_v3 = vrot.slane %v1914_v8, %v4294_v13  ;;  %v2422_v33 = vld [vmem:[#allocation10 + $0x38] sm:$0xff]  ;;  %v2658_v8 = vld [vmem:[%s4816_s7 + $0x2] ss:$0 sm:$0xff] }
 0x328   : > { %3195 = vmatprep.mubr.msk.f32.mxu1 %vm3745_vm0, %v4866_v46  ;;  %v3344_v63 = vpack.c.bf16 %v2422_v33, %v2421_v7  ;;  %vm4869_vm0 = vmmov %vm4860_vm11 }
 0x329   : > { %v1966_v53 = vrot.slane %v1937_v39, %v4305_v28  ;;  %v1951_v48 = vrot.slane %v1929_v2, %v4294_v13  ;;  %v1959_v4 = vcombine.high %v1937_v39, %v1937_v39  ;;  %v1944_v27 = vrot.slane %v1928_v3, %v4294_v13 }
 0x32a   : > { %v1930_v47 = vcombine.high %v1928_v3, %v1928_v3  ;;  %v767_v39 = vadd.f32 %v2658_v8, %v4285_v60 }
 0x32b   : > { %v2003_v12 = vmul.f32 %v4564_v19, %v1966_v53  ;;  %v2004_v44 = vmul.f32 %v4566_v15, %v1966_v53  ;;  %v1970_v5 = vrot.slane %v1951_v48, %v4305_v28  ;;  %v1974_v11 = vrot.slane %v1959_v4, %v4305_v28  ;;  %v4696_v53 = vld [vmem:[#allocation11 + $0x8] sm:$0xff] }
 0x32c   : > { %v1961_v58 = vcombine.high %v1951_v48, %v1951_v48  ;;  %v1982_v24 = vrot.slane %v1944_v27, %v4305_v28  ;;  %v1958_v10 = vrot.slane %v1930_v47, %v4294_v13  ;;  %v1960_v36 = vcombine.high %v1944_v27, %v1944_v27  ;;  %v4698_v48 = vld [vmem:[#allocation11] sm:$0xff] }
 0x32d   : > { %3155 = vmatprep.mubr.msk.f32.mxu0 %vm1588_vm3, %v2003_v12  ;;  %v2005_v6 = vmul.f32 %v4570_v32, %v1970_v5  ;;  %v2006_v0 = vmul.f32 %v4574_v38, %v1970_v5  ;;  %v2007_v19 = vmul.f32 %v4578_v57, %v1974_v11  ;;  %v2008_v15 = vmul.f32 %v4582_v62, %v1974_v11 }
 0x32e   : > { %3156 = vmatmul.mubr.msk.f32.vlgmr.msra.gmra.mrb[34].mxu0 %vm1588_vm3, %v2004_v44  ;;  %v1978_v1 = vrot.slane %v1961_v58, %v4305_v28  ;;  %v2011_v14 = vmul.f32 %v4594_v37, %v1982_v24  ;;  %v2012_v26 = vmul.f32 %v4598_v42, %v1982_v24  ;;  %v1986_v13 = vrot.slane %v1958_v10, %v4305_v28 }
 0x32f   : > { %3158 = vmatprep.mubr.msk.f32.mxu0 %vm1588_vm3, %v2005_v6  ;;  %v1990_v32 = vrot.slane %v1960_v36, %v4305_v28  ;;  %v1962_v29 = vcombine.high %v1958_v10, %v1958_v10  ;;  %v1129_v4 = vadd.f32 %v4300_v22, %v4696_v53  ;;  %v1128_v27 = vadd.f32 %v4698_v48, %v4302_v23 }
 0x330   : > { %v2009_v38 = vmul.f32 %v4586_v61, %v1978_v1  ;;  %v2010_v57 = vmul.f32 %v4590_v17, %v1978_v1  ;;  %v2013_v62 = vmul.f32 %v4602_v59, %v1986_v13  ;;  %v2014_v45 = vmul.f32 %v4606_v40, %v1986_v13  ;;  %v2416_v17 = vld [vmem:[#allocation10 + $0x8] sm:$0xff] }
 0x331   : > { %v2015_v55 = vmul.f32 %v4610_v18, %v1990_v32  ;;  %v2016_v37 = vmul.f32 %v4614_v21, %v1990_v32  ;;  %v1994_v42 = vrot.slane %v1962_v29, %v4305_v28  ;;  %v2415_v28 = vld [vmem:[#allocation10] sm:$0xff]  ;;  %v4867_v40 = vmov 0.0|0.0   ;;  %v2417_v18 = vld [vmem:[#allocation10 + $0x10] sm:$0xff]  ;;  %v2418_v21 = vld [vmem:[#allocation10 + $0x18] sm:$0xff] }
 0x332   : > { %3159 = vmatmul.mubr.msk.f32.gmra.mrb[36].mxu0 %vm1588_vm3, %v2006_v0  ;;  %v3335_v59 = vpack.c.bf16 %v2416_v17, %v2415_v28  ;;  %v1131_v60 = vadd.f32 %v4308_v30, %v4696_v53  ;;  %v1130_v58 = vadd.f32 %v4698_v48, %v4315_v34  ;;  %v1133_v23 = vadd.f32 %v4325_v43, %v4696_v53 }
 0x333   : > { %3161 = vmatprep.mubr.msk.f32.mxu0 %vm1588_vm3, %v2007_v19  ;;  %v2017_v16 = vmul.f32 %v4618_v56, %v1994_v42  ;;  %v2018_v61 = vmul.f32 %v4622_v41, %v1994_v42  ;;  %v3338_v56 = vpack.c.bf16 %v2418_v21, %v2417_v18  ;;  %v2419_v41 = vld [vmem:[#allocation10 + $0x20] sm:$0xff]  ;;  %v1132_v30 = vadd.f32 %v4698_v48, %v4328_v9 }
 0x334   : > { %3336 = vmatpush3.bf16.msra.mxu1 %v3335_v59  ;;  %v3341_v35 = vpack.c.bf16 %v2420_v54, %v2419_v41  ;;  %v1137_v18 = vadd.f32 %v4374_v49, %v4696_v53  ;;  %v1136_v21 = vadd.f32 %v4698_v48, %v4376_v50  ;;  %v1138_v49 = vadd.f32 %v4698_v48, %v4380_v51 }
 0x335   : > { %3337 = vmatprep.subr.bf16.mxu1 %v4867_v40  ;;  %v1141_v51 = vadd.f32 %v4382_v52, %v4696_v53 }
 0x336   : > { %3162 = vmatmul.mubr.msk.f32.gmra.mrb[38].mxu0 %vm1588_vm3, %v2008_v15 }
 0x337   : > { %3164 = vmatprep.mubr.msk.f32.mxu0 %vm1588_vm3, %v2009_v38  ;;  %v1135_v38 = vadd.f32 %v4332_v20, %v4696_v53 }
 0x338   : > { %3339 = vmatpush3.bf16.msra.mxu1 %v3338_v56 }
 0x339   : > { %3340 = vmatprep.subr.bf16.mxu1 %v4867_v40 }
 0x33a   : > { %3165 = vmatmul.mubr.msk.f32.gmra.mrb[40].mxu0 %vm1588_vm3, %v2010_v57 }
 0x33b   : > { %3167 = vmatprep.mubr.msk.f32.mxu0 %vm1588_vm3, %v2011_v14 }
 0x33c   : > { %3342 = vmatpush3.bf16.msra.mxu1 %v3341_v35 }
 0x33d   : > { %3343 = vmatprep.subr.bf16.mxu1 %v4867_v40 }
 0x33e   : > { %3168 = vmatmul.mubr.msk.f32.gmra.mrb[42].mxu0 %vm1588_vm3, %v2012_v26 }
 0x33f   : > { %3170 = vmatprep.mubr.msk.f32.mxu0 %vm1588_vm3, %v2013_v62 }
 0x340   : > { %3345 = vmatpush3.bf16.msra.mxu1 %v3344_v63 }
 0x342   : > { %3171 = vmatmul.mubr.msk.f32.gmra.mrb[44].mxu0 %vm1588_vm3, %v2014_v45  ;;  %v1134_v45 = vadd.f32 %v4698_v48, %v4336_v25 }
 0x343   : > { %3173 = vmatprep.mubr.msk.f32.mxu0 %vm1588_vm3, %v2015_v55 }
 0x346   : > { %3174 = vmatmul.mubr.msk.f32.gmra.mrb[46].mxu0 %vm1588_vm3, %v2016_v37 }
 0x347   : > { %3176 = vmatprep.mubr.msk.f32.mxu0 %vm1588_vm3, %v2017_v16 }
 0x34a   : > { %3177 = vmatmul.mubr.msk.f32.gmra.mrb[48].mxu0 %vm1588_vm3, %v2018_v61  ;;  %vm4873_vm3 = vmmov %vm4862_vm4 }
 0x3fa   : > { %v2112_v2 = vpop.f32.mrb[22].mxu1 }
 0x3fb   : > { %v4694_v3 = vmul.f32 %v2112_v2, %v767_v39  ;;  %v3138_v46 = vpop.f32.mrb[23].mxu1  ;;  %v1139_v39 = vadd.f32 %v4378_v31, %v4696_v53 }
 0x401   : > { %v3157_v47 = vpop.f32.mrb[34].mxu0 }
 0x402   : > { %v2311_v12 = vmul.f32 %v3157_v47, %v1129_v4  ;;  %v2231_v44 = vpop.f32.mrb[35].mxu0 }
 0x403   : > { %v2310_v5 = vmul.f32 %v2231_v44, %v1128_v27 }
 0x404   : > { %v2327_v11 = vsel %vm415_vm1, %v2311_v12, 0.0 }
 0x405   : > { %v2326_v24 = vsel %vm415_vm1, %v2310_v5, 0.0  ;;  %v3160_v10 = vpop.f32.mrb[36].mxu0 }
 0x406   : > { %v2328_v36 = vadd.f32 %v2327_v11, %v2326_v24  ;;  %v2313_v22 = vmul.f32 %v3160_v10, %v1131_v60  ;;  %v2241_v6 = vpop.f32.mrb[37].mxu0 }
 0x407   : > { %v2312_v0 = vmul.f32 %v2241_v6, %v1130_v58 }
 0x408   : > { %v2329_v19 = vrot.slane %v2328_v36, 4  ;;  %v2336_v15 = vsel %vm415_vm1, %v2313_v22, 0.0 }
 0x409   : > { %v2335_v1 = vsel %vm415_vm1, %v2312_v0, 0.0  ;;  %v3163_v14 = vpop.f32.mrb[38].mxu0  ;;  %v4868_v0 = vld [vmem:[#allocation19_spill] sm:$0xff] }
 0x40a   : > { %v2330_v34 = vadd.f32 %v2329_v19, %v2328_v36  ;;  %v2337_v26 = vadd.f32 %v2336_v15, %v2335_v1  ;;  %v2315_v13 = vmul.f32 %v3163_v14, %v1133_v23  ;;  %v2251_v32 = vpop.f32.mrb[39].mxu0  ;;  %v1140_v23 = vadd.f32 %v4698_v48, %v4868_v0 }
 0x40b   : > { %v2314_v29 = vmul.f32 %v2251_v32, %v1132_v30 }
 0x40c   : > { %v2331_v57 = vrot.slane %v2330_v34, 2  ;;  %v2338_v62 = vrot.slane %v2337_v26, 4  ;;  %v2345_v43 = vsel %vm415_vm1, %v2315_v13, 0.0 }
 0x40d   : > { %v2344_v9 = vsel %vm415_vm1, %v2314_v29, 0.0  ;;  %v3166_v55 = vpop.f32.mrb[40].mxu0 }
 0x40e   : > { %v2332_v37 = vadd.f32 %v2331_v57, %v2330_v34  ;;  %v2339_v42 = vadd.f32 %v2338_v62, %v2337_v26  ;;  %v2346_v16 = vadd.f32 %v2345_v43, %v2344_v9  ;;  %v2317_v61 = vmul.f32 %v3166_v55, %v1135_v38  ;;  %v2261_v28 = vpop.f32.mrb[41].mxu0  ;;  %v4870_v43 = vld [vmem:[#allocation20_spill] sm:$0xff]  ;;  %v4871_v9 = vld [vmem:[#allocation21_spill] sm:$0xff] }
 0x40f   : > { %v2316_v17 = vmul.f32 %v2261_v28, %v1134_v45  ;;  %v1143_v45 = vadd.f32 %v4870_v43, %v4696_v53  ;;  %v1142_v55 = vadd.f32 %v4698_v48, %v4871_v9 }
 0x410   : > { %v2340_v59 = vrot.slane %v2339_v42, 2  ;;  %v2347_v40 = vrot.slane %v2346_v16, 4  ;;  %v2354_v20 = vsel %vm415_vm1, %v2317_v61, 0.0  ;;  %v2333_v25 = vrot.slane %v2332_v37, 1 }
 0x411   : > { %v2353_v56 = vsel %vm415_vm1, %v2316_v17, 0.0  ;;  %v3169_v41 = vpop.f32.mrb[42].mxu0 }
 0x412   : > { %v2341_v54 = vadd.f32 %v2340_v59, %v2339_v42  ;;  %v2348_v35 = vadd.f32 %v2347_v40, %v2346_v16  ;;  %v2355_v7 = vadd.f32 %v2354_v20, %v2353_v56  ;;  %v2271_v33 = vpop.f32.mrb[43].mxu0  ;;  %v2319_v63 = vmul.f32 %v3169_v41, %v1137_v18 }
 0x413   : > { %v2318_v8 = vmul.f32 %v2271_v33, %v1136_v21  ;;  %v2334_v50 = vadd.f32 %v2333_v25, %v2332_v37 }
 0x414   : > { %v2342_v2 = vrot.slane %v2341_v54, 1  ;;  %v2349_v46 = vrot.slane %v2348_v35, 2  ;;  %v2356_v4 = vrot.slane %v2355_v7, 4  ;;  %v2363_v27 = vsel %vm415_vm1, %v2319_v63, 0.0 }
 0x415   : > { %v2362_v47 = vsel %vm415_vm1, %v2318_v8, 0.0  ;;  %v3172_v12 = vpop.f32.mrb[44].mxu0 }
 0x416   : > { %v2343_v44 = vadd.f32 %v2342_v2, %v2341_v54  ;;  %v2350_v5 = vadd.f32 %v2349_v46, %v2348_v35  ;;  %v2357_v60 = vadd.f32 %v2356_v4, %v2355_v7  ;;  %v2364_v11 = vadd.f32 %v2363_v27, %v2362_v47  ;;  %v2281_v58 = vpop.f32.mrb[45].mxu0 }
 0x417   : > { %v2321_v24 = vmul.f32 %v3172_v12, %v1139_v39  ;;  %v2320_v10 = vmul.f32 %v2281_v58, %v1138_v49 }
 0x418   : > { %v2406_v31 = vsel %vm520_vm2, %v2343_v44, %v2334_v50  ;;  %v2351_v36 = vrot.slane %v2350_v5, 1  ;;  %v2358_v22 = vrot.slane %v2357_v60, 2  ;;  %v2365_v6 = vrot.slane %v2364_v11, 4  ;;  %vm4872_vm2 = vmmov %vm4861_vm5 }
 0x419   : > { %v2372_v19 = vsel %vm415_vm1, %v2321_v24, 0.0  ;;  %v2371_v15 = vsel %vm415_vm1, %v2320_v10, 0.0  ;;  %v3175_v30 = vpop.f32.mrb[46].mxu0  ;;  %v2766_v10 = vld [vmem:[%s4816_s7 + $0x3] ss:$0 sm:$0xff] }
 0x41a   : > { %v2352_v1 = vadd.f32 %v2351_v36, %v2350_v5  ;;  %v2359_v14 = vadd.f32 %v2358_v22, %v2357_v60  ;;  %v2366_v34 = vadd.f32 %v2365_v6, %v2364_v11  ;;  %v2373_v26 = vadd.f32 %v2372_v19, %v2371_v15  ;;  %v2291_v13 = vpop.f32.mrb[47].mxu0 }
 0x41b   : > { %v2323_v32 = vmul.f32 %v3175_v30, %v1141_v51  ;;  %v2322_v29 = vmul.f32 %v2291_v13, %v1140_v23 }
 0x41c   : > { %v2407_v38 = vsel %vm4869_vm0, %v2352_v1, %v2406_v31  ;;  %v2360_v57 = vrot.slane %v2359_v14, 1  ;;  %v2367_v62 = vrot.slane %v2366_v34, 2  ;;  %v2374_v52 = vrot.slane %v2373_v26, 4 }
 0x41d   : > { %v2381_v37 = vsel %vm415_vm1, %v2323_v32, 0.0  ;;  %v2380_v42 = vsel %vm415_vm1, %v2322_v29, 0.0  ;;  %v3178_v16 = vpop.f32.mrb[48].mxu0 }
 0x41e   : > { %v2361_v61 = vadd.f32 %v2360_v57, %v2359_v14  ;;  %v2368_v28 = vadd.f32 %v2367_v62, %v2366_v34  ;;  %v2375_v17 = vadd.f32 %v2374_v52, %v2373_v26  ;;  %v2382_v59 = vadd.f32 %v2381_v37, %v2380_v42  ;;  %v2301_v40 = vpop.f32.mrb[49].mxu0 }
 0x41f   : > { %v2325_v20 = vmul.f32 %v3178_v16, %v1143_v45  ;;  %v2324_v18 = vmul.f32 %v2301_v40, %v1142_v55 }
 0x420   : > { %v2408_v21 = vsel %vm4872_vm2, %v2361_v61, %v2407_v38  ;;  %v2369_v25 = vrot.slane %v2368_v28, 1  ;;  %v2376_v56 = vrot.slane %v2375_v17, 2  ;;  %v2383_v53 = vrot.slane %v2382_v59, 4 }
 0x421   : > { %v2390_v41 = vsel %vm415_vm1, %v2325_v20, 0.0  ;;  %v2389_v48 = vsel %vm415_vm1, %v2324_v18, 0.0 }
 0x422   : > { %v2370_v54 = vadd.f32 %v2369_v25, %v2368_v28  ;;  %v2377_v35 = vadd.f32 %v2376_v56, %v2375_v17  ;;  %v2384_v7 = vadd.f32 %v2383_v53, %v2382_v59  ;;  %v2391_v33 = vadd.f32 %v2390_v41, %v2389_v48 }
 0x424   : > { %v2409_v63 = vsel %vm4873_vm3, %v2370_v54, %v2408_v21  ;;  %v2378_v8 = vrot.slane %v2377_v35, 1  ;;  %v2385_v39 = vrot.slane %v2384_v7, 2  ;;  %v2392_v2 = vrot.slane %v2391_v33, 4 }
 0x426   : > { %v2379_v46 = vadd.f32 %v2378_v8, %v2377_v35  ;;  %v2386_v4 = vadd.f32 %v2385_v39, %v2384_v7  ;;  %v2393_v49 = vadd.f32 %v2392_v2, %v2391_v33 }
 0x428   : > { %v2410_v50 = vsel %vm4874_vm14, %v2379_v46, %v2409_v63  ;;  %v2387_v27 = vrot.slane %v2386_v4, 1  ;;  %v2394_v47 = vrot.slane %v2393_v49, 2 }
 0x42a   : > { %v2388_v12 = vadd.f32 %v2387_v27, %v2386_v4  ;;  %v2395_v44 = vadd.f32 %v2394_v47, %v2393_v49 }
 0x42c   : > { %v2411_v5 = vsel %vm4875_vm15, %v2388_v12, %v2410_v50  ;;  %v2396_v60 = vrot.slane %v2395_v44, 1 }
 0x42e   : > { %v2397_v11 = vadd.f32 %v2396_v60, %v2395_v44 }
 0x430   : > { %v2412_v58 = vsel %vm4876_vm9, %v2397_v11, %v2411_v5 }
 0x431   : > { %v2414_v24 = vadd.f32 %v2412_v58, %v4694_v3 }
 0x433   : > { %3196 = vmatmul.mubr.msk.f32.vlgmr.msra.gmra.mrb[24].mxu1 %vm415_vm1, %v2414_v24 }
 0x506   : > { %v2496_v31 = vpop.f32.mrb[24].mxu1 }
 0x507   : > { %v2497_v36 = vadd.f32 %v2766_v10, %v2496_v31  ;;  %v3197_v22 = vpop.f32.mrb[25].mxu1 }
 0x509   : > { %2501 = vst.msk [vmem:[%s397_s13] sm:$0xff] %vm2500_vm8, %v2497_v36 }
 0x50a   : > { %3669 = shalt.err (!%p3666_p8)
}
 0x50b   : > { %s3670_s14 = scalar_lea.hbm %s4765_s15, 128  ;;  %s3674_s25 = scalar_lea.hbm %s4817_s8, 256 }
 0x50c   : > { %p3671_p6 = scmp.ne.s32.totalorder %s4765_s15, %s3670_s14  ;;  %p3675_p3 = scmp.lt.u32.totalorder %s4765_s15, %s4817_s8 }
 0x50d   : > { %p3676_p5 = scmp.lt.u32.totalorder %s3674_s25, %s3670_s14  ;;  %p3678_p7 = scmp.lt.u32.totalorder %s3670_s14, %s4765_s15 }
 0x50e   : > { %p3672_p10 = pnand %p3671_p6, %p4877_p4 }
 0x50f   : > { %p3677_p9 = por %p3676_p5, %p3675_p3 }
 0x510   : > { %p3673_p11 = pneg %p3672_p10 }
 0x511   : > { %p3679_p12 = por %p3678_p7, %p3677_p9 }
 0x513   : > { %p3680_p1 = pnand %p3679_p12, %p3673_p11 }
 0x515   : > { %3683 = shalt.err (!%p3680_p1)
}
 0x516   : > { %3368 = dma.vmem_to_hbm [thread:$0]  (%p4877_p4), %s4767_s20, 128, %s4765_s15, %s2503_s16  }
 0x517 PF: > { %s2528_s19 = sand.u32 1, %s3722_s27   ;;  %p4878_p13 = scmp.ne.s32.totalorder %s4839_s24, 0 }
 0x518   : > { %p4879_p0 = scmp.ge.s32.totalorder %s3734_s30, 2  ;;  %s2529_s1 = scalar_lea.sflag [#allocation4], %s2528_s19 }
 0x51a   : > { %p3391_p2 = pnand %p4879_p0, %p4878_p13 }
 0x51c   : > { %3717 = dma.done.wait (!%p3391_p2), %s2529_s1, 128  }
 0x51d   : > { %3719 = vsyncadd (!%p3391_p2), %s2529_s1, 4294967168  ;;  %p24_p8 = scmp.ge.s32.totalorder %s3968_s23, 4   ;;  %s4880_s27 = smov %s3726_s28 }
 0x51e   : > { %s4881_s28 = smov %s3730_s29  ;;  %s4882_s29 = smov %s3980_s18 }
 0x51f   : > { %s4883_s30 = smov %s3968_s23  ;;  %26 = sbr.rel (!%p24_p8) target bundleno = 10 (0xa), region = 117 }
 0x526   :  { %2534 = vsyncpa [#allocation3], 1 }
 0x527   :  { %2536 = vsyncpa [#allocation3 + $0x1], 1 }
 0x528   :  { %2537 = vsyncpa [#allocation6], 1 }
 0x529   :  { %2538 = vsyncpa [#allocation9], 1 }
 0x52a   :  { %2539 = vsyncpa [#allocation12], 1 }
 0x52b   :  { %2540 = vsyncpa [#allocation4], 1 }
 0x52c   :  { %2542 = vsyncpa [#allocation4 + $0x1], 1 }

// kernel: tpu_custom_call.1
= control target key start
LH: loop header
LB: loop body
LE: loop exit
PB: predicated region body
PF: predicated region fallthrough
CT: control target
= control target key end

     0   :  { %s4809_s0 = inlined_call_operand.hbm [shape: f32[16,16,64], index: 0, kind: input, shape index: {}]   ;;  %s4810_s1 = inlined_call_operand.hbm [shape: f32[64,64], index: 1, kind: input, shape index: {}]   ;;  %s4811_s2 = inlined_call_operand.hbm [shape: f32[64,64], index: 2, kind: input, shape index: {}]   ;;  %s4812_s3 = inlined_call_operand.hbm [shape: f32[64,64], index: 3, kind: input, shape index: {}]   ;;  %s4813_s4 = inlined_call_operand.hbm [shape: f32[64,96], index: 4, kind: input, shape index: {}]   ;;  %s4814_s5 = inlined_call_operand.vmem [shape: f32[16,64], index: 5, kind: input, shape index: {}]   ;;  %s4815_s6 = inlined_call_operand.hbm [shape: f32[16,64], index: 6, kind: input, shape index: {}]   ;;  %s4816_s7 = inlined_call_operand.vmem [shape: f32[8,96], index: 7, kind: input, shape index: {}]   ;;  %s4817_s8 = inlined_call_operand.hbm [shape: f32[16,96], index: 8, kind: output, shape index: {}]  }
   0x1   :  { %4831 = sst [smem:[#allocation22_spill]] %s4810_s1 }
   0x2   :  { %13 = vsyncpa [#allocation3], 0 }
   0x3   :  { %15 = vsyncpa [#allocation3 + $0x1], 0 }
   0x4   :  { %16 = vsyncpa [#allocation6], 0 }
   0x5   :  { %17 = vsyncpa [#allocation9], 0 }
   0x6   :  { %18 = vsyncpa [#allocation12], 0 }
   0x7   :  { %19 = vsyncpa [#allocation4], 0 }
   0x8   :  { %21 = vsyncpa [#allocation4 + $0x1], 0  ;;  %s3795_s27 = smov 0   ;;  %s3797_s28 = smov 0  }
   0x9   :  { %s3799_s29 = smov 0   ;;  %s3801_s30 = smov 0  }
   0xa LB: > { %s3736_s9 = smov [#allocation5]   ;;  %s3816_s11 = sadd.s32 4294967295, %s3734_s30   ;;  %s3734_s30 = sphi %s3801_s30, %s4883_s30   ;;  %s3730_s29 = sphi %s3799_s29, %s4882_s29   ;;  %s3726_s28 = sphi %s3797_s28, %s4881_s28   ;;  %s3722_s27 = sphi %s3795_s27, %s4880_s27  }
   0xb   : > { %s243_s10 = sshll.u32 %s3736_s9, 4  ;;  %p2635_p0 = scmp.ge.s32.totalorder %s3734_s30, 1  ;;  %s3821_s10 = int_to_ptr.vmem [resolvable:$true] %s243_s10 }
   0xc   : > { %p4818_p1 = scmp.eq.s32.totalorder %s3816_s11, 0  ;;  %p231_p2 = scmp.lt.s32.totalorder %s3734_s30, 3 }
   0xd   : > { %s3737_s13 = smov [#allocation8]   ;;  %s3738_s16 = smov [#allocation7]  }
   0xe   : > { %p3823_p3 = pnand %p2635_p0, %p231_p2  ;;  %s269_s14 = sshll.u32 %s3737_s13, 4  ;;  %s3836_s14 = int_to_ptr.vmem [resolvable:$true] %s269_s14 }
   0xf   : > { %s256_s17 = sshll.u32 %s3738_s16, 4  ;;  %s4834_s1 = sld [smem:[#allocation22_spill]]  ;;  %s3838_s17 = int_to_ptr.vmem [resolvable:$true] %s256_s17 }
  0x10   : > { %s4832_s12 = scalar_select %p3823_p3, 1, 0 }
  0x11   : > { %p3370_p5 = pneg %p3823_p3 }
  0x13   : > { %p3832_p6 = pnand %p3370_p5, %p4818_p1 }
  0x15   : > { %s3486_s20 = scalar_lea.hbm %s4834_s1, 1024  ;;  %p3848_p8 = pneg %p3832_p6 }
  0x16   : > { %p3487_p7 = scmp.ne.s32.totalorder %s4834_s1, %s3486_s20  ;;  %p3493_p11 = scmp.lt.u32.totalorder %s3486_s20, %s4834_s1 }
  0x18   : > { %p3489_p9 = pnand %p3848_p8, %p3487_p7 }
  0x1a   : > { %p3490_p10 = pneg %p3489_p9 }
  0x1c   : > { %p3495_p12 = pnand %p3493_p11, %p3490_p10 }
  0x1e   : > { %3498 = shalt.err (!%p3495_p12)
}
  0x1f   : > { %s3499_s26 = scalar_lea.vmem %s3821_s10, 1024  ;;  %p3507_p5 = scmp.lt.s32.totalorder %s3821_s10, %s3821_s10 }
  0x20   : > { %p3500_p13 = scmp.ne.s32.totalorder %s3821_s10, %s3499_s26  ;;  %p3508_p4 = scmp.lt.s32.totalorder %s3499_s26, %s3499_s26 }
  0x22   : > { %p3502_p0 = pnand %p3500_p13, %p3848_p8  ;;  %p3509_p7 = por %p3508_p4, %p3507_p5 }
  0x24   : > { %p3503_p2 = pneg %p3502_p0 }
  0x26   : > { %p3510_p9 = pnand %p3509_p7, %p3503_p2 }
  0x28   : > { %3513 = shalt.err (!%p3510_p9)
}
  0x29   : > { %s4820_s9 = smov 128   ;;  %s3740_s13 = smov 8  }
  0x2a   : > { %3373 = dma.hbm_to_vmem [thread:$0]  (!%p3832_p6), %s4834_s1, 1024, %s3821_s10, [#allocation6], %s4820_s9, %s4820_s9, %s3740_s13  }
  0x2b   : > { %s3514_s21 = scalar_lea.hbm %s4812_s3, 1024 }
  0x2c   : > { %p3515_p4 = scmp.ne.s32.totalorder %s4812_s3, %s3514_s21  ;;  %p3521_p12 = scmp.lt.u32.totalorder %s3514_s21, %s4812_s3 }
  0x2e   : > { %p3517_p10 = pnand %p3515_p4, %p3848_p8 }
  0x30   : > { %p3518_p11 = pneg %p3517_p10 }
  0x32   : > { %p3523_p13 = pnand %p3521_p12, %p3518_p11 }
  0x34   : > { %3526 = shalt.err (!%p3523_p13)
}
  0x35   : > { %s3527_s10 = scalar_lea.vmem %s3836_s14, 1024  ;;  %p3535_p7 = scmp.lt.s32.totalorder %s3836_s14, %s3836_s14 }
  0x36   : > { %p3528_p0 = scmp.ne.s32.totalorder %s3836_s14, %s3527_s10  ;;  %p3536_p9 = scmp.lt.s32.totalorder %s3527_s10, %s3527_s10 }
  0x38   : > { %p3530_p2 = pnand %p3528_p0, %p3848_p8  ;;  %p3537_p4 = por %p3536_p9, %p3535_p7 }
  0x3a   : > { %p3531_p5 = pneg %p3530_p2 }
  0x3c   : > { %p3538_p10 = pnand %p3537_p4, %p3531_p5 }
  0x3e   : > { %3541 = shalt.err (!%p3538_p10)
}
  0x3f   : > { %3379 = dma.hbm_to_vmem [thread:$0]  (!%p3832_p6), %s4812_s3, 1024, %s3836_s14, [#allocation9], %s4820_s9, %s4820_s9, %s3740_s13  }
  0x40   : > { %s3542_s21 = scalar_lea.hbm %s4811_s2, 1024 }
  0x41   : > { %p3543_p11 = scmp.ne.s32.totalorder %s4811_s2, %s3542_s21  ;;  %p3549_p0 = scmp.lt.u32.totalorder %s3542_s21, %s4811_s2 }
  0x43   : > { %p3545_p12 = pnand %p3543_p11, %p3848_p8 }
  0x45   : > { %p3546_p13 = pneg %p3545_p12 }
  0x47   : > { %p3551_p2 = pnand %p3549_p0, %p3546_p13 }
  0x49   : > { %3554 = shalt.err (!%p3551_p2)
}
  0x4a   : > { %s3555_s14 = scalar_lea.vmem %s3838_s17, 1024  ;;  %p3563_p4 = scmp.lt.s32.totalorder %s3838_s17, %s3838_s17 }
  0x4b   : > { %p3556_p5 = scmp.ne.s32.totalorder %s3838_s17, %s3555_s14  ;;  %p3564_p10 = scmp.lt.s32.totalorder %s3555_s14, %s3555_s14 }
  0x4d   : > { %p3558_p7 = pnand %p3556_p5, %p3848_p8  ;;  %p3565_p11 = por %p3564_p10, %p3563_p4 }
  0x4f   : > { %p3559_p9 = pneg %p3558_p7 }
  0x51   : > { %p3566_p12 = pnand %p3565_p11, %p3559_p9 }
  0x53   : > { %3569 = shalt.err (!%p3566_p12)
}
  0x54   : > { %3376 = dma.hbm_to_vmem [thread:$0]  (!%p3832_p6), %s4811_s2, 1024, %s3838_s17, [#allocation6], %s4820_s9, %s4820_s9, %s3740_s13  }
  0x55   : > { %s3741_s18 = smov [#allocation10]   ;;  %s3742_s20 = smov [#allocation11]  }
  0x56   : > { %s282_s19 = sshll.u32 %s3741_s18, 4  ;;  %s298_s21 = sshll.u32 %s3742_s20, 4  ;;  %s283_s19 = int_to_ptr.vmem [resolvable:$true] %s282_s19  ;;  %s299_s21 = int_to_ptr.vmem [resolvable:$true] %s298_s21 }
  0x57   : > { %s3570_s25 = scalar_lea.hbm %s4813_s4, 1024 }
  0x58   : > { %p3571_p13 = scmp.ne.s32.totalorder %s4813_s4, %s3570_s25  ;;  %p3577_p5 = scmp.lt.u32.totalorder %s3570_s25, %s4813_s4 }
  0x5a   : > { %p3573_p0 = pnand %p3571_p13, %p3848_p8 }
  0x5c   : > { %p3574_p2 = pneg %p3573_p0 }
  0x5e   : > { %p3579_p7 = pnand %p3577_p5, %p3574_p2 }
  0x60   : > { %3582 = shalt.err (!%p3579_p7)
}
  0x61   : > { %s3583_s17 = scalar_lea.vmem %s283_s19, 1024  ;;  %p3591_p11 = scmp.lt.s32.totalorder %s283_s19, %s283_s19 }
  0x62   : > { %p3584_p9 = scmp.ne.s32.totalorder %s283_s19, %s3583_s17  ;;  %p3592_p12 = scmp.lt.s32.totalorder %s3583_s17, %s3583_s17 }
  0x64   : > { %p3586_p4 = pnand %p3584_p9, %p3848_p8  ;;  %p3593_p1 = por %p3592_p12, %p3591_p11 }
  0x66   : > { %p3587_p10 = pneg %p3586_p4 }
  0x68   : > { %p3594_p3 = pnand %p3593_p1, %p3587_p10 }
  0x6a   : > { %3597 = shalt.err (!%p3594_p3)
}
  0x6b   : > { %3382 = dma.hbm_to_vmem [thread:$0]  (!%p3832_p6), %s4813_s4, 1024, %s283_s19, [#allocation9], %s4820_s9, %s4820_s9, %s3740_s13  }
  0x6c   : > { %s3598_s22 = scalar_lea.hbm %s4815_s6, 256 }
  0x6d   : > { %p3599_p1 = scmp.ne.s32.totalorder %s4815_s6, %s3598_s22  ;;  %p3605_p0 = scmp.lt.u32.totalorder %s3598_s22, %s4815_s6 }
  0x6f   : > { %p3601_p3 = pnand %p3599_p1, %p3848_p8 }
  0x71   : > { %p3602_p13 = pneg %p3601_p3 }
  0x73   : > { %p3607_p2 = pnand %p3605_p0, %p3602_p13 }
  0x75   : > { %3610 = shalt.err (!%p3607_p2)
}
  0x76   : > { %s3611_s10 = scalar_lea.vmem %s299_s21, 256  ;;  %p3619_p4 = scmp.lt.s32.totalorder %s299_s21, %s299_s21 }
  0x77   : > { %p3612_p5 = scmp.ne.s32.totalorder %s299_s21, %s3611_s10  ;;  %p3620_p10 = scmp.lt.s32.totalorder %s3611_s10, %s3611_s10 }
  0x79   : > { %p3614_p7 = pnand %p3612_p5, %p3848_p8  ;;  %p3621_p11 = por %p3620_p10, %p3619_p4 }
  0x7b   : > { %p3615_p9 = pneg %p3614_p7 }
  0x7d   : > { %p3622_p12 = pnand %p3621_p11, %p3615_p9 }
  0x7f   : > { %3625 = shalt.err (!%p3622_p12)
}
  0x80   : > { %3385 = dma.hbm_to_vmem [thread:$0]  (!%p3832_p6), %s4815_s6, 256, %s299_s21, [#allocation12], %s4820_s9, %s4820_s9, %s3740_s13  }
  0x81   : > { %s2634_s15 = sadd.s32 4294967294, %s3734_s30   ;;  %s3968_s23 = sadd.s32 1, %s3734_s30  }
  0x82   : > { %s34_s1 = sadd.s32 1, %s3730_s29  ;;  %s31_s16 = ssub.s32 %s3734_s30, %s3968_s23 }
  0x83   : > { %p41_p8 = scmp.ne.s32.totalorder %s3730_s29, %s3726_s28  ;;  %p32_p1 = scmp.eq.s32.totalorder %s31_s16, 0 }
  0x84   : > { %p42_p3 = scmp.eq.s32.totalorder %s3734_s30, 0  ;;  %p47_p13 = scmp.ne.s32.totalorder %s3726_s28, %s3722_s27 }
  0x85   : > { %p218_p0 = scmp.eq.s32.totalorder %s3816_s11, 1  ;;  %p4836_p5 = scmp.eq.s32.totalorder %s3816_s11, 0 }
  0x86   : > { %s3980_s18 = scalar_select %p32_p1, %s3730_s29, %s34_s1  }
  0x87   : > { %p43_p2 = por %p42_p3, %p41_p8  ;;  %p3984_p7 = por %p4836_p5, %p47_p13 }
  0x88   : > { %p3988_p6 = por %p218_p0, %p41_p8  ;;  %p224_p9 = scmp.eq.s32.totalorder %s2634_s15, 1 }
  0x89   : > { %p3399_p4 = scmp.lt.s32.totalorder %s3734_s30, 2  ;;  %s315_s22 = sand.u32 1, %s3730_s29  }
  0x8a   : > { %s4838_s21 = scalar_select %p3988_p6, 1, 0 }
  0x8b   : > { %p3994_p10 = por %p224_p9, %p47_p13  ;;  %s2642_s25 = sshll.u32 %s315_s22, 7 }
  0x8c   : > { %s2773_s26 = sshll.u32 %s3734_s30, 11  ;;  %s319_s17 = scalar_lea.vmem [#allocation2], %s2642_s25 }
  0x8d   : > { %s4839_s24 = scalar_select %p3994_p10, 1, 0 }
  0x8e   : > { %s4002_s19 = scalar_lea.hbm %s4809_s0, %s2773_s26  ;;  %s327_s1 = sshll.u32 %s319_s17, 4  ;;  %s4008_s1 = int_to_ptr.vmem [resolvable:$true] %s327_s1 }
  0x8f   : > { %p4004_p11 = pnand %p3399_p4, %p43_p2  ;;  %s4010_s16 = scalar_lea.sflag [#allocation3], %s315_s22 }
  0x90   : > { %s3626_s9 = scalar_lea.hbm %s4002_s19, 2048  ;;  %s3631_s14 = scalar_lea.hbm %s4809_s0, 4096 }
  0x91   : > { %p3627_p12 = scmp.ne.s32.totalorder %s4002_s19, %s3626_s9  ;;  %p3628_p8 = pneg %p4004_p11 }
  0x92   : > { %p3632_p13 = scmp.lt.u32.totalorder %s4002_s19, %s4809_s0  ;;  %p3633_p0 = scmp.lt.u32.totalorder %s3631_s14, %s3626_s9 }
  0x93   : > { %p3629_p1 = pnand %p3628_p8, %p3627_p12  ;;  %p3635_p5 = scmp.lt.u32.totalorder %s3626_s9, %s4002_s19 }
  0x94   : > { %p3634_p2 = por %p3633_p0, %p3632_p13 }
  0x95   : > { %p3630_p3 = pneg %p3629_p1 }
  0x96   : > { %p3636_p9 = por %p3635_p5, %p3634_p2 }
  0x98   : > { %p3637_p4 = pnand %p3636_p9, %p3630_p3 }
  0x9a   : > { %3640 = shalt.err (!%p3637_p4)
}
  0x9b   : > { %s3641_s22 = scalar_lea.vmem %s4008_s1, 2048  ;;  %s3743_s25 = smov [#allocation2]  }
  0x9c   : > { %p3642_p12 = scmp.ne.s32.totalorder %s4008_s1, %s3641_s22  ;;  %s3646_s26 = sshll.u32 %s3743_s25, 4  ;;  %s3647_s26 = int_to_ptr.vmem [resolvable:$false] %s3646_s26 }
  0x9d   : > { %s3648_s10 = scalar_lea.vmem %s3647_s26, 4096  ;;  %p3649_p6 = scmp.lt.s32.totalorder %s4008_s1, %s3647_s26 }
  0x9e   : > { %p3644_p1 = pnand %p3642_p12, %p3628_p8  ;;  %p3650_p13 = scmp.lt.s32.totalorder %s3648_s10, %s3641_s22 }
  0xa0   : > { %p3645_p10 = pneg %p3644_p1  ;;  %p3651_p0 = por %p3650_p13, %p3649_p6 }
  0xa2   : > { %p3652_p2 = pnand %p3651_p0, %p3645_p10 }
  0xa4   : > { %3655 = shalt.err (!%p3652_p2)
}
  0xa5   : > { %s4841_s9 = smov 128   ;;  %p4842_p8 = scmp.ne.s32.totalorder %s4832_s12, 0 }
  0xa6   : > { %3389 = dma.hbm_to_vmem [thread:$0]  (!%p4004_p11), %s4002_s19, 2048, %s4008_s1, %s4010_s16, %s4841_s9, %s4841_s9, %s3740_s13  }
  0xa7   : > { %339 = sbr.rel (%p4842_p8) target bundleno = 1303 (0x517), region = 52 }
  0xae   : > { %s4044_s14 = sand.u32 1, %s3726_s28  }
  0xaf   : > { %s2647_s17 = sshll.u32 %s4044_s14, 7  ;;  %s342_s22 = scalar_lea.sflag [#allocation3], %s4044_s14 }
  0xb0   : > { %s4048_s25 = scalar_lea.vmem [#allocation2], %s2647_s17 }
  0xb1   : > { %3701 = dma.done.wait (%p3984_p7), %s342_s22, 2048  }
  0xb2   : > { %3703 = vsyncadd (%p3984_p7), %s342_s22, 4294965248  ;;  %p4843_p6 = scmp.eq.s32.totalorder %s3816_s11, 0 }
  0xb4   : > { %3705 = dma.done.wait (%p4843_p6), [#allocation6], 2048   ;;  %p4844_p10 = pmov %p4843_p6 }
  0xb5   : > { %p4845_p11 = pmov %p4843_p6 }
  0xb6   : > { %3707 = vsyncadd (%p4844_p10), [#allocation6], 4294965248 }
  0xb7   : > { %3709 = dma.done.wait (%p4845_p11), [#allocation9], 2048   ;;  %p4846_p3 = pmov %p4843_p6 }
  0xb9   : > { %3711 = vsyncadd (%p4846_p3), [#allocation9], 4294965248  ;;  %p4847_p5 = pmov %p4846_p3 }
  0xba   : > { %p4848_p9 = pmov %p4846_p3 }
  0xbb   : > { %3713 = dma.done.wait (%p4847_p5), [#allocation12], 256  }
  0xbc   : > { %3715 = vsyncadd (%p4848_p9), [#allocation12], 4294967040  ;;  %v4828_v0 = vmov 0.0|0.0   ;;  %vm3745_vm0 = vmmov 0   ;;  %v4830_v1 = vmov 0.0   ;;  %v500_v2 = vld [vmem:[#allocation5] sm:$0xff] }
  0xbd   : > { %3198 = vmatprep.subr.bf16.mxu1 %v4828_v0  ;;  %2940 = vmatprep.mubr.msk.f32.mxu1 %vm3745_vm0, %v4830_v1  ;;  %v501_v3 = vld [vmem:[#allocation5 + $0x8] sm:$0xff]  ;;  %v502_v4 = vld [vmem:[#allocation5 + $0x10] sm:$0xff]  ;;  %vm415_vm1 = vcmask 523264   ;;  %v503_v6 = vld [vmem:[#allocation5 + $0x18] sm:$0xff]  ;;  %vm520_vm2 = vcmask 1041409   ;;  %vm4827_vm3 = vcmask 1042434  }
  0xbe   : > { %3222 = vmatprep.subr.bf16.mxu0 %v4828_v0  ;;  %2978 = vmatprep.mubr.msk.f32.mxu0 %vm3745_vm0, %v4830_v1  ;;  %v3199_v5 = vpack.c.bf16 %v501_v3, %v500_v2  ;;  %v504_v7 = vld [vmem:[#allocation5 + $0x20] sm:$0xff]  ;;  %v505_v8 = vld [vmem:[#allocation5 + $0x28] sm:$0xff]  ;;  %v4072_v9 = vld [vmem:[#allocation5 + $0x30] sm:$0xff]  ;;  %v3202_v12 = vpack.c.bf16 %v503_v6, %v502_v4  ;;  %vm4826_vm4 = vcmask 1043459   ;;  %vm4825_vm5 = vcmask 1044484   ;;  %s2653_s17 = sshll.u32 %s4044_s14, 3 }
  0xbf   : > { %v4074_v10 = vld [vmem:[#allocation5 + $0x38] sm:$0xff]  ;;  %v4077_v11 = vld [vmem:[%s4048_s25] sm:$0xff]  ;;  %v3205_v13 = vpack.c.bf16 %v505_v8, %v504_v7  ;;  %v4080_v14 = vld [vmem:[%s4048_s25 + $0x8] sm:$0xff]  ;;  %vm4824_vm6 = vcmask 1045509   ;;  %vm4823_vm7 = vcmask 1046534   ;;  %vm4822_vm8 = vcmask 1047559  }
  0xc0   : > { %3200 = vmatpush3.bf16.msra.mxu1 %v3199_v5  ;;  %v4083_v15 = vld [vmem:[%s4048_s25 + $0x10] sm:$0xff]  ;;  %v4086_v16 = vld [vmem:[%s4048_s25 + $0x18] sm:$0xff]  ;;  %v416_v17 = vsel %vm415_vm1, %v4077_v11, 0.0  ;;  %v3208_v18 = vpack.c.bf16 %v4074_v10, %v4072_v9  ;;  %v4094_v19 = vld [vmem:[%s4048_s25 + $0x20] sm:$0xff]  ;;  %v417_v22 = vsel %vm415_vm1, %v4080_v14, 0.0  ;;  %s2769_s12 = sshll.u32 %s3816_s11, 7 }
  0xc1   : > { %3201 = vmatprep.subr.bf16.mxu1 %v4828_v0  ;;  %v4097_v20 = vld [vmem:[%s4048_s25 + $0x28] sm:$0xff]  ;;  %v4100_v21 = vld [vmem:[%s4048_s25 + $0x30] sm:$0xff]  ;;  %v425_v23 = vsel %vm415_vm1, %v4083_v15, 0.0  ;;  %v426_v24 = vsel %vm415_vm1, %v4086_v16, 0.0  ;;  %v4109_v25 = vld [vmem:[%s4048_s25 + $0x38] sm:$0xff]  ;;  %v418_v28 = vadd.f32 %v417_v22, %v416_v17  ;;  %v434_v30 = vsel %vm415_vm1, %v4094_v19, 0.0  ;;  %s4765_s15 = scalar_lea.hbm %s4817_s8, %s2769_s12 }
  0xc2   : > { %v4112_v26 = vld [vmem:[%s4048_s25 + $0x40] sm:$0xff]  ;;  %v4115_v27 = vld [vmem:[%s4048_s25 + $0x48] sm:$0xff]  ;;  %v427_v29 = vadd.f32 %v426_v24, %v425_v23  ;;  %v435_v31 = vsel %vm415_vm1, %v4097_v20, 0.0  ;;  %v4122_v32 = vld [vmem:[%s4048_s25 + $0x50] sm:$0xff]  ;;  %v443_v35 = vsel %vm415_vm1, %v4100_v21, 0.0  ;;  %v444_v36 = vsel %vm415_vm1, %v4109_v25, 0.0 }
  0xc3   : > { %v4125_v33 = vld [vmem:[%s4048_s25 + $0x58] sm:$0xff]  ;;  %v436_v34 = vadd.f32 %v435_v31, %v434_v30  ;;  %v452_v37 = vsel %vm415_vm1, %v4112_v26, 0.0  ;;  %v4134_v38 = vld [vmem:[%s4048_s25 + $0x60] sm:$0xff]  ;;  %v4137_v39 = vld [vmem:[%s4048_s25 + $0x68] sm:$0xff]  ;;  %v419_v40 = vrot.slane %v418_v28, 4  ;;  %v445_v42 = vadd.f32 %v444_v36, %v443_v35  ;;  %s397_s13 = scalar_lea.vmem [#allocation13], %s2653_s17 }
  0xc4   : > { %3203 = vmatpush3.bf16.msra.mxu1 %v3202_v12  ;;  %v428_v41 = vrot.slane %v427_v29, 4  ;;  %v453_v43 = vsel %vm415_vm1, %v4115_v27, 0.0  ;;  %v461_v46 = vsel %vm415_vm1, %v4122_v32, 0.0  ;;  %v462_v47 = vsel %vm415_vm1, %v4125_v33, 0.0  ;;  %v4147_v48 = vld [vmem:[%s4048_s25 + $0x70] sm:$0xff]  ;;  %v4154_v57 = vld [vmem:[%s4048_s25 + $0x78] sm:$0xff] }
  0xc5   : > { %3204 = vmatprep.subr.bf16.mxu1 %v4828_v0  ;;  %v437_v44 = vrot.slane %v436_v34, 4  ;;  %v454_v45 = vadd.f32 %v453_v43, %v452_v37  ;;  %v420_v49 = vadd.f32 %v419_v40, %v418_v28  ;;  %v446_v51 = vrot.slane %v445_v42, 4  ;;  %s2516_s20 = sshll.u32 %s397_s13, 4  ;;  %s2503_s16 = scalar_lea.sflag [#allocation4], %s4044_s14  ;;  %s4767_s20 = int_to_ptr.vmem [resolvable:$true] %s2516_s20 }
  0xc6   : > { %v429_v50 = vadd.f32 %v428_v41, %v427_v29  ;;  %v463_v52 = vadd.f32 %v462_v47, %v461_v46  ;;  %v470_v55 = vsel %vm415_vm1, %v4134_v38, 0.0  ;;  %v471_v56 = vsel %vm415_vm1, %v4137_v39, 0.0  ;;  %s3656_s26 = scalar_lea.vmem %s4767_s20, 128  ;;  %p4877_p4 = scmp.ne.s32.totalorder %s4838_s21, 0 }
  0xc7   : > { %v438_v53 = vadd.f32 %v437_v44, %v436_v34  ;;  %v455_v54 = vrot.slane %v454_v45, 4  ;;  %v421_v58 = vrot.slane %v420_v49, 2  ;;  %v447_v60 = vadd.f32 %v446_v51, %v445_v42  ;;  %p3657_p7 = scmp.ne.s32.totalorder %s4767_s20, %s3656_s26  ;;  %s3749_s11 = smov [#allocation13]  }
  0xc8   : > { %3206 = vmatpush3.bf16.msra.mxu1 %v3205_v13  ;;  %v430_v59 = vrot.slane %v429_v50, 2  ;;  %v464_v61 = vrot.slane %v463_v52, 4  ;;  %v472_v2 = vadd.f32 %v471_v56, %v470_v55  ;;  %v479_v3 = vsel %vm415_vm1, %v4147_v48, 0.0  ;;  %s3660_s10 = sshll.u32 %s3749_s11, 4  ;;  %s3661_s10 = int_to_ptr.vmem [resolvable:$false] %s3660_s10 }
  0xc9   : > { %3207 = vmatprep.subr.bf16.mxu1 %v4828_v0  ;;  %v439_v62 = vrot.slane %v438_v53, 2  ;;  %v456_v63 = vadd.f32 %v455_v54, %v454_v45  ;;  %v422_v4 = vadd.f32 %v421_v58, %v420_v49  ;;  %v448_v6 = vrot.slane %v447_v60, 2  ;;  %p3658_p12 = pnand %p3657_p7, %p4877_p4  ;;  %s3662_s9 = scalar_lea.vmem %s3661_s10, 256 }
  0xca   : > { %v431_v5 = vadd.f32 %v430_v59, %v429_v50  ;;  %v465_v7 = vadd.f32 %v464_v61, %v463_v52  ;;  %v473_v13 = vrot.slane %v472_v2, 4  ;;  %v480_v17 = vsel %vm415_vm1, %v4154_v57, 0.0  ;;  %v688_v59 = vld [vmem:[#allocation8] sm:$0xff]  ;;  %p3663_p13 = scmp.lt.s32.totalorder %s4767_s20, %s3661_s10  ;;  %p3664_p0 = scmp.lt.s32.totalorder %s3662_s9, %s3656_s26 }
  0xcb   : > { %v440_v8 = vadd.f32 %v439_v62, %v438_v53  ;;  %v457_v12 = vrot.slane %v456_v63, 2  ;;  %v423_v22 = vrot.slane %v422_v4, 1  ;;  %v449_v24 = vadd.f32 %v448_v6, %v447_v60  ;;  %v689_v60 = vld [vmem:[#allocation8 + $0x8] sm:$0xff]  ;;  %p3659_p1 = pneg %p3658_p12 }
  0xcc   : > { %3209 = vmatpush3.bf16.msra.mxu1 %v3208_v18  ;;  %v432_v23 = vrot.slane %v431_v5, 1  ;;  %v466_v28 = vrot.slane %v465_v7, 2  ;;  %v474_v31 = vadd.f32 %v473_v13, %v472_v2  ;;  %v481_v34 = vadd.f32 %v480_v17, %v479_v3  ;;  %v606_v13 = vld [vmem:[#allocation7] sm:$0xff]  ;;  %v607_v17 = vld [vmem:[#allocation7 + $0x8] sm:$0xff]  ;;  %p3665_p2 = por %p3664_p0, %p3663_p13 }
  0xcd   : > { %3210 = vmatprep.subr.bf16.mxu1 %v4828_v0  ;;  %v441_v29 = vrot.slane %v440_v8, 1  ;;  %v458_v30 = vadd.f32 %v457_v12, %v456_v63  ;;  %v424_v35 = vadd.f32 %v423_v22, %v422_v4  ;;  %v450_v37 = vrot.slane %v449_v24, 1  ;;  %v690_v4 = vld [vmem:[#allocation8 + $0x10] sm:$0xff] }
  0xce   : > { %v433_v36 = vadd.f32 %v432_v23, %v431_v5  ;;  %v467_v40 = vadd.f32 %v466_v28, %v465_v7  ;;  %v475_v43 = vrot.slane %v474_v31, 2  ;;  %v482_v44 = vrot.slane %v481_v34, 4  ;;  %v691_v5 = vld [vmem:[#allocation8 + $0x18] sm:$0xff]  ;;  %v693_v28 = vld [vmem:[#allocation8 + $0x28] sm:$0xff]  ;;  %p3666_p8 = pnand %p3665_p2, %p3659_p1 }
  0xcf   : > { %v442_v41 = vadd.f32 %v441_v29, %v440_v8  ;;  %v459_v42 = vrot.slane %v458_v30, 1  ;;  %v451_v9 = vadd.f32 %v450_v37, %v449_v24  ;;  %v488_v18 = vmul.f32 0.11111111, %v424_v35  ;;  %v692_v24 = vld [vmem:[#allocation8 + $0x20] sm:$0xff]  ;;  %v609_v35 = vld [vmem:[#allocation7 + $0x18] sm:$0xff] }
  0xd0   : > { %v468_v10 = vrot.slane %v467_v40, 1  ;;  %v489_v45 = vmul.f32 0.11111111, %v433_v36  ;;  %v476_v47 = vadd.f32 %v475_v43, %v474_v31  ;;  %v483_v49 = vadd.f32 %v482_v44, %v481_v34  ;;  %v608_v34 = vld [vmem:[#allocation7 + $0x10] sm:$0xff]  ;;  %v610_v43 = vld [vmem:[#allocation7 + $0x20] sm:$0xff]  ;;  %v611_v44 = vld [vmem:[#allocation7 + $0x28] sm:$0xff] }
  0xd1   : > { %v460_v46 = vadd.f32 %v459_v42, %v458_v30  ;;  %v490_v50 = vmul.f32 0.11111111, %v442_v41  ;;  %v491_v52 = vmul.f32 0.11111111, %v451_v9  ;;  %v3223_v6 = vpack.c.bf16 %v689_v60, %v688_v59  ;;  %v695_v41 = vld [vmem:[#allocation8 + $0x38] sm:$0xff] }
  0xd2   : > { %v469_v51 = vadd.f32 %v468_v10, %v467_v40  ;;  %v521_v53 = vsel %vm520_vm2, %v489_v45, %v488_v18  ;;  %v477_v54 = vrot.slane %v476_v47, 1  ;;  %v484_v55 = vrot.slane %v483_v49, 2  ;;  %v694_v40 = vld [vmem:[#allocation8 + $0x30] sm:$0xff]  ;;  %v613_v45 = vld [vmem:[#allocation7 + $0x38] sm:$0xff] }
  0xd3   : > { %v492_v56 = vmul.f32 0.11111111, %v460_v46  ;;  %v523_v58 = vsel %vm4827_vm3, %v490_v50, %v521_v53  ;;  %3224 = vmatpush3.bf16.msra.mxu0 %v3223_v6  ;;  %v3226_v22 = vpack.c.bf16 %v691_v5, %v690_v4  ;;  %v3211_v31 = vpack.c.bf16 %v607_v17, %v606_v13  ;;  %v612_v18 = vld [vmem:[#allocation7 + $0x30] sm:$0xff] }
  0xd4   : > { %v493_v61 = vmul.f32 0.11111111, %v469_v51  ;;  %v525_v62 = vsel %vm4826_vm4, %v491_v52, %v523_v58  ;;  %v478_v63 = vadd.f32 %v477_v54, %v476_v47  ;;  %v485_v2 = vadd.f32 %v484_v55, %v483_v49  ;;  %3225 = vmatprep.subr.bf16.mxu0 %v4828_v0 }
  0xd5   : > { %v527_v3 = vsel %vm4825_vm5, %v492_v56, %v525_v62  ;;  %v3229_v36 = vpack.c.bf16 %v693_v28, %v692_v24  ;;  %v3214_v42 = vpack.c.bf16 %v609_v35, %v608_v34  ;;  %v3232_v9 = vpack.c.bf16 %v695_v41, %v694_v40  ;;  %v4320_v35 = vld [vmem:[%s4814_s5] sm:$0xff] }
  0xd6   : > { %v486_v7 = vrot.slane %v485_v2, 1  ;;  %v494_v8 = vmul.f32 0.11111111, %v478_v63  ;;  %v529_v12 = vsel %vm4824_vm6, %v493_v61, %v527_v3  ;;  %v3217_v10 = vpack.c.bf16 %v611_v44, %v610_v43  ;;  %v2656_v3 = vld [vmem:[%s4816_s7 + $0x1] ss:$0 sm:$0xff] }
  0xd7   : > { %3227 = vmatpush3.bf16.msra.mxu0 %v3226_v22  ;;  %v3220_v46 = vpack.c.bf16 %v613_v45, %v612_v18  ;;  %v3748_v62 = vmov 1966171168  }
  0xd8   : > { %v487_v23 = vadd.f32 %v486_v7, %v485_v2  ;;  %v531_v29 = vsel %vm4823_vm7, %v494_v8, %v529_v12  ;;  %3228 = vmatprep.subr.bf16.mxu0 %v4828_v0  ;;  %v1274_v63 = vunpack.c.l.s4 %v3748_v62  ;;  %v2654_v2 = vld [vmem:[%s4816_s7] ss:$0 sm:$0xff] }
  0xda   : > { %v495_v30 = vmul.f32 0.11111111, %v487_v23 }
  0xdb   : > { %3230 = vmatpush3.bf16.msra.mxu0 %v3229_v36 }
  0xdc   : > { %v533_v37 = vsel %vm4822_vm8, %v495_v30, %v531_v29  ;;  %3231 = vmatprep.subr.bf16.mxu0 %v4828_v0 }
  0xdd   : > { %2941 = vmatmul.mubr.msk.f32.vlgmr.msra.gmra.mrb[0].mxu1 %vm415_vm1, %v533_v37 }
  0xde   : > { %3212 = vmatpush3.bf16.msra.mxu1 %v3211_v31  ;;  %2959 = vmatprep.mubr.msk.f32.mxu1 %vm3745_vm0, %v4830_v1 }
  0xdf   : > { %3213 = vmatprep.subr.bf16.mxu1 %v4828_v0  ;;  %3233 = vmatpush3.bf16.msra.mxu0 %v3232_v9 }
  0xe0   : > { %3251 = vmatprep.subr.bf16.mxu0 %v3223_v6 }
  0xe2   : > { %3215 = vmatpush3.bf16.msra.mxu1 %v3214_v42  ;;  %2979 = vmatmul.mubr.msk.f32.vlgmr.msra.gmra.mrb[0].mxu0 %vm415_vm1, %v533_v37 }
  0xe3   : > { %3216 = vmatprep.subr.bf16.mxu1 %v4828_v0  ;;  %3253 = vmatpush3.bf16.msra.mxu0 %v3223_v6  ;;  %v1275_v6 = vunpack.c.0.s8 %v1274_v63 }
  0xe4   : > { %3255 = vmatprep.subr.bf16.mxu0 %v3226_v22  ;;  %3037 = vmatprep.mubr.msk.f32.mxu0 %vm415_vm1, %v4077_v11 }
  0xe6   : > { %3218 = vmatpush3.bf16.msra.mxu1 %v3217_v10 }
  0xe7   : > { %3219 = vmatprep.subr.bf16.mxu1 %v4828_v0  ;;  %3257 = vmatpush3.bf16.msra.mxu0 %v3226_v22 }
  0xe8   : > { %3259 = vmatprep.subr.bf16.mxu0 %v3229_v36 }
  0xea   : > { %3221 = vmatpush3.bf16.msra.mxu1 %v3220_v46 }
  0xeb   : > { %3235 = vmatprep.subr.bf16.mxu1 %v3211_v31  ;;  %3261 = vmatpush3.bf16.msra.mxu0 %v3229_v36 }
  0xec   : > { %3263 = vmatprep.subr.bf16.mxu0 %v3232_v9 }
  0xed   : > { %2960 = vmatmul.mubr.msk.f32.vlgmr.msra.gmra.mrb[2].mxu1 %vm415_vm1, %v533_v37 }
  0xee   : > { %3237 = vmatpush3.bf16.msra.mxu1 %v3211_v31  ;;  %2997 = vmatprep.mubr.msk.f32.mxu1 %vm415_vm1, %v4077_v11  ;;  %v1144_v11 = vlaneseq  ;;  %v4313_v31 = vld [vmem:[%s4814_s5 + $0x8] sm:$0xff] }
  0xef   : > { %3239 = vmatprep.subr.bf16.mxu1 %v3214_v42  ;;  %3265 = vmatpush3.bf16.msra.mxu0 %v3232_v9 }
  0xf2   : > { %3241 = vmatpush3.bf16.msra.mxu1 %v3214_v42  ;;  %3038 = vmatmul.mubr.msk.f32.vlgmr.msra.gmra.mrb[2].mxu0 %vm415_vm1, %v4080_v14 }
  0xf3   : > { %3243 = vmatprep.subr.bf16.mxu1 %v3217_v10  ;;  %3040 = vmatprep.mubr.msk.f32.mxu0 %vm415_vm1, %v4083_v15 }
  0xf6   : > { %3245 = vmatpush3.bf16.msra.mxu1 %v3217_v10  ;;  %3041 = vmatmul.mubr.msk.f32.gmra.mrb[4].mxu0 %vm415_vm1, %v4086_v16 }
  0xf7   : > { %3247 = vmatprep.subr.bf16.mxu1 %v3220_v46  ;;  %3043 = vmatprep.mubr.msk.f32.mxu0 %vm415_vm1, %v4094_v19 }
  0xfa   : > { %3249 = vmatpush3.bf16.msra.mxu1 %v3220_v46  ;;  %3044 = vmatmul.mubr.msk.f32.gmra.mrb[6].mxu0 %vm415_vm1, %v4097_v20 }
  0xfb   : > { %3266 = vmatprep.subr.bf16.mxu1 %v4828_v0  ;;  %3046 = vmatprep.mubr.msk.f32.mxu0 %vm415_vm1, %v4100_v21 }
  0xfd   : > { %2998 = vmatmul.mubr.msk.f32.vlgmr.msra.gmra.mrb[4].mxu1 %vm415_vm1, %v4080_v14  ;;  %v1154_v14 = vand.u32 127, %v1144_v11 }
  0xfe   : > { %3000 = vmatprep.mubr.msk.f32.mxu1 %vm415_vm1, %v4083_v15  ;;  %3047 = vmatmul.mubr.msk.f32.gmra.mrb[8].mxu0 %vm415_vm1, %v4109_v25  ;;  %v4250_v15 = vshrl.u32 %v1144_v11, 7 }
  0xff   : > { %3049 = vmatprep.mubr.msk.f32.mxu0 %vm415_vm1, %v4112_v26 }
 0x100   : > { %v1151_v51 = vadd.s32 48, %v4250_v15  ;;  %v1152_v52 = vadd.s32 56, %v4250_v15  ;;  %v4294_v13 = vsub.s32 %v1275_v6, %v4250_v15  ;;  %v4305_v28 = vsub.s32 0, %v4250_v15 }
 0x101   : > { %3001 = vmatmul.mubr.msk.f32.gmra.mrb[6].mxu1 %vm415_vm1, %v4086_v16  ;;  %v1155_v16 = vmul.u32 16, %v1154_v14 }
 0x102   : > { %3003 = vmatprep.mubr.msk.f32.mxu1 %vm415_vm1, %v4094_v19  ;;  %3050 = vmatmul.mubr.msk.f32.gmra.mrb[10].mxu0 %vm415_vm1, %v4115_v27  ;;  %v4253_v19 = vadd.s32 8, %v4250_v15 }
 0x103   : > { %3052 = vmatprep.mubr.msk.f32.mxu0 %vm415_vm1, %v4122_v32  ;;  %vm1156_vm9 = vcmp.ge.s32.totalorder %v4250_v15, %v1155_v16 }
 0x104   : > { %vm1157_vm10 = vcmp.ge.s32.totalorder %v4253_v19, %v1155_v16 }
 0x105   : > { %3004 = vmatmul.mubr.msk.f32.gmra.mrb[8].mxu1 %vm415_vm1, %v4097_v20  ;;  %v1164_v20 = vadd.s32 16, %v1155_v16 }
 0x106   : > { %3006 = vmatprep.mubr.msk.f32.mxu1 %vm415_vm1, %v4100_v21  ;;  %3053 = vmatmul.mubr.msk.f32.gmra.mrb[12].mxu0 %vm415_vm1, %v4125_v33 }
 0x107   : > { %3055 = vmatprep.mubr.msk.f32.mxu0 %vm415_vm1, %v4134_v38  ;;  %vm1165_vm11 = vcmp.lt.s32.totalorder %v4250_v15, %v1164_v20  ;;  %vm1166_vm12 = vcmp.lt.s32.totalorder %v4253_v19, %v1164_v20 }
 0x108   : > { %vm1173_vm13 = vmand %vm1156_vm9, %vm1165_vm11 }
 0x109   : > { %3007 = vmatmul.mubr.msk.f32.gmra.mrb[10].mxu1 %vm415_vm1, %v4109_v25  ;;  %vm1174_vm14 = vmand %vm1157_vm10, %vm1166_vm12  ;;  %v2692_v21 = vsel %vm1173_vm13, 1.0, %v4830_v1  ;;  %v1147_v25 = vadd.s32 16, %v4250_v15 }
 0x10a   : > { %3009 = vmatprep.mubr.msk.f32.mxu1 %vm415_vm1, %v4112_v26  ;;  %3056 = vmatmul.mubr.msk.f32.gmra.mrb[14].mxu0 %vm415_vm1, %v4137_v39  ;;  %v2693_v26 = vsel %vm1174_vm14, 1.0, %v4830_v1  ;;  %vm3267_vm15 = vmpackc.low %vm1174_vm14, %vm1173_vm13 }
 0x10b   : > { %3058 = vmatprep.mubr.msk.f32.mxu0 %vm415_vm1, %v4147_v48  ;;  %vm1158_vm9 = vcmp.ge.s32.totalorder %v1147_v25, %v1155_v16  ;;  %vm1167_vm10 = vcmp.lt.s32.totalorder %v1147_v25, %v1164_v20 }
 0x10c   : > { %vm1175_vm8 = vmand %vm1158_vm9, %vm1167_vm10  ;;  %vm1171_vm10 = vcmp.lt.s32.totalorder %v1151_v51, %v1164_v20 }
 0x10d   : > { %3010 = vmatmul.mubr.msk.f32.gmra.mrb[12].mxu1 %vm415_vm1, %v4115_v27  ;;  %v1148_v27 = vadd.s32 24, %v4250_v15 }
 0x10e   : > { %3012 = vmatprep.mubr.msk.f32.mxu1 %vm415_vm1, %v4122_v32  ;;  %3059 = vmatmul.mubr.msk.f32.gmra.mrb[16].mxu0 %vm415_vm1, %v4154_v57  ;;  %v1149_v32 = vadd.s32 32, %v4250_v15 }
 0x10f   : > { %vm1159_vm11 = vcmp.ge.s32.totalorder %v1148_v27, %v1155_v16  ;;  %vm1168_vm12 = vcmp.lt.s32.totalorder %v1148_v27, %v1164_v20 }
 0x110   : > { %vm1160_vm13 = vcmp.ge.s32.totalorder %v1149_v32, %v1155_v16  ;;  %vm1176_vm14 = vmand %vm1159_vm11, %vm1168_vm12  ;;  %vm1169_vm6 = vcmp.lt.s32.totalorder %v1149_v32, %v1164_v20  ;;  %vm1172_vm11 = vcmp.lt.s32.totalorder %v1152_v52, %v1164_v20 }
 0x111   : > { %3013 = vmatmul.mubr.msk.f32.gmra.mrb[14].mxu1 %vm415_vm1, %v4125_v33  ;;  %v1150_v33 = vadd.s32 40, %v4250_v15  ;;  %vm3270_vm4 = vmpackc.low %vm1176_vm14, %vm1175_vm8 }
 0x112   : > { %3015 = vmatprep.mubr.msk.f32.mxu1 %vm415_vm1, %v4134_v38  ;;  %v3747_v38 = vmov 1.0|1.0   ;;  %vm1177_vm3 = vmand %vm1160_vm13, %vm1169_vm6  ;;  %vm1163_vm6 = vcmp.ge.s32.totalorder %v1152_v52, %v1155_v16  ;;  %vm1571_vm13 = vcmp.lt.s32.totalorder %v4253_v19, 9 }
 0x113   : > { %3268 = vmatpush3.bf16.msk.msra.mxu1 %vm3267_vm15, %v3747_v38  ;;  %3279 = vmatprep.subr.msk.bf16.mxu0 %vm3267_vm15, %v3747_v38  ;;  %vm1161_vm7 = vcmp.ge.s32.totalorder %v1150_v33, %v1155_v16  ;;  %vm1170_vm5 = vcmp.lt.s32.totalorder %v1150_v33, %v1164_v20  ;;  %v2696_v49 = vsel %vm1177_vm3, 1.0, %v4830_v1 }
 0x114   : > { %3281 = vmatpush3.bf16.msk.msra.mxu0 %vm3267_vm15, %v3747_v38  ;;  %3269 = vmatprep.subr.bf16.mxu1 %v4828_v0  ;;  %vm1178_vm15 = vmand %vm1161_vm7, %vm1170_vm5 }
 0x115   : > { %3016 = vmatmul.mubr.msk.f32.gmra.mrb[16].mxu1 %vm415_vm1, %v4137_v39  ;;  %v4265_v39 = vpack.c.bf16 %v2693_v26, %v2692_v21  ;;  %3283 = vmatprep.subr.msk.bf16.mxu0 %vm3270_vm4, %v3747_v38  ;;  %v2697_v50 = vsel %vm1178_vm15, 1.0, %v4830_v1  ;;  %vm3273_vm9 = vmpackc.low %vm1178_vm15, %vm1177_vm3  ;;  %vm1588_vm3 = vcmask 31744   ;;  %vm4855_vm15 = vcmask 1043459  }
 0x116   : > { %3018 = vmatprep.mubr.msk.f32.mxu1 %vm415_vm1, %v4147_v48  ;;  %v2694_v48 = vsel %vm1175_vm8, 1.0, %v4830_v1  ;;  %v4277_v53 = vpack.c.bf16 %v2697_v50, %v2696_v49  ;;  %vm1162_vm8 = vcmp.ge.s32.totalorder %v1151_v51, %v1155_v16  ;;  %vm4392_vm12 = vmpackc.low %vm1588_vm3, %vm1588_vm3 }
 0x117   : > { %3271 = vmatpush3.bf16.msk.msra.mxu1 %vm3270_vm4, %v3747_v38  ;;  %vm1179_vm5 = vmand %vm1162_vm8, %vm1171_vm10  ;;  %vm4857_vm8 = vcmask 1045509   ;;  %vm4859_vm10 = vcmask 1047559  }
 0x118   : > { %3272 = vmatprep.subr.bf16.mxu1 %v4828_v0  ;;  %3285 = vmatpush3.bf16.msk.msra.mxu0 %vm3270_vm4, %v3747_v38  ;;  %vm1180_vm4 = vmand %vm1163_vm6, %vm1172_vm11  ;;  %v2698_v54 = vsel %vm1179_vm5, 1.0, %v4830_v1  ;;  %vm4858_vm6 = vcmask 1046534  }
 0x119   : > { %3019 = vmatmul.mubr.msk.f32.gmra.mrb[18].mxu1 %vm415_vm1, %v4154_v57  ;;  %v2695_v57 = vsel %vm1176_vm14, 1.0, %v4830_v1  ;;  %3287 = vmatprep.subr.msk.bf16.mxu0 %vm3273_vm9, %v3747_v38  ;;  %vm3276_vm7 = vmpackc.low %vm1180_vm4, %vm1179_vm5  ;;  %v2699_v55 = vsel %vm1180_vm4, 1.0, %v4830_v1  ;;  %vm4854_vm14 = vcmask 1042434  }
 0x11a   : > { %3077 = vmatprep.mubr.msk.f32.mxu1 %vm3745_vm0, %v4830_v1  ;;  %v4270_v47 = vpack.c.bf16 %v2695_v57, %v2694_v48  ;;  %v4282_v56 = vpack.c.bf16 %v2699_v55, %v2698_v54  ;;  %vm4860_vm11 = vmmov %vm4854_vm14 }
 0x11b   : > { %3274 = vmatpush3.bf16.msk.msra.mxu1 %vm3273_vm9, %v3747_v38  ;;  %vm4861_vm5 = vmmov %vm4855_vm15 }
 0x11c   : > { %3275 = vmatprep.subr.bf16.mxu1 %v4828_v0  ;;  %3289 = vmatpush3.bf16.msk.msra.mxu0 %vm3273_vm9, %v3747_v38  ;;  %vm4856_vm9 = vcmask 1044484  }
 0x11d   : > { %3291 = vmatprep.subr.msk.bf16.mxu0 %vm3276_vm7, %v3747_v38  ;;  %vm4862_vm4 = vmmov %vm4856_vm9 }
 0x11f   : > { %3277 = vmatpush3.bf16.msk.msra.mxu1 %vm3276_vm7, %v3747_v38 }
 0x120   : > { %3293 = vmatpush3.bf16.msk.msra.mxu0 %vm3276_vm7, %v3747_v38  ;;  %3294 = vmatprep.subr.bf16.mxu1 %v4828_v0  ;;  %vm4863_vm7 = vmmov %vm4857_vm8 }
 0x121   : > { %3312 = vmatprep.subr.msk.bf16.mxu0 %vm4392_vm12, %v4265_v39 }
 0x1b0   : > { %v602_v58 = vpop.f32.mrb[0].mxu1 }
 0x1b1   : > { %v2942_v59 = vpop.f32.mrb[1].mxu1  ;;  %v603_v5 = vadd.f32 %v2654_v2, %v602_v58 }
 0x1b3   : > { %v1279_v17 = vrot.slane %v603_v5, %v4294_v13  ;;  %v1272_v46 = vcombine.high %v603_v5, %v603_v5 }
 0x1b5   : > { %v4285_v60 = vpop.f32.mrb[0].mxu0  ;;  %v1287_v24 = vcombine.high %v1279_v17, %v1279_v17  ;;  %v1295_v29 = vrot.slane %v1279_v17, %v4294_v13  ;;  %v1286_v33 = vrot.slane %v1272_v46, %v4294_v13 }
 0x1b6   : > { %v2980_v61 = vpop.f32.mrb[1].mxu0 }
 0x1b7   : > { %v1324_v40 = vrot.slane %v1295_v29, %v4305_v28  ;;  %v1309_v42 = vrot.slane %v1287_v24, %v4294_v13  ;;  %v1317_v16 = vcombine.high %v1295_v29, %v1295_v29  ;;  %v1302_v61 = vrot.slane %v1286_v33, %v4294_v13 }
 0x1b8   : > { %v1288_v62 = vcombine.high %v1286_v33, %v1286_v33 }
 0x1b9   : > { %v1328_v14 = vrot.slane %v1309_v42, %v4305_v28  ;;  %v1332_v48 = vrot.slane %v1317_v16, %v4305_v28  ;;  %v1319_v49 = vcombine.high %v1309_v42, %v1309_v42  ;;  %v1340_v6 = vrot.slane %v1302_v61, %v4305_v28 }
 0x1bb   : > { %v1336_v58 = vrot.slane %v1319_v49, %v4305_v28 }
 0x1c0   : > { %v684_v4 = vpop.f32.mrb[2].mxu1 }
 0x1c1   : > { %v685_v7 = vadd.f32 %v2656_v3, %v684_v4  ;;  %v2961_v8 = vpop.f32.mrb[3].mxu1 }
 0x1c2   : > { %v1316_v8 = vrot.slane %v1288_v62, %v4294_v13 }
 0x1c3   : > { %v1197_v12 = vmul.f32 %v685_v7, %v603_v5 }
 0x1c5   : > { %3078 = vmatmul.mubr.msk.f32.vlgmr.msra.gmra.mrb[20].mxu1 %vm415_vm1, %v1197_v12  ;;  %v4300_v22 = vpop.f32.mrb[2].mxu0 }
 0x1c6   : > { %3136 = vmatprep.mubr.msk.f32.mxu1 %vm3745_vm0, %v4830_v1  ;;  %v4302_v23 = vpop.f32.mrb[3].mxu0  ;;  %3297 = vmatpush3.bf16.xpose.msk.msra.mxu1 %vm4392_vm12, %v4265_v39 }
 0x1c7   : > { %3298 = vmatprep.subr.bf16.mxu1 %v4828_v0 }
 0x1c9   : > { %v4308_v30 = vpop.f32.mrb[4].mxu0 }
 0x1ca   : > { %v4315_v34 = vpop.f32.mrb[5].mxu0 }
 0x1cd   : > { %v4325_v43 = vpop.f32.mrb[6].mxu0 }
 0x1ce   : > { %v4328_v9 = vpop.f32.mrb[7].mxu0  ;;  %3301 = vmatpush3.bf16.xpose.msk.msra.mxu1 %vm4392_vm12, %v4270_v47 }
 0x1cf   : > { %3302 = vmatprep.subr.bf16.mxu1 %v4828_v0 }
 0x1d0   : > { %v2999_v36 = vpop.f32.mrb[4].mxu1 }
 0x1d1   : > { %v966_v37 = vadd.f32 %v2999_v36, %v4313_v31  ;;  %v884_v41 = vpop.f32.mrb[5].mxu1  ;;  %v4332_v20 = vpop.f32.mrb[8].mxu0 }
 0x1d2   : > { %v965_v44 = vadd.f32 %v4320_v35, %v884_v41  ;;  %v4336_v25 = vpop.f32.mrb[9].mxu0  ;;  %v1318_v41 = vcombine.high %v1302_v61, %v1302_v61 }
 0x1d3   : > { %v1362_v10 = vmul.f32 %v1324_v40, %v966_v37  ;;  %v1344_v37 = vrot.slane %v1316_v8, %v4305_v28 }
 0x1d4   : > { %v1361_v18 = vmul.f32 %v1324_v40, %v965_v44  ;;  %v3002_v45 = vpop.f32.mrb[6].mxu1  ;;  %v1348_v46 = vrot.slane %v1318_v41, %v4305_v28 }
 0x1d5   : > { %v968_v11 = vadd.f32 %v3002_v45, %v4313_v31  ;;  %v894_v15 = vpop.f32.mrb[7].mxu1  ;;  %v4374_v49 = vpop.f32.mrb[10].mxu0 }
 0x1d6   : > { %v967_v21 = vadd.f32 %v4320_v35, %v894_v15  ;;  %3096 = vmatprep.mubr.msk.f32.mxu0 %vm415_vm1, %v1361_v18  ;;  %3305 = vmatpush3.bf16.xpose.msk.msra.mxu1 %vm4392_vm12, %v4277_v53 }
 0x1d7   : > { %v1364_v26 = vmul.f32 %v1328_v14, %v968_v11  ;;  %3097 = vmatmul.mubr.msk.f32.vlgmr.msra.gmra.mrb[18].mxu0 %vm415_vm1, %v1362_v10  ;;  %3306 = vmatprep.subr.bf16.mxu1 %v4828_v0 }
 0x1d8   : > { %v1363_v27 = vmul.f32 %v1328_v14, %v967_v21  ;;  %v3005_v32 = vpop.f32.mrb[8].mxu1  ;;  %v1320_v14 = vcombine.high %v1316_v8, %v1316_v8  ;;  %3315 = vmatpush3.bf16.xpose.msk.msra.mxu0 %vm4392_vm12, %v4265_v39 }
 0x1d9   : > { %v970_v38 = vadd.f32 %v3005_v32, %v4313_v31  ;;  %v904_v57 = vpop.f32.mrb[9].mxu1  ;;  %3318 = vmatprep.subr.msk.bf16.mxu0 %vm4392_vm12, %v4270_v47 }
 0x1da   : > { %v969_v50 = vadd.f32 %v4320_v35, %v904_v57  ;;  %3099 = vmatprep.mubr.msk.f32.mxu0 %vm415_vm1, %v1363_v27  ;;  %v1352_v32 = vrot.slane %v1320_v14, %v4305_v28 }
 0x1db   : > { %v1366_v51 = vmul.f32 %v1332_v48, %v970_v38  ;;  %3100 = vmatmul.mubr.msk.f32.gmra.mrb[20].mxu0 %vm415_vm1, %v1364_v26 }
 0x1dc   : > { %v1365_v52 = vmul.f32 %v1332_v48, %v969_v50  ;;  %v3008_v54 = vpop.f32.mrb[10].mxu1  ;;  %v4376_v50 = vpop.f32.mrb[11].mxu0 }
 0x1dd   : > { %v972_v55 = vadd.f32 %v3008_v54, %v4313_v31  ;;  %v914_v59 = vpop.f32.mrb[11].mxu1 }
 0x1de   : > { %v971_v63 = vadd.f32 %v4320_v35, %v914_v59  ;;  %3102 = vmatprep.mubr.msk.f32.mxu0 %vm415_vm1, %v1365_v52  ;;  %3309 = vmatpush3.bf16.xpose.msk.msra.mxu1 %vm4392_vm12, %v4282_v56 }
 0x1df   : > { %v1368_v2 = vmul.f32 %v1336_v58, %v972_v55  ;;  %3103 = vmatmul.mubr.msk.f32.gmra.mrb[22].mxu0 %vm415_vm1, %v1366_v51  ;;  %3334 = vmatprep.subr.bf16.mxu1 %v4828_v0 }
 0x1e0   : > { %v1367_v3 = vmul.f32 %v1336_v58, %v971_v63  ;;  %v3011_v4 = vpop.f32.mrb[12].mxu1  ;;  %3321 = vmatpush3.bf16.xpose.msk.msra.mxu0 %vm4392_vm12, %v4270_v47 }
 0x1e1   : > { %v974_v5 = vadd.f32 %v3011_v4, %v4313_v31  ;;  %v924_v7 = vpop.f32.mrb[13].mxu1  ;;  %3324 = vmatprep.subr.msk.bf16.mxu0 %vm4392_vm12, %v4277_v53 }
 0x1e2   : > { %v973_v12 = vadd.f32 %v4320_v35, %v924_v7  ;;  %3105 = vmatprep.mubr.msk.f32.mxu0 %vm415_vm1, %v1367_v3 }
 0x1e3   : > { %v1370_v17 = vmul.f32 %v1340_v6, %v974_v5  ;;  %3106 = vmatmul.mubr.msk.f32.gmra.mrb[24].mxu0 %vm415_vm1, %v1368_v2 }
 0x1e4   : > { %v1369_v24 = vmul.f32 %v1340_v6, %v973_v12  ;;  %v3014_v29 = vpop.f32.mrb[14].mxu1 }
 0x1e5   : > { %v976_v36 = vadd.f32 %v3014_v29, %v4313_v31  ;;  %v934_v40 = vpop.f32.mrb[15].mxu1 }
 0x1e6   : > { %v975_v42 = vadd.f32 %v4320_v35, %v934_v40  ;;  %3108 = vmatprep.mubr.msk.f32.mxu0 %vm415_vm1, %v1369_v24 }
 0x1e7   : > { %v1372_v44 = vmul.f32 %v1344_v37, %v976_v36  ;;  %3109 = vmatmul.mubr.msk.f32.gmra.mrb[26].mxu0 %vm415_vm1, %v1370_v17 }
 0x1e8   : > { %v1371_v10 = vmul.f32 %v1344_v37, %v975_v42  ;;  %v3017_v18 = vpop.f32.mrb[16].mxu1  ;;  %3327 = vmatpush3.bf16.xpose.msk.msra.mxu0 %vm4392_vm12, %v4277_v53 }
 0x1e9   : > { %v978_v45 = vadd.f32 %v3017_v18, %v4313_v31  ;;  %v944_v11 = vpop.f32.mrb[17].mxu1  ;;  %3330 = vmatprep.subr.msk.bf16.mxu0 %vm4392_vm12, %v4282_v56 }
 0x1ea   : > { %v977_v15 = vadd.f32 %v4320_v35, %v944_v11  ;;  %3111 = vmatprep.mubr.msk.f32.mxu0 %vm415_vm1, %v1371_v10 }
 0x1eb   : > { %v1374_v16 = vmul.f32 %v1348_v46, %v978_v45  ;;  %3112 = vmatmul.mubr.msk.f32.gmra.mrb[28].mxu0 %vm415_vm1, %v1372_v44 }
 0x1ec   : > { %v1373_v21 = vmul.f32 %v1348_v46, %v977_v15  ;;  %v3020_v26 = vpop.f32.mrb[18].mxu1 }
 0x1ed   : > { %v980_v27 = vadd.f32 %v3020_v26, %v4313_v31  ;;  %v954_v33 = vpop.f32.mrb[19].mxu1  ;;  %v4378_v31 = vpop.f32.mrb[12].mxu0 }
 0x1ee   : > { %v979_v38 = vadd.f32 %v4320_v35, %v954_v33  ;;  %3114 = vmatprep.mubr.msk.f32.mxu0 %vm415_vm1, %v1373_v21  ;;  %v4380_v51 = vpop.f32.mrb[13].mxu0 }
 0x1ef   : > { %v1376_v48 = vmul.f32 %v1352_v32, %v980_v27  ;;  %3115 = vmatmul.mubr.msk.f32.gmra.mrb[30].mxu0 %vm415_vm1, %v1374_v16  ;;  %v4382_v52 = vpop.f32.mrb[14].mxu0 }
 0x1f0   : > { %v1375_v57 = vmul.f32 %v1352_v32, %v979_v38  ;;  %v4384_v35 = vpop.f32.mrb[15].mxu0  ;;  %3333 = vmatpush3.bf16.xpose.msk.msra.mxu0 %vm4392_vm12, %v4282_v56  ;;  %vm4864_vm12 = vmmov %vm4858_vm6 }
 0x1f1   : > { %4849 = vst [vmem:[#allocation19_spill] sm:$0xff] %v4384_v35  ;;  %v4386_v54 = vpop.f32.mrb[16].mxu0 }
 0x1f2   : > { %3117 = vmatprep.mubr.msk.f32.mxu0 %vm415_vm1, %v1375_v57  ;;  %4850 = vst [vmem:[#allocation20_spill] sm:$0xff] %v4386_v54  ;;  %v4388_v55 = vpop.f32.mrb[17].mxu0 }
 0x1f3   : > { %3118 = vmatmul.mubr.msk.f32.gmra.mrb[32].mxu0 %vm415_vm1, %v1376_v48  ;;  %4851 = vst [vmem:[#allocation21_spill] sm:$0xff] %v4388_v55 }
 0x298   : > { %v4419_v39 = vpop.f32.mrb[20].mxu1 }
 0x299   : > { %v3079_v59 = vpop.f32.mrb[21].mxu1 }
 0x2aa   : > { %v3098_v47 = vpop.f32.mrb[18].mxu0 }
 0x2ab   : > { %v4441_v53 = vsel %vm1571_vm13, %v3098_v47, -inf  ;;  %v4443_v61 = vpop.f32.mrb[19].mxu0 }
 0x2ac   : > { %v1590_v62 = vsel %vm1588_vm3, %v4441_v53, -inf  ;;  %v1589_v63 = vsel %vm1588_vm3, %v4443_v61, -inf }
 0x2ad   : > { %v1591_v2 = vmax.f32 %v1589_v63, %v1590_v62 }
 0x2ae   : > { %v3101_v3 = vpop.f32.mrb[20].mxu0 }
 0x2af   : > { %v1592_v56 = vrot.slane %v1591_v2, 4  ;;  %v4451_v4 = vsel %vm1571_vm13, %v3101_v3, -inf  ;;  %v4453_v5 = vpop.f32.mrb[21].mxu0 }
 0x2b0   : > { %v1599_v6 = vsel %vm1588_vm3, %v4451_v4, -inf  ;;  %v1598_v7 = vsel %vm1588_vm3, %v4453_v5, -inf }
 0x2b1   : > { %v1593_v8 = vmax.f32 %v1591_v2, %v1592_v56  ;;  %v1600_v12 = vmax.f32 %v1598_v7, %v1599_v6 }
 0x2b2   : > { %v3104_v17 = vpop.f32.mrb[22].mxu0 }
 0x2b3   : > { %v1594_v24 = vrot.slane %v1593_v8, 2  ;;  %v1601_v29 = vrot.slane %v1600_v12, 4  ;;  %v4461_v36 = vsel %vm1571_vm13, %v3104_v17, -inf  ;;  %v4463_v37 = vpop.f32.mrb[23].mxu0 }
 0x2b4   : > { %v1608_v40 = vsel %vm1588_vm3, %v4461_v36, -inf  ;;  %v1607_v41 = vsel %vm1588_vm3, %v4463_v37, -inf }
 0x2b5   : > { %v1595_v42 = vmax.f32 %v1593_v8, %v1594_v24  ;;  %v1602_v44 = vmax.f32 %v1600_v12, %v1601_v29  ;;  %v1609_v10 = vmax.f32 %v1607_v41, %v1608_v40 }
 0x2b6   : > { %v3107_v18 = vpop.f32.mrb[24].mxu0 }
 0x2b7   : > { %v1603_v45 = vrot.slane %v1602_v44, 2  ;;  %v1610_v46 = vrot.slane %v1609_v10, 4  ;;  %v4471_v11 = vsel %vm1571_vm13, %v3107_v18, -inf  ;;  %v4473_v14 = vpop.f32.mrb[25].mxu0  ;;  %v1596_v15 = vrot.slane %v1595_v42, 1 }
 0x2b8   : > { %v1617_v16 = vsel %vm1588_vm3, %v4471_v11, -inf  ;;  %v1616_v21 = vsel %vm1588_vm3, %v4473_v14, -inf }
 0x2b9   : > { %v1604_v26 = vmax.f32 %v1602_v44, %v1603_v45  ;;  %v1611_v27 = vmax.f32 %v1609_v10, %v1610_v46  ;;  %v1618_v32 = vmax.f32 %v1616_v21, %v1617_v16  ;;  %v1597_v47 = vmax.f32 %v1595_v42, %v1596_v15 }
 0x2ba   : > { %v3110_v33 = vpop.f32.mrb[26].mxu0 }
 0x2bb   : > { %v1605_v38 = vrot.slane %v1604_v26, 1  ;;  %v1612_v48 = vrot.slane %v1611_v27, 2  ;;  %v1619_v57 = vrot.slane %v1618_v32, 4  ;;  %v4481_v58 = vsel %vm1571_vm13, %v3110_v33, -inf  ;;  %v4483_v59 = vpop.f32.mrb[27].mxu0 }
 0x2bc   : > { %v1626_v62 = vsel %vm1588_vm3, %v4481_v58, -inf  ;;  %v1625_v63 = vsel %vm1588_vm3, %v4483_v59, -inf }
 0x2bd   : > { %v1606_v2 = vmax.f32 %v1604_v26, %v1605_v38  ;;  %v1613_v3 = vmax.f32 %v1611_v27, %v1612_v48  ;;  %v1620_v56 = vmax.f32 %v1618_v32, %v1619_v57  ;;  %v1627_v6 = vmax.f32 %v1625_v63, %v1626_v62 }
 0x2be   : > { %v3113_v7 = vpop.f32.mrb[28].mxu0 }
 0x2bf   : > { %v1669_v8 = vsel %vm520_vm2, %v1606_v2, %v1597_v47  ;;  %v1614_v12 = vrot.slane %v1613_v3, 1  ;;  %v1621_v17 = vrot.slane %v1620_v56, 2  ;;  %v1628_v24 = vrot.slane %v1627_v6, 4  ;;  %v4490_v29 = vpop.f32.mrb[29].mxu0 }
 0x2c0   : > { %v4494_v40 = vsel %vm1571_vm13, %v3113_v7, -inf  ;;  %v1634_v41 = vsel %vm1588_vm3, %v4490_v29, -inf }
 0x2c1   : > { %v1615_v42 = vmax.f32 %v1613_v3, %v1614_v12  ;;  %v1622_v44 = vmax.f32 %v1620_v56, %v1621_v17  ;;  %v1629_v10 = vmax.f32 %v1627_v6, %v1628_v24  ;;  %v1635_v18 = vsel %vm1588_vm3, %v4494_v40, -inf }
 0x2c2   : > { %v1636_v45 = vmax.f32 %v1634_v41, %v1635_v18  ;;  %v3116_v46 = vpop.f32.mrb[30].mxu0 }
 0x2c3   : > { %v1670_v15 = vsel %vm4854_vm14, %v1615_v42, %v1669_v8  ;;  %v1623_v16 = vrot.slane %v1622_v44, 1  ;;  %v1630_v21 = vrot.slane %v1629_v10, 2  ;;  %v4503_v26 = vsel %vm1571_vm13, %v3116_v46, -inf  ;;  %v4505_v27 = vpop.f32.mrb[31].mxu0  ;;  %vm4874_vm14 = vmmov %vm4863_vm7 }
 0x2c4   : > { %v1637_v32 = vrot.slane %v1636_v45, 4  ;;  %v1644_v33 = vsel %vm1588_vm3, %v4503_v26, -inf  ;;  %v1643_v38 = vsel %vm1588_vm3, %v4505_v27, -inf }
 0x2c5   : > { %v1624_v48 = vmax.f32 %v1622_v44, %v1623_v16  ;;  %v1631_v57 = vmax.f32 %v1629_v10, %v1630_v21  ;;  %v1645_v47 = vmax.f32 %v1643_v38, %v1644_v33 }
 0x2c6   : > { %v1638_v62 = vmax.f32 %v1636_v45, %v1637_v32  ;;  %v3119_v63 = vpop.f32.mrb[32].mxu0 }
 0x2c7   : > { %v1671_v2 = vsel %vm4855_vm15, %v1624_v48, %v1670_v15  ;;  %v1632_v3 = vrot.slane %v1631_v57, 1  ;;  %v1646_v56 = vrot.slane %v1645_v47, 4  ;;  %v4514_v6 = vsel %vm1571_vm13, %v3119_v63, -inf  ;;  %v4516_v7 = vpop.f32.mrb[33].mxu0  ;;  %vm4865_vm13 = vmmov %vm4859_vm10 }
 0x2c8   : > { %v1639_v8 = vrot.slane %v1638_v62, 2  ;;  %v1653_v12 = vsel %vm1588_vm3, %v4514_v6, -inf  ;;  %v1652_v17 = vsel %vm1588_vm3, %v4516_v7, -inf  ;;  %vm4875_vm15 = vmmov %vm4858_vm6 }
 0x2c9   : > { %v1633_v24 = vmax.f32 %v1631_v57, %v1632_v3  ;;  %v1647_v41 = vmax.f32 %v1645_v47, %v1646_v56  ;;  %v1654_v42 = vmax.f32 %v1652_v17, %v1653_v12 }
 0x2ca   : > { %v1640_v44 = vmax.f32 %v1638_v62, %v1639_v8 }
 0x2cb   : > { %v1672_v10 = vsel %vm4856_vm9, %v1633_v24, %v1671_v2  ;;  %v1648_v18 = vrot.slane %v1647_v41, 2  ;;  %v1655_v45 = vrot.slane %v1654_v42, 4  ;;  %vm4876_vm9 = vmmov %vm4859_vm10 }
 0x2cc   : > { %v1641_v19 = vrot.slane %v1640_v44, 1 }
 0x2cd   : > { %v1649_v46 = vmax.f32 %v1647_v41, %v1648_v18  ;;  %v1656_v15 = vmax.f32 %v1654_v42, %v1655_v45 }
 0x2ce   : > { %v1642_v16 = vmax.f32 %v1640_v44, %v1641_v19 }
 0x2cf   : > { %v1650_v21 = vrot.slane %v1649_v46, 1  ;;  %v1657_v32 = vrot.slane %v1656_v15, 2 }
 0x2d0   : > { %v1673_v33 = vsel %vm4857_vm8, %v1642_v16, %v1672_v10  ;;  %vm2500_vm8 = vcmask 785408  }
 0x2d1   : > { %v1651_v38 = vmax.f32 %v1649_v46, %v1650_v21  ;;  %v1658_v48 = vmax.f32 %v1656_v15, %v1657_v32 }
 0x2d3   : > { %v1674_v63 = vsel %vm4858_vm6, %v1651_v38, %v1673_v33  ;;  %v1659_v57 = vrot.slane %v1658_v48, 1 }
 0x2d5   : > { %v1660_v47 = vmax.f32 %v1658_v48, %v1659_v57 }
 0x2d7   : > { %v1675_v62 = vsel %vm4859_vm10, %v1660_v47, %v1674_v63 }
 0x2d8   : > { %v4527_v2 = vmax.f32 %v4419_v39, %v1675_v62 }
 0x2da   : > { %v1678_v3 = vsub.f32 %v4419_v39, %v4527_v2  ;;  %v1682_v56 = vcombine.high %v4527_v2, %v4527_v2  ;;  %v1689_v8 = vrot.slane %v4527_v2, %v4294_v13 }
 0x2dc   : > { %v1696_v12 = vrot.slane %v1682_v56, %v4294_v13  ;;  %v1697_v17 = vcombine.high %v1689_v8, %v1689_v8  ;;  %v1705_v24 = vrot.slane %v1689_v8, %v4294_v13 }
 0x2de   : > { %v1698_v41 = vcombine.high %v1696_v12, %v1696_v12  ;;  %v1712_v42 = vrot.slane %v1696_v12, %v4294_v13  ;;  %v1719_v44 = vrot.slane %v1697_v17, %v4294_v13  ;;  %v1727_v10 = vcombine.high %v1705_v24, %v1705_v24 }
 0x2df   : > { %v1734_v18 = vrot.slane %v1705_v24, %v4305_v28 }
 0x2e0   : > { %v1726_v45 = vrot.slane %v1698_v41, %v4294_v13  ;;  %v1728_v19 = vcombine.high %v1712_v42, %v1712_v42  ;;  %v1729_v46 = vcombine.high %v1719_v44, %v1719_v44  ;;  %v1738_v15 = vrot.slane %v1719_v44, %v4305_v28 }
 0x2e1   : > { %v1742_v16 = vrot.slane %v1727_v10, %v4305_v28  ;;  %v1750_v21 = vrot.slane %v1712_v42, %v4305_v28  ;;  %v1771_v32 = vsub.f32 %v4443_v61, %v1734_v18  ;;  %v1772_v33 = vsub.f32 %v4441_v53, %v1734_v18 }
 0x2e2   : > { %v1730_v38 = vcombine.high %v1726_v45, %v1726_v45  ;;  %v1746_v48 = vrot.slane %v1729_v46, %v4305_v28  ;;  %v1754_v63 = vrot.slane %v1726_v45, %v4305_v28  ;;  %v1758_v57 = vrot.slane %v1728_v19, %v4305_v28 }
 0x2e3   : > { %v1773_v47 = vsub.f32 %v4453_v5, %v1738_v15  ;;  %v1774_v62 = vsub.f32 %v4451_v4, %v1738_v15  ;;  %v1775_v56 = vsub.f32 %v4463_v37, %v1742_v16  ;;  %v1776_v8 = vsub.f32 %v4461_v36, %v1742_v16 }
 0x2e4   : > { %v1762_v12 = vrot.slane %v1730_v38, %v4305_v28  ;;  %v1777_v61 = vsub.f32 %v4473_v14, %v1746_v48  ;;  %v1778_v53 = vsub.f32 %v4471_v11, %v1746_v48  ;;  %v1779_v17 = vsub.f32 %v4483_v59, %v1750_v21 }
 0x2e5   : > { %v1780_v24 = vsub.f32 %v4481_v58, %v1750_v21  ;;  %v1781_v41 = vsub.f32 %v4490_v29, %v1754_v63  ;;  %v1782_v5 = vsub.f32 %v4494_v40, %v1754_v63  ;;  %v1783_v4 = vsub.f32 %v4505_v27, %v1758_v57 }
 0x2e6   : > { %v1784_v37 = vsub.f32 %v4503_v26, %v1758_v57  ;;  %v1785_v36 = vsub.f32 %v4516_v7, %v1762_v12  ;;  %v1786_v42 = vsub.f32 %v4514_v6, %v1762_v12  ;;  %v1787_v44 = vmul.f32 1.442695, %v1771_v32 }
 0x2e7   : > { %v1789_v14 = vmul.f32 1.442695, %v1772_v33  ;;  %v1791_v10 = vmul.f32 1.442695, %v1773_v47  ;;  %v1793_v11 = vmul.f32 1.442695, %v1774_v62 }
 0x2e8   : > { %3450 = vpow2.f32 %v1787_v44  ;;  %v1795_v59 = vmul.f32 1.442695, %v1775_v56  ;;  %v1797_v58 = vmul.f32 1.442695, %v1776_v8  ;;  %v1799_v29 = vmul.f32 1.442695, %v1777_v61 }
 0x2e9   : > { %3452 = vpow2.f32 %v1789_v14  ;;  %v1801_v40 = vmul.f32 1.442695, %v1778_v53  ;;  %v1803_v27 = vmul.f32 1.442695, %v1779_v17  ;;  %v1805_v26 = vmul.f32 1.442695, %v1780_v24 }
 0x2ea   : > { %3454 = vpow2.f32 %v1791_v10  ;;  %v1807_v7 = vmul.f32 1.442695, %v1781_v41  ;;  %v1809_v6 = vmul.f32 1.442695, %v1782_v5  ;;  %v1811_v18 = vmul.f32 1.442695, %v1783_v4 }
 0x2eb   : > { %3456 = vpow2.f32 %v1793_v11  ;;  %v1813_v45 = vmul.f32 1.442695, %v1784_v37  ;;  %v1815_v46 = vmul.f32 1.442695, %v1785_v36  ;;  %v1817_v16 = vmul.f32 1.442695, %v1786_v42 }
 0x2ec   : > { %3458 = vpow2.f32 %v1795_v59 }
 0x2ed   : > { %3460 = vpow2.f32 %v1797_v58 }
 0x2ee   : > { %3462 = vpow2.f32 %v1799_v29 }
 0x2ef   : > { %3464 = vpow2.f32 %v1801_v40 }
 0x2f0   : > { %3466 = vpow2.f32 %v1803_v27 }
 0x2f1   : > { %3468 = vpow2.f32 %v1805_v26 }
 0x2f2   : > { %v4564_v19 = vpop.eup %3450  ;;  %3470 = vpow2.f32 %v1807_v7 }
 0x2f3   : > { %v4566_v15 = vpop.eup %3452  ;;  %3472 = vpow2.f32 %v1809_v6  ;;  %v1819_v21 = vsel %vm1588_vm3, %v4564_v19, 0.0 }
 0x2f4   : > { %v4570_v32 = vpop.eup %3454  ;;  %3474 = vpow2.f32 %v1811_v18  ;;  %v1820_v33 = vsel %vm1588_vm3, %v4566_v15, 0.0 }
 0x2f5   : > { %v4574_v38 = vpop.eup %3456  ;;  %3476 = vpow2.f32 %v1813_v45  ;;  %v1821_v48 = vadd.f32 %v1820_v33, %v1819_v21  ;;  %v1828_v63 = vsel %vm1588_vm3, %v4570_v32, 0.0 }
 0x2f6   : > { %v4578_v57 = vpop.eup %3458  ;;  %3478 = vpow2.f32 %v1815_v46  ;;  %v1829_v47 = vsel %vm1588_vm3, %v4574_v38, 0.0 }
 0x2f7   : > { %v4582_v62 = vpop.eup %3460  ;;  %3480 = vpow2.f32 %v1817_v16  ;;  %v1822_v56 = vrot.slane %v1821_v48, 4  ;;  %v1830_v8 = vadd.f32 %v1829_v47, %v1828_v63  ;;  %v1837_v12 = vsel %vm1588_vm3, %v4578_v57, 0.0 }
 0x2f8   : > { %v4586_v61 = vpop.eup %3462  ;;  %v1838_v53 = vsel %vm1588_vm3, %v4582_v62, 0.0 }
 0x2f9   : > { %v4590_v17 = vpop.eup %3464  ;;  %v1823_v24 = vadd.f32 %v1822_v56, %v1821_v48  ;;  %v1831_v41 = vrot.slane %v1830_v8, 4  ;;  %v1839_v5 = vadd.f32 %v1838_v53, %v1837_v12  ;;  %v1846_v4 = vsel %vm1588_vm3, %v4586_v61, 0.0 }
 0x2fa   : > { %v4594_v37 = vpop.eup %3466  ;;  %v1847_v36 = vsel %vm1588_vm3, %v4590_v17, 0.0 }
 0x2fb   : > { %v4598_v42 = vpop.eup %3468  ;;  %v1824_v44 = vrot.slane %v1823_v24, 2  ;;  %v1832_v14 = vadd.f32 %v1831_v41, %v1830_v8  ;;  %v1840_v10 = vrot.slane %v1839_v5, 4  ;;  %v1855_v11 = vsel %vm1588_vm3, %v4594_v37, 0.0 }
 0x2fc   : > { %v4602_v59 = vpop.eup %3470  ;;  %v1856_v58 = vsel %vm1588_vm3, %v4598_v42, 0.0  ;;  %v1848_v29 = vadd.f32 %v1847_v36, %v1846_v4 }
 0x2fd   : > { %v4606_v40 = vpop.eup %3472  ;;  %v1825_v27 = vadd.f32 %v1824_v44, %v1823_v24  ;;  %v1833_v26 = vrot.slane %v1832_v14, 2  ;;  %v1857_v7 = vadd.f32 %v1856_v58, %v1855_v11  ;;  %v1864_v6 = vsel %vm1588_vm3, %v4602_v59, 0.0 }
 0x2fe   : > { %v4610_v18 = vpop.eup %3474  ;;  %v1865_v45 = vsel %vm1588_vm3, %v4606_v40, 0.0  ;;  %v1841_v46 = vadd.f32 %v1840_v10, %v1839_v5  ;;  %v1849_v16 = vrot.slane %v1848_v29, 4  ;;  %v1679_v10 = vmul.f32 1.442695, %v1678_v3 }
 0x2ff   : > { %v4614_v21 = vpop.eup %3476  ;;  %v1858_v33 = vrot.slane %v1857_v7, 4  ;;  %v1866_v48 = vadd.f32 %v1865_v45, %v1864_v6  ;;  %v1873_v63 = vsel %vm1588_vm3, %v4610_v18, 0.0  ;;  %v1826_v47 = vrot.slane %v1825_v27, 1 }
 0x300   : > { %v4618_v56 = vpop.eup %3478  ;;  %v1874_v8 = vsel %vm1588_vm3, %v4614_v21, 0.0  ;;  %v1834_v12 = vadd.f32 %v1833_v26, %v1832_v14  ;;  %v1842_v53 = vrot.slane %v1841_v46, 2  ;;  %v1850_v24 = vadd.f32 %v1849_v16, %v1848_v29 }
 0x301   : > { %v4622_v41 = vpop.eup %3480  ;;  %v1859_v5 = vadd.f32 %v1858_v33, %v1857_v7  ;;  %v1867_v4 = vrot.slane %v1866_v48, 4  ;;  %v1875_v36 = vadd.f32 %v1874_v8, %v1873_v63  ;;  %v1882_v44 = vsel %vm1588_vm3, %v4618_v56, 0.0 }
 0x302   : > { %v1883_v11 = vsel %vm1588_vm3, %v4622_v41, 0.0  ;;  %v1835_v58 = vrot.slane %v1834_v12, 1  ;;  %v1843_v6 = vadd.f32 %v1842_v53, %v1841_v46  ;;  %v1851_v45 = vrot.slane %v1850_v24, 2 }
 0x303   : > { %v1860_v14 = vrot.slane %v1859_v5, 2  ;;  %v1868_v26 = vadd.f32 %v1867_v4, %v1866_v48  ;;  %v1884_v29 = vadd.f32 %v1883_v11, %v1882_v44  ;;  %v1827_v16 = vadd.f32 %v1826_v47, %v1825_v27 }
 0x304   : > { %v1836_v7 = vadd.f32 %v1835_v58, %v1834_v12  ;;  %v1844_v33 = vrot.slane %v1843_v6, 1  ;;  %v1876_v63 = vrot.slane %v1875_v36, 4  ;;  %v1852_v55 = vadd.f32 %v1851_v45, %v1850_v24 }
 0x305   : > { %v1861_v8 = vadd.f32 %v1860_v14, %v1859_v5  ;;  %v1869_v0 = vrot.slane %v1868_v26, 2  ;;  %v1885_v1 = vrot.slane %v1884_v29, 4  ;;  %3482 = vpow2.f32 %v1679_v10 }
 0x306   : > { %v1845_v39 = vadd.f32 %v1844_v33, %v1843_v6  ;;  %v1877_v2 = vadd.f32 %v1876_v63, %v1875_v36  ;;  %v1899_v3 = vsel %vm520_vm2, %v1836_v7, %v1827_v16  ;;  %v1853_v46 = vrot.slane %v1852_v55, 1 }
 0x307   : > { %v1870_v54 = vadd.f32 %v1869_v0, %v1868_v26  ;;  %v1886_v35 = vadd.f32 %v1885_v1, %v1884_v29  ;;  %v1862_v53 = vrot.slane %v1861_v8, 1 }
 0x308   : > { %v1878_v48 = vrot.slane %v1877_v2, 2  ;;  %v1900_v4 = vsel %vm4860_vm11, %v1845_v39, %v1899_v3  ;;  %v1854_v12 = vadd.f32 %v1853_v46, %v1852_v55  ;;  %v4866_v46 = vmov 0.0  }
 0x309   : > { %v1871_v27 = vrot.slane %v1870_v54, 1  ;;  %v1887_v47 = vrot.slane %v1886_v35, 2  ;;  %v1863_v44 = vadd.f32 %v1862_v53, %v1861_v8 }
 0x30a   : > { %v1879_v5 = vadd.f32 %v1878_v48, %v1877_v2  ;;  %v1901_v24 = vsel %vm4861_vm5, %v1854_v12, %v1900_v4 }
 0x30b   : > { %v1872_v11 = vadd.f32 %v1871_v27, %v1870_v54  ;;  %v1888_v58 = vadd.f32 %v1887_v47, %v1886_v35  ;;  %v1902_v36 = vsel %vm4862_vm4, %v1863_v44, %v1901_v24 }
 0x30c   : > { %v1880_v10 = vrot.slane %v1879_v5, 1 }
 0x30d   : > { %v1889_v6 = vrot.slane %v1888_v58, 1  ;;  %v1903_v0 = vsel %vm4863_vm7, %v1872_v11, %v1902_v36 }
 0x30e   : > { %v1881_v1 = vadd.f32 %v1880_v10, %v1879_v5 }
 0x30f   : > { %v1890_v14 = vadd.f32 %v1889_v6, %v1888_v58  ;;  %v3483_v26 = vpop.eup %3482 }
 0x310   : > { %v1904_v29 = vsel %vm4864_vm12, %v1881_v1, %v1903_v0 }
 0x311   : > { %v1905_v45 = vsel %vm4865_vm13, %v1890_v14, %v1904_v29 }
 0x312   : > { %v1907_v55 = vadd.f32 %v3483_v26, %v1905_v45 }
 0x314   : > { %3484 = vrcp.f32 %v1907_v55 }
 0x31e   : > { %v3485_v16 = vpop.eup %3484 }
 0x31f   : > { %v1909_v54 = vmul.f32 %v3485_v16, %v1907_v55 }
 0x321   : > { %v1910_v35 = vsub.f32 2.0, %v1909_v54  ;;  %v2420_v54 = vld [vmem:[#allocation10 + $0x28] sm:$0xff] }
 0x323   : > { %v1911_v7 = vmul.f32 %v3485_v16, %v1910_v35 }
 0x325   : > { %v1912_v33 = vmul.f32 %v3483_v26, %v1911_v7  ;;  %v1921_v63 = vrot.slane %v1911_v7, %v4294_v13  ;;  %v1914_v8 = vcombine.high %v1911_v7, %v1911_v7  ;;  %v2421_v7 = vld [vmem:[#allocation10 + $0x30] sm:$0xff] }
 0x327   : > { %3137 = vmatmul.mubr.msk.f32.vlgmr.msra.gmra.mrb[22].mxu1 %vm1588_vm3, %v1912_v33  ;;  %v1937_v39 = vrot.slane %v1921_v63, %v4294_v13  ;;  %v1929_v2 = vcombine.high %v1921_v63, %v1921_v63  ;;  %v1928_v3 = vrot.slane %v1914_v8, %v4294_v13  ;;  %v2422_v33 = vld [vmem:[#allocation10 + $0x38] sm:$0xff]  ;;  %v2658_v8 = vld [vmem:[%s4816_s7 + $0x2] ss:$0 sm:$0xff] }
 0x328   : > { %3195 = vmatprep.mubr.msk.f32.mxu1 %vm3745_vm0, %v4866_v46  ;;  %v3344_v63 = vpack.c.bf16 %v2422_v33, %v2421_v7  ;;  %vm4869_vm0 = vmmov %vm4860_vm11 }
 0x329   : > { %v1966_v53 = vrot.slane %v1937_v39, %v4305_v28  ;;  %v1951_v48 = vrot.slane %v1929_v2, %v4294_v13  ;;  %v1959_v4 = vcombine.high %v1937_v39, %v1937_v39  ;;  %v1944_v27 = vrot.slane %v1928_v3, %v4294_v13 }
 0x32a   : > { %v1930_v47 = vcombine.high %v1928_v3, %v1928_v3  ;;  %v767_v39 = vadd.f32 %v2658_v8, %v4285_v60 }
 0x32b   : > { %v2003_v12 = vmul.f32 %v4564_v19, %v1966_v53  ;;  %v2004_v44 = vmul.f32 %v4566_v15, %v1966_v53  ;;  %v1970_v5 = vrot.slane %v1951_v48, %v4305_v28  ;;  %v1974_v11 = vrot.slane %v1959_v4, %v4305_v28  ;;  %v4696_v53 = vld [vmem:[#allocation11 + $0x8] sm:$0xff] }
 0x32c   : > { %v1961_v58 = vcombine.high %v1951_v48, %v1951_v48  ;;  %v1982_v24 = vrot.slane %v1944_v27, %v4305_v28  ;;  %v1958_v10 = vrot.slane %v1930_v47, %v4294_v13  ;;  %v1960_v36 = vcombine.high %v1944_v27, %v1944_v27  ;;  %v4698_v48 = vld [vmem:[#allocation11] sm:$0xff] }
 0x32d   : > { %3155 = vmatprep.mubr.msk.f32.mxu0 %vm1588_vm3, %v2003_v12  ;;  %v2005_v6 = vmul.f32 %v4570_v32, %v1970_v5  ;;  %v2006_v0 = vmul.f32 %v4574_v38, %v1970_v5  ;;  %v2007_v19 = vmul.f32 %v4578_v57, %v1974_v11  ;;  %v2008_v15 = vmul.f32 %v4582_v62, %v1974_v11 }
 0x32e   : > { %3156 = vmatmul.mubr.msk.f32.vlgmr.msra.gmra.mrb[34].mxu0 %vm1588_vm3, %v2004_v44  ;;  %v1978_v1 = vrot.slane %v1961_v58, %v4305_v28  ;;  %v2011_v14 = vmul.f32 %v4594_v37, %v1982_v24  ;;  %v2012_v26 = vmul.f32 %v4598_v42, %v1982_v24  ;;  %v1986_v13 = vrot.slane %v1958_v10, %v4305_v28 }
 0x32f   : > { %3158 = vmatprep.mubr.msk.f32.mxu0 %vm1588_vm3, %v2005_v6  ;;  %v1990_v32 = vrot.slane %v1960_v36, %v4305_v28  ;;  %v1962_v29 = vcombine.high %v1958_v10, %v1958_v10  ;;  %v1129_v4 = vadd.f32 %v4300_v22, %v4696_v53  ;;  %v1128_v27 = vadd.f32 %v4698_v48, %v4302_v23 }
 0x330   : > { %v2009_v38 = vmul.f32 %v4586_v61, %v1978_v1  ;;  %v2010_v57 = vmul.f32 %v4590_v17, %v1978_v1  ;;  %v2013_v62 = vmul.f32 %v4602_v59, %v1986_v13  ;;  %v2014_v45 = vmul.f32 %v4606_v40, %v1986_v13  ;;  %v2416_v17 = vld [vmem:[#allocation10 + $0x8] sm:$0xff] }
 0x331   : > { %v2015_v55 = vmul.f32 %v4610_v18, %v1990_v32  ;;  %v2016_v37 = vmul.f32 %v4614_v21, %v1990_v32  ;;  %v1994_v42 = vrot.slane %v1962_v29, %v4305_v28  ;;  %v2415_v28 = vld [vmem:[#allocation10] sm:$0xff]  ;;  %v4867_v40 = vmov 0.0|0.0   ;;  %v2417_v18 = vld [vmem:[#allocation10 + $0x10] sm:$0xff]  ;;  %v2418_v21 = vld [vmem:[#allocation10 + $0x18] sm:$0xff] }
 0x332   : > { %3159 = vmatmul.mubr.msk.f32.gmra.mrb[36].mxu0 %vm1588_vm3, %v2006_v0  ;;  %v3335_v59 = vpack.c.bf16 %v2416_v17, %v2415_v28  ;;  %v1131_v60 = vadd.f32 %v4308_v30, %v4696_v53  ;;  %v1130_v58 = vadd.f32 %v4698_v48, %v4315_v34  ;;  %v1133_v23 = vadd.f32 %v4325_v43, %v4696_v53 }
 0x333   : > { %3161 = vmatprep.mubr.msk.f32.mxu0 %vm1588_vm3, %v2007_v19  ;;  %v2017_v16 = vmul.f32 %v4618_v56, %v1994_v42  ;;  %v2018_v61 = vmul.f32 %v4622_v41, %v1994_v42  ;;  %v3338_v56 = vpack.c.bf16 %v2418_v21, %v2417_v18  ;;  %v2419_v41 = vld [vmem:[#allocation10 + $0x20] sm:$0xff]  ;;  %v1132_v30 = vadd.f32 %v4698_v48, %v4328_v9 }
 0x334   : > { %3336 = vmatpush3.bf16.msra.mxu1 %v3335_v59  ;;  %v3341_v35 = vpack.c.bf16 %v2420_v54, %v2419_v41  ;;  %v1137_v18 = vadd.f32 %v4374_v49, %v4696_v53  ;;  %v1136_v21 = vadd.f32 %v4698_v48, %v4376_v50  ;;  %v1138_v49 = vadd.f32 %v4698_v48, %v4380_v51 }
 0x335   : > { %3337 = vmatprep.subr.bf16.mxu1 %v4867_v40  ;;  %v1141_v51 = vadd.f32 %v4382_v52, %v4696_v53 }
 0x336   : > { %3162 = vmatmul.mubr.msk.f32.gmra.mrb[38].mxu0 %vm1588_vm3, %v2008_v15 }
 0x337   : > { %3164 = vmatprep.mubr.msk.f32.mxu0 %vm1588_vm3, %v2009_v38  ;;  %v1135_v38 = vadd.f32 %v4332_v20, %v4696_v53 }
 0x338   : > { %3339 = vmatpush3.bf16.msra.mxu1 %v3338_v56 }
 0x339   : > { %3340 = vmatprep.subr.bf16.mxu1 %v4867_v40 }
 0x33a   : > { %3165 = vmatmul.mubr.msk.f32.gmra.mrb[40].mxu0 %vm1588_vm3, %v2010_v57 }
 0x33b   : > { %3167 = vmatprep.mubr.msk.f32.mxu0 %vm1588_vm3, %v2011_v14 }
 0x33c   : > { %3342 = vmatpush3.bf16.msra.mxu1 %v3341_v35 }
 0x33d   : > { %3343 = vmatprep.subr.bf16.mxu1 %v4867_v40 }
 0x33e   : > { %3168 = vmatmul.mubr.msk.f32.gmra.mrb[42].mxu0 %vm1588_vm3, %v2012_v26 }
 0x33f   : > { %3170 = vmatprep.mubr.msk.f32.mxu0 %vm1588_vm3, %v2013_v62 }
 0x340   : > { %3345 = vmatpush3.bf16.msra.mxu1 %v3344_v63 }
 0x342   : > { %3171 = vmatmul.mubr.msk.f32.gmra.mrb[44].mxu0 %vm1588_vm3, %v2014_v45  ;;  %v1134_v45 = vadd.f32 %v4698_v48, %v4336_v25 }
 0x343   : > { %3173 = vmatprep.mubr.msk.f32.mxu0 %vm1588_vm3, %v2015_v55 }
 0x346   : > { %3174 = vmatmul.mubr.msk.f32.gmra.mrb[46].mxu0 %vm1588_vm3, %v2016_v37 }
 0x347   : > { %3176 = vmatprep.mubr.msk.f32.mxu0 %vm1588_vm3, %v2017_v16 }
 0x34a   : > { %3177 = vmatmul.mubr.msk.f32.gmra.mrb[48].mxu0 %vm1588_vm3, %v2018_v61  ;;  %vm4873_vm3 = vmmov %vm4862_vm4 }
 0x3fa   : > { %v2112_v2 = vpop.f32.mrb[22].mxu1 }
 0x3fb   : > { %v4694_v3 = vmul.f32 %v2112_v2, %v767_v39  ;;  %v3138_v46 = vpop.f32.mrb[23].mxu1  ;;  %v1139_v39 = vadd.f32 %v4378_v31, %v4696_v53 }
 0x401   : > { %v3157_v47 = vpop.f32.mrb[34].mxu0 }
 0x402   : > { %v2311_v12 = vmul.f32 %v3157_v47, %v1129_v4  ;;  %v2231_v44 = vpop.f32.mrb[35].mxu0 }
 0x403   : > { %v2310_v5 = vmul.f32 %v2231_v44, %v1128_v27 }
 0x404   : > { %v2327_v11 = vsel %vm415_vm1, %v2311_v12, 0.0 }
 0x405   : > { %v2326_v24 = vsel %vm415_vm1, %v2310_v5, 0.0  ;;  %v3160_v10 = vpop.f32.mrb[36].mxu0 }
 0x406   : > { %v2328_v36 = vadd.f32 %v2327_v11, %v2326_v24  ;;  %v2313_v22 = vmul.f32 %v3160_v10, %v1131_v60  ;;  %v2241_v6 = vpop.f32.mrb[37].mxu0 }
 0x407   : > { %v2312_v0 = vmul.f32 %v2241_v6, %v1130_v58 }
 0x408   : > { %v2329_v19 = vrot.slane %v2328_v36, 4  ;;  %v2336_v15 = vsel %vm415_vm1, %v2313_v22, 0.0 }
 0x409   : > { %v2335_v1 = vsel %vm415_vm1, %v2312_v0, 0.0  ;;  %v3163_v14 = vpop.f32.mrb[38].mxu0  ;;  %v4868_v0 = vld [vmem:[#allocation19_spill] sm:$0xff] }
 0x40a   : > { %v2330_v34 = vadd.f32 %v2329_v19, %v2328_v36  ;;  %v2337_v26 = vadd.f32 %v2336_v15, %v2335_v1  ;;  %v2315_v13 = vmul.f32 %v3163_v14, %v1133_v23  ;;  %v2251_v32 = vpop.f32.mrb[39].mxu0  ;;  %v1140_v23 = vadd.f32 %v4698_v48, %v4868_v0 }
 0x40b   : > { %v2314_v29 = vmul.f32 %v2251_v32, %v1132_v30 }
 0x40c   : > { %v2331_v57 = vrot.slane %v2330_v34, 2  ;;  %v2338_v62 = vrot.slane %v2337_v26, 4  ;;  %v2345_v43 = vsel %vm415_vm1, %v2315_v13, 0.0 }
 0x40d   : > { %v2344_v9 = vsel %vm415_vm1, %v2314_v29, 0.0  ;;  %v3166_v55 = vpop.f32.mrb[40].mxu0 }
 0x40e   : > { %v2332_v37 = vadd.f32 %v2331_v57, %v2330_v34  ;;  %v2339_v42 = vadd.f32 %v2338_v62, %v2337_v26  ;;  %v2346_v16 = vadd.f32 %v2345_v43, %v2344_v9  ;;  %v2317_v61 = vmul.f32 %v3166_v55, %v1135_v38  ;;  %v2261_v28 = vpop.f32.mrb[41].mxu0  ;;  %v4870_v43 = vld [vmem:[#allocation20_spill] sm:$0xff]  ;;  %v4871_v9 = vld [vmem:[#allocation21_spill] sm:$0xff] }
 0x40f   : > { %v2316_v17 = vmul.f32 %v2261_v28, %v1134_v45  ;;  %v1143_v45 = vadd.f32 %v4870_v43, %v4696_v53  ;;  %v1142_v55 = vadd.f32 %v4698_v48, %v4871_v9 }
 0x410   : > { %v2340_v59 = vrot.slane %v2339_v42, 2  ;;  %v2347_v40 = vrot.slane %v2346_v16, 4  ;;  %v2354_v20 = vsel %vm415_vm1, %v2317_v61, 0.0  ;;  %v2333_v25 = vrot.slane %v2332_v37, 1 }
 0x411   : > { %v2353_v56 = vsel %vm415_vm1, %v2316_v17, 0.0  ;;  %v3169_v41 = vpop.f32.mrb[42].mxu0 }
 0x412   : > { %v2341_v54 = vadd.f32 %v2340_v59, %v2339_v42  ;;  %v2348_v35 = vadd.f32 %v2347_v40, %v2346_v16  ;;  %v2355_v7 = vadd.f32 %v2354_v20, %v2353_v56  ;;  %v2271_v33 = vpop.f32.mrb[43].mxu0  ;;  %v2319_v63 = vmul.f32 %v3169_v41, %v1137_v18 }
 0x413   : > { %v2318_v8 = vmul.f32 %v2271_v33, %v1136_v21  ;;  %v2334_v50 = vadd.f32 %v2333_v25, %v2332_v37 }
 0x414   : > { %v2342_v2 = vrot.slane %v2341_v54, 1  ;;  %v2349_v46 = vrot.slane %v2348_v35, 2  ;;  %v2356_v4 = vrot.slane %v2355_v7, 4  ;;  %v2363_v27 = vsel %vm415_vm1, %v2319_v63, 0.0 }
 0x415   : > { %v2362_v47 = vsel %vm415_vm1, %v2318_v8, 0.0  ;;  %v3172_v12 = vpop.f32.mrb[44].mxu0 }
 0x416   : > { %v2343_v44 = vadd.f32 %v2342_v2, %v2341_v54  ;;  %v2350_v5 = vadd.f32 %v2349_v46, %v2348_v35  ;;  %v2357_v60 = vadd.f32 %v2356_v4, %v2355_v7  ;;  %v2364_v11 = vadd.f32 %v2363_v27, %v2362_v47  ;;  %v2281_v58 = vpop.f32.mrb[45].mxu0 }
 0x417   : > { %v2321_v24 = vmul.f32 %v3172_v12, %v1139_v39  ;;  %v2320_v10 = vmul.f32 %v2281_v58, %v1138_v49 }
 0x418   : > { %v2406_v31 = vsel %vm520_vm2, %v2343_v44, %v2334_v50  ;;  %v2351_v36 = vrot.slane %v2350_v5, 1  ;;  %v2358_v22 = vrot.slane %v2357_v60, 2  ;;  %v2365_v6 = vrot.slane %v2364_v11, 4  ;;  %vm4872_vm2 = vmmov %vm4861_vm5 }
 0x419   : > { %v2372_v19 = vsel %vm415_vm1, %v2321_v24, 0.0  ;;  %v2371_v15 = vsel %vm415_vm1, %v2320_v10, 0.0  ;;  %v3175_v30 = vpop.f32.mrb[46].mxu0  ;;  %v2766_v10 = vld [vmem:[%s4816_s7 + $0x3] ss:$0 sm:$0xff] }
 0x41a   : > { %v2352_v1 = vadd.f32 %v2351_v36, %v2350_v5  ;;  %v2359_v14 = vadd.f32 %v2358_v22, %v2357_v60  ;;  %v2366_v34 = vadd.f32 %v2365_v6, %v2364_v11  ;;  %v2373_v26 = vadd.f32 %v2372_v19, %v2371_v15  ;;  %v2291_v13 = vpop.f32.mrb[47].mxu0 }
 0x41b   : > { %v2323_v32 = vmul.f32 %v3175_v30, %v1141_v51  ;;  %v2322_v29 = vmul.f32 %v2291_v13, %v1140_v23 }
 0x41c   : > { %v2407_v38 = vsel %vm4869_vm0, %v2352_v1, %v2406_v31  ;;  %v2360_v57 = vrot.slane %v2359_v14, 1  ;;  %v2367_v62 = vrot.slane %v2366_v34, 2  ;;  %v2374_v52 = vrot.slane %v2373_v26, 4 }
 0x41d   : > { %v2381_v37 = vsel %vm415_vm1, %v2323_v32, 0.0  ;;  %v2380_v42 = vsel %vm415_vm1, %v2322_v29, 0.0  ;;  %v3178_v16 = vpop.f32.mrb[48].mxu0 }
 0x41e   : > { %v2361_v61 = vadd.f32 %v2360_v57, %v2359_v14  ;;  %v2368_v28 = vadd.f32 %v2367_v62, %v2366_v34  ;;  %v2375_v17 = vadd.f32 %v2374_v52, %v2373_v26  ;;  %v2382_v59 = vadd.f32 %v2381_v37, %v2380_v42  ;;  %v2301_v40 = vpop.f32.mrb[49].mxu0 }
 0x41f   : > { %v2325_v20 = vmul.f32 %v3178_v16, %v1143_v45  ;;  %v2324_v18 = vmul.f32 %v2301_v40, %v1142_v55 }
 0x420   : > { %v2408_v21 = vsel %vm4872_vm2, %v2361_v61, %v2407_v38  ;;  %v2369_v25 = vrot.slane %v2368_v28, 1  ;;  %v2376_v56 = vrot.slane %v2375_v17, 2  ;;  %v2383_v53 = vrot.slane %v2382_v59, 4 }
 0x421   : > { %v2390_v41 = vsel %vm415_vm1, %v2325_v20, 0.0  ;;  %v2389_v48 = vsel %vm415_vm1, %v2324_v18, 0.0 }
 0x422   : > { %v2370_v54 = vadd.f32 %v2369_v25, %v2368_v28  ;;  %v2377_v35 = vadd.f32 %v2376_v56, %v2375_v17  ;;  %v2384_v7 = vadd.f32 %v2383_v53, %v2382_v59  ;;  %v2391_v33 = vadd.f32 %v2390_v41, %v2389_v48 }
 0x424   : > { %v2409_v63 = vsel %vm4873_vm3, %v2370_v54, %v2408_v21  ;;  %v2378_v8 = vrot.slane %v2377_v35, 1  ;;  %v2385_v39 = vrot.slane %v2384_v7, 2  ;;  %v2392_v2 = vrot.slane %v2391_v33, 4 }
 0x426   : > { %v2379_v46 = vadd.f32 %v2378_v8, %v2377_v35  ;;  %v2386_v4 = vadd.f32 %v2385_v39, %v2384_v7  ;;  %v2393_v49 = vadd.f32 %v2392_v2, %v2391_v33 }
 0x428   : > { %v2410_v50 = vsel %vm4874_vm14, %v2379_v46, %v2409_v63  ;;  %v2387_v27 = vrot.slane %v2386_v4, 1  ;;  %v2394_v47 = vrot.slane %v2393_v49, 2 }
 0x42a   : > { %v2388_v12 = vadd.f32 %v2387_v27, %v2386_v4  ;;  %v2395_v44 = vadd.f32 %v2394_v47, %v2393_v49 }
 0x42c   : > { %v2411_v5 = vsel %vm4875_vm15, %v2388_v12, %v2410_v50  ;;  %v2396_v60 = vrot.slane %v2395_v44, 1 }
 0x42e   : > { %v2397_v11 = vadd.f32 %v2396_v60, %v2395_v44 }
 0x430   : > { %v2412_v58 = vsel %vm4876_vm9, %v2397_v11, %v2411_v5 }
 0x431   : > { %v2414_v24 = vadd.f32 %v2412_v58, %v4694_v3 }
 0x433   : > { %3196 = vmatmul.mubr.msk.f32.vlgmr.msra.gmra.mrb[24].mxu1 %vm415_vm1, %v2414_v24 }
 0x506   : > { %v2496_v31 = vpop.f32.mrb[24].mxu1 }
 0x507   : > { %v2497_v36 = vadd.f32 %v2766_v10, %v2496_v31  ;;  %v3197_v22 = vpop.f32.mrb[25].mxu1 }
 0x509   : > { %2501 = vst.msk [vmem:[%s397_s13] sm:$0xff] %vm2500_vm8, %v2497_v36 }
 0x50a   : > { %3669 = shalt.err (!%p3666_p8)
}
 0x50b   : > { %s3670_s14 = scalar_lea.hbm %s4765_s15, 128  ;;  %s3674_s25 = scalar_lea.hbm %s4817_s8, 256 }
 0x50c   : > { %p3671_p6 = scmp.ne.s32.totalorder %s4765_s15, %s3670_s14  ;;  %p3675_p3 = scmp.lt.u32.totalorder %s4765_s15, %s4817_s8 }
 0x50d   : > { %p3676_p5 = scmp.lt.u32.totalorder %s3674_s25, %s3670_s14  ;;  %p3678_p7 = scmp.lt.u32.totalorder %s3670_s14, %s4765_s15 }
 0x50e   : > { %p3672_p10 = pnand %p3671_p6, %p4877_p4 }
 0x50f   : > { %p3677_p9 = por %p3676_p5, %p3675_p3 }
 0x510   : > { %p3673_p11 = pneg %p3672_p10 }
 0x511   : > { %p3679_p12 = por %p3678_p7, %p3677_p9 }
 0x513   : > { %p3680_p1 = pnand %p3679_p12, %p3673_p11 }
 0x515   : > { %3683 = shalt.err (!%p3680_p1)
}
 0x516   : > { %3368 = dma.vmem_to_hbm [thread:$0]  (%p4877_p4), %s4767_s20, 128, %s4765_s15, %s2503_s16  }
 0x517 PF: > { %s2528_s19 = sand.u32 1, %s3722_s27   ;;  %p4878_p13 = scmp.ne.s32.totalorder %s4839_s24, 0 }
 0x518   : > { %p4879_p0 = scmp.ge.s32.totalorder %s3734_s30, 2  ;;  %s2529_s1 = scalar_lea.sflag [#allocation4], %s2528_s19 }
 0x51a   : > { %p3391_p2 = pnand %p4879_p0, %p4878_p13 }
 0x51c   : > { %3717 = dma.done.wait (!%p3391_p2), %s2529_s1, 128  }
 0x51d   : > { %3719 = vsyncadd (!%p3391_p2), %s2529_s1, 4294967168  ;;  %p24_p8 = scmp.ge.s32.totalorder %s3968_s23, 4   ;;  %s4880_s27 = smov %s3726_s28 }
 0x51e   : > { %s4881_s28 = smov %s3730_s29  ;;  %s4882_s29 = smov %s3980_s18 }
 0x51f   : > { %s4883_s30 = smov %s3968_s23  ;;  %26 = sbr.rel (!%p24_p8) target bundleno = 10 (0xa), region = 117 }
 0x526   :  { %2534 = vsyncpa [#allocation3], 1 }
 0x527   :  { %2536 = vsyncpa [#allocation3 + $0x1], 1 }
 0x528   :  { %2537 = vsyncpa [#allocation6], 1 }
 0x529   :  { %2538 = vsyncpa [#allocation9], 1 }
 0x52a   :  { %2539 = vsyncpa [#allocation12], 1 }
 0x52b   :  { %2540 = vsyncpa [#allocation4], 1 }
 0x52c   :  { %2542 = vsyncpa [#allocation4 + $0x1], 1 }

</bundles_post_ra>
